<compile_context>
chip_gen: v7x
topology: tpu7x:2x2x1
jax: 0.10.0
libtpu: 0.0.40
codegen_flags: <defaults>
</compile_context>

<pallas_src>
import functools

import jax
import jax.numpy as jnp
from jax import lax
from jax.experimental import pallas as pl
from jax.experimental.pallas import tpu as pltpu


def _layer_norm(x, gamma, beta, eps=1e-5):
    mu = jnp.mean(x, axis=-1, keepdims=True)
    var = jnp.mean(jnp.square(x - mu), axis=-1, keepdims=True)
    return (x - mu) * lax.rsqrt(var + eps) * gamma + beta


def _dynamic_chunker_kernel(
    frames_ref,               # (1, T+Lmax, D) f32  zero-padded frames (this batch elem)
    cls_ref,                  # (1, D) f32
    wq_ref, wk_ref, wv_ref,   # (D, D) bf16  (in, out) layout
    bq_ref, bk_ref, bv_ref,   # (1, D) f32
    wo_ref, bo_ref,           # (D, D) bf16, (1, D) f32
    g1_ref, be1_ref,          # (1, D) f32   norm1
    w1_ref, b1_ref,           # (D, F) bf16, (1, F) f32
    w2_ref, b2_ref,           # (F, D) bf16, (1, D) f32
    g2_ref, be2_ref,          # (1, D) f32   norm2
    wc1_ref, bc1_ref,         # (D, D) bf16, (1, D) f32
    wc2_ref, bc2_ref,         # (1, D) bf16, (1, 1) f32
    out_ref,                  # (1, T+1, D) f32; rows 0..T-1 chunk CLS outs, row T count
    p_vec,                    # (1, Lmax) f32 VMEM scratch: candidate p_eoc row
    z_buf,                    # (Lmax, D) f32 VMEM scratch: candidate CLS outputs
    len_sm,                   # (1,) int32 SMEM scratch: chosen-length scalar bridge
    *, T, D, nhead, Lmax, threshold,
):
    f32, bf16 = jnp.float32, jnp.bfloat16
    Lseq = Lmax + 1
    dh = D // nhead
    scale = 1.0 / float(dh) ** 0.5

    def matmul(x, w_ref):
        # f32 activation x bf16 (in,out) weight -> f32 accumulation on the MXU.
        return lax.dot_general(x.astype(bf16), w_ref[...],
                               (((1,), (0,)), ((), ())),
                               preferred_element_type=f32)

    out_ref[...] = jnp.zeros_like(out_ref)
    len_sm[0] = jnp.int32(0)

    # ---- hoisted, invariant for the whole batch element ----
    cls = cls_ref[...].astype(f32)                              # (1, D)
    q_cls = matmul(cls, wq_ref) + bq_ref[...]                   # (1, D)
    k_cls = matmul(cls, wk_ref) + bk_ref[...]                   # (1, D)
    v_cls = matmul(cls, wv_ref) + bv_ref[...]                   # (1, D)

    lane = lax.broadcasted_iota(jnp.int32, (1, D), 1)
    head_masks = [((lane >= h * dh) & (lane < (h + 1) * dh)).astype(f32)
                  for h in range(nhead)]

    key_idx = lax.broadcasted_iota(jnp.int32, (Lmax, Lseq), 1)        # key index j
    cand_len = lax.broadcasted_iota(jnp.int32, (Lmax, Lseq), 0) + 1   # length c+1
    key_ok = (key_idx <= cand_len).astype(f32)                  # CLS (j=0) always ok

    def outer_body(_, carry):
        start, count = carry
        active = start < T

        @pl.when(active)
        def _():
            max_len_here = jnp.minimum(jnp.int32(Lmax), T - start)

            # ---- window K/V projections: once per chunk ----
            window = frames_ref[0, pl.ds(start, Lmax), :]             # (Lmax, D)
            k_win = matmul(window, wk_ref) + bk_ref[...]
            v_win = matmul(window, wv_ref) + bv_ref[...]
            k_full = jnp.concatenate([k_cls, k_win], axis=0)          # (Lseq, D)
            v_full = jnp.concatenate([v_cls, v_win], axis=0)          # (Lseq, D)

            # ---- CLS-query attention, all Lmax candidate lengths batched ----
            attn = jnp.zeros((Lmax, D), f32)
            for mh in head_masks:
                s_h = lax.dot_general(q_cls * mh, k_full,
                                      (((1,), (1,)), ((), ())),
                                      preferred_element_type=f32) * scale   # (1, Lseq)
                e_h = jnp.exp(s_h - jnp.max(s_h, axis=-1, keepdims=True))
                e_b = e_h * key_ok                                    # (Lmax, Lseq)
                p = e_b / jnp.sum(e_b, axis=-1, keepdims=True)
                attn = attn + lax.dot_general(p, v_full * mh,
                                              (((1,), (0,)), ((), ())),
                                              preferred_element_type=f32)
            attn = matmul(attn, wo_ref) + bo_ref[...]                 # (Lmax, D)

            # ---- post-norm encoder layer, CLS row only, batched candidates ----
            y = _layer_norm(cls + attn, g1_ref[...], be1_ref[...])
            ff = jnp.maximum(matmul(y, w1_ref) + b1_ref[...], 0.0)
            ff = matmul(ff, w2_ref) + b2_ref[...]
            z = _layer_norm(y + ff, g2_ref[...], be2_ref[...])        # (Lmax, D)
            z_buf[...] = z

            # ---- end-of-chunk classifier, logits laid out along lanes ----
            hcl = jnp.maximum(matmul(z, wc1_ref) + bc1_ref[...], 0.0)
            logit = lax.dot_general(wc2_ref[...], hcl.astype(bf16),
                                    (((1,), (1,)), ((), ())),
                                    preferred_element_type=f32) + bc2_ref[...]
            p_vec[...] = jax.nn.sigmoid(logit)                        # (1, Lmax)

            # ---- greedy first-accept selection (tiny unrolled scalar loop) ----
            chosen_len = max_len_here
            found = jnp.int32(0)
            for c in range(Lmax):
                length = c + 1
                p_c = p_vec[0, c]
                acc = jnp.logical_or(p_c >= threshold, length == max_len_here)
                valid = length <= max_len_here
                take = jnp.logical_and(jnp.logical_and(valid, acc), found == 0)
                chosen_len = jnp.where(take, jnp.int32(length), chosen_len)
                found = jnp.maximum(found, take.astype(jnp.int32))

            out_ref[0, pl.ds(count, 1), :] = z_buf[pl.ds(chosen_len - 1, 1), :]
            len_sm[0] = chosen_len

        clen = len_sm[0]
        start = jnp.where(active, start + clen, start)
        count = jnp.where(active, count + jnp.int32(1), count)
        return start, count

    _, count = lax.fori_loop(0, T, outer_body, (jnp.int32(0), jnp.int32(0)))
    # Stash the chunk count (as a float row) in the extra output row.
    out_ref[0, pl.ds(T, 1), :] = jnp.broadcast_to(count.astype(f32), (1, D))


def dynamic_chunker(frames, params, *, max_chunk_len, nhead, threshold=0.5):
    B, T, D = frames.shape
    Lmax = int(max_chunk_len)
    T_pad = T + Lmax
    dff = params["w1"].shape[0]
    f32, bf16 = jnp.float32, jnp.bfloat16

    # Zero-pad so the fixed Lmax-row window read never leaves the block.
    frames_p = jnp.zeros((B, T_pad, D), f32).at[:, :T, :].set(frames.astype(f32))

    # Host-side weight prep: split in_proj, transpose to (in, out), cast to bf16.
    wi, bi = params["wi"], params["bi"]
    wq_t = wi[:D].T.astype(bf16)
    wk_t = wi[D:2 * D].T.astype(bf16)
    wv_t = wi[2 * D:].T.astype(bf16)
    bq, bk, bv = bi[:, :D], bi[:, D:2 * D], bi[:, 2 * D:]
    wo_t = params["wo"].T.astype(bf16)
    w1_t = params["w1"].T.astype(bf16)        # (D, dff)
    w2_t = params["w2"].T.astype(bf16)        # (dff, D)
    wc1_t = params["wc1"].T.astype(bf16)
    wc2_r = params["wc2"].astype(bf16)        # (1, D) row layout, contracted on lanes

    def fixed(shape):
        nd = len(shape)
        return pl.BlockSpec(shape, lambda b, _nd=nd: (0,) * _nd)

    in_specs = [
        pl.BlockSpec((1, T_pad, D), lambda b: (b, 0, 0)),     # frames
        fixed((1, D)),                                        # cls
        fixed((D, D)), fixed((D, D)), fixed((D, D)),          # wq wk wv
        fixed((1, D)), fixed((1, D)), fixed((1, D)),          # bq bk bv
        fixed((D, D)), fixed((1, D)),                         # wo bo
        fixed((1, D)), fixed((1, D)),                         # norm1
        fixed((D, dff)), fixed((1, dff)),                     # w1 b1
        fixed((dff, D)), fixed((1, D)),                       # w2 b2
        fixed((1, D)), fixed((1, D)),                         # norm2
        fixed((D, D)), fixed((1, D)),                         # wc1 bc1
        fixed((1, D)), fixed((1, 1)),                         # wc2 bc2
    ]

    kernel = functools.partial(
        _dynamic_chunker_kernel, T=T, D=D, nhead=nhead, Lmax=Lmax,
        threshold=float(threshold))

    raw = pl.pallas_call(
        kernel,
        out_shape=jax.ShapeDtypeStruct((B, T + 1, D), f32),
        grid_spec=pltpu.PrefetchScalarGridSpec(
            num_scalar_prefetch=0,
            grid=(B,),
            in_specs=in_specs,
            out_specs=pl.BlockSpec((1, T + 1, D), lambda b: (b, 0, 0)),
            scratch_shapes=[
                pltpu.VMEM((1, Lmax), f32),
                pltpu.VMEM((Lmax, D), f32),
                pltpu.SMEM((1,), jnp.int32),
            ],
        ),
        compiler_params=pltpu.CompilerParams(
            dimension_semantics=("parallel",)),
    )(frames_p, params["cls"].astype(f32),
      wq_t, wk_t, wv_t, bq, bk, bv,
      wo_t, params["bo"],
      params["g1"], params["be1"],
      w1_t, params["b1"], w2_t, params["b2"],
      params["g2"], params["be2"],
      wc1_t, params["bc1"], wc2_r, params["bc2"])

    raw = jax.block_until_ready(raw)
    counts = jnp.round(raw[:, T, 0]).astype(jnp.int32)        # chunks per batch
    max_chunks = int(jnp.max(counts))                         # dynamic width on host
    return raw[:, :max_chunks, :], counts


def init_params(key, dim, dff):
    ks = jax.random.split(key, 8)

    def w(k, shape, scale=0.1):
        return (scale * jax.random.normal(k, shape)).astype(jnp.float32)

    return dict(
        cls=w(ks[0], (1, dim)),
        wi=w(ks[1], (3 * dim, dim)), bi=jnp.zeros((1, 3 * dim), jnp.float32),
        wo=w(ks[2], (dim, dim)),     bo=jnp.zeros((1, dim), jnp.float32),
        g1=jnp.ones((1, dim), jnp.float32), be1=jnp.zeros((1, dim), jnp.float32),
        w1=w(ks[3], (dff, dim)),     b1=jnp.zeros((1, dff), jnp.float32),
        w2=w(ks[4], (dim, dff)),     b2=jnp.zeros((1, dim), jnp.float32),
        g2=jnp.ones((1, dim), jnp.float32), be2=jnp.zeros((1, dim), jnp.float32),
        wc1=w(ks[5], (dim, dim)),    bc1=jnp.zeros((1, dim), jnp.float32),
        wc2=w(ks[6], (1, dim)),      bc2=jnp.zeros((1, 1), jnp.float32),
    )


if __name__ == "__main__":
    B, T, D = 2, 8, 128
    nhead = 4
    max_chunk_len = 4
    dff = 2048  # nn.TransformerEncoderLayer default dim_feedforward

    key = jax.random.PRNGKey(0)
    kf, kp = jax.random.split(key)
    frames = jax.random.normal(kf, (B, T, D), dtype=jnp.float32)
    params = init_params(kp, D, dff)

    chunks, counts = dynamic_chunker(
        frames, params, max_chunk_len=max_chunk_len, nhead=nhead, threshold=0.5)
    chunks = jax.block_until_ready(chunks)

    assert chunks.ndim == 3 and chunks.shape[0] == B and chunks.shape[2] == D
    assert 1 <= chunks.shape[1] <= T
    assert bool(jnp.all(jnp.isfinite(chunks)))
    assert bool(jnp.all(counts >= 1)) and bool(jnp.all(counts <= T))
    print("KERNEL_OK")
</pallas_src>

<mosaic_0001>
module attributes {stable_mosaic.version = 11 : i64} {
  func.func @_dynamic_chunker_kernel(%arg0: i32, %arg1: memref<1x12x128xf32, #tpu.memory_space<vmem>>, %arg2: memref<1x128xf32, #tpu.memory_space<vmem>>, %arg3: memref<128x128xbf16, #tpu.memory_space<vmem>>, %arg4: memref<128x128xbf16, #tpu.memory_space<vmem>>, %arg5: memref<128x128xbf16, #tpu.memory_space<vmem>>, %arg6: memref<1x128xf32, #tpu.memory_space<vmem>>, %arg7: memref<1x128xf32, #tpu.memory_space<vmem>>, %arg8: memref<1x128xf32, #tpu.memory_space<vmem>>, %arg9: memref<128x128xbf16, #tpu.memory_space<vmem>>, %arg10: memref<1x128xf32, #tpu.memory_space<vmem>>, %arg11: memref<1x128xf32, #tpu.memory_space<vmem>>, %arg12: memref<1x128xf32, #tpu.memory_space<vmem>>, %arg13: memref<128x2048xbf16, #tpu.memory_space<vmem>>, %arg14: memref<1x2048xf32, #tpu.memory_space<vmem>>, %arg15: memref<2048x128xbf16, #tpu.memory_space<vmem>>, %arg16: memref<1x128xf32, #tpu.memory_space<vmem>>, %arg17: memref<1x128xf32, #tpu.memory_space<vmem>>, %arg18: memref<1x128xf32, #tpu.memory_space<vmem>>, %arg19: memref<128x128xbf16, #tpu.memory_space<vmem>>, %arg20: memref<1x128xf32, #tpu.memory_space<vmem>>, %arg21: memref<1x128xbf16, #tpu.memory_space<vmem>>, %arg22: memref<1x1xf32, #tpu.memory_space<vmem>>, %arg23: memref<1x9x128xf32, #tpu.memory_space<vmem>>, %arg24: memref<1x4xf32, #tpu.memory_space<vmem>>, %arg25: memref<4x128xf32, #tpu.memory_space<vmem>>, %arg26: memref<1xi32, #tpu.memory_space<smem>>) attributes {dimension_semantics = [#tpu.dimension_semantics<parallel>], iteration_bounds = array<i64: 2>, scalar_prefetch = 0 : i64, scratch_operands = 3 : i64, tpu.core_type = #tpu.core_type<tc>, window_params = [{transform_indices = @transform_0, window_bounds = array<i64: 1, 12, 128>}, {pipeline_mode = #tpu.pipeline_mode<synchronous>, transform_indices = @transform_1, window_bounds = array<i64: 1, 128>}, {pipeline_mode = #tpu.pipeline_mode<synchronous>, transform_indices = @transform_2, window_bounds = array<i64: 128, 128>}, {pipeline_mode = #tpu.pipeline_mode<synchronous>, transform_indices = @transform_3, window_bounds = array<i64: 128, 128>}, {pipeline_mode = #tpu.pipeline_mode<synchronous>, transform_indices = @transform_4, window_bounds = array<i64: 128, 128>}, {pipeline_mode = #tpu.pipeline_mode<synchronous>, transform_indices = @transform_5, window_bounds = array<i64: 1, 128>}, {pipeline_mode = #tpu.pipeline_mode<synchronous>, transform_indices = @transform_6, window_bounds = array<i64: 1, 128>}, {pipeline_mode = #tpu.pipeline_mode<synchronous>, transform_indices = @transform_7, window_bounds = array<i64: 1, 128>}, {pipeline_mode = #tpu.pipeline_mode<synchronous>, transform_indices = @transform_8, window_bounds = array<i64: 128, 128>}, {pipeline_mode = #tpu.pipeline_mode<synchronous>, transform_indices = @transform_9, window_bounds = array<i64: 1, 128>}, {pipeline_mode = #tpu.pipeline_mode<synchronous>, transform_indices = @transform_10, window_bounds = array<i64: 1, 128>}, {pipeline_mode = #tpu.pipeline_mode<synchronous>, transform_indices = @transform_11, window_bounds = array<i64: 1, 128>}, {pipeline_mode = #tpu.pipeline_mode<synchronous>, transform_indices = @transform_12, window_bounds = array<i64: 128, 2048>}, {pipeline_mode = #tpu.pipeline_mode<synchronous>, transform_indices = @transform_13, window_bounds = array<i64: 1, 2048>}, {pipeline_mode = #tpu.pipeline_mode<synchronous>, transform_indices = @transform_14, window_bounds = array<i64: 2048, 128>}, {pipeline_mode = #tpu.pipeline_mode<synchronous>, transform_indices = @transform_15, window_bounds = array<i64: 1, 128>}, {pipeline_mode = #tpu.pipeline_mode<synchronous>, transform_indices = @transform_16, window_bounds = array<i64: 1, 128>}, {pipeline_mode = #tpu.pipeline_mode<synchronous>, transform_indices = @transform_17, window_bounds = array<i64: 1, 128>}, {pipeline_mode = #tpu.pipeline_mode<synchronous>, transform_indices = @transform_18, window_bounds = array<i64: 128, 128>}, {pipeline_mode = #tpu.pipeline_mode<synchronous>, transform_indices = @transform_19, window_bounds = array<i64: 1, 128>}, {pipeline_mode = #tpu.pipeline_mode<synchronous>, transform_indices = @transform_20, window_bounds = array<i64: 1, 128>}, {pipeline_mode = #tpu.pipeline_mode<synchronous>, transform_indices = @transform_21, window_bounds = array<i64: 1, 1>}, {transform_indices = @transform_22, window_bounds = array<i64: 1, 9, 128>}]} {
    %cst = arith.constant 0.000000e+00 : f32
    %0 = vector.broadcast %cst : f32 to vector<1x9x128xf32>
    %c0 = arith.constant 0 : index
    %c0_0 = arith.constant 0 : index
    %c0_1 = arith.constant 0 : index
    %1 = vector.load %arg23[%c0, %c0_0, %c0_1] : memref<1x9x128xf32, #tpu.memory_space<vmem>>, vector<1x9x128xf32>
    tpu.vector_store %arg23[%c0, %c0_0, %c0_1], %0 {strides = array<i32>} : memref<1x9x128xf32, #tpu.memory_space<vmem>>, vector<1x9x128xf32>,
    %c0_i32 = arith.constant 0 : i32
    %c0_2 = arith.constant 0 : index
    %2 = memref.load %arg26[%c0_2] : memref<1xi32, #tpu.memory_space<smem>>
    memref.store %c0_i32, %arg26[%c0_2] : memref<1xi32, #tpu.memory_space<smem>>
    %c0_3 = arith.constant 0 : index
    %c0_4 = arith.constant 0 : index
    %3 = vector.load %arg2[%c0_3, %c0_4] : memref<1x128xf32, #tpu.memory_space<vmem>>, vector<1x128xf32>
    %4 = arith.truncf %3 : vector<1x128xf32> to vector<1x128xbf16>
    %c0_5 = arith.constant 0 : index
    %c0_6 = arith.constant 0 : index
    %5 = vector.load %arg3[%c0_5, %c0_6] : memref<128x128xbf16, #tpu.memory_space<vmem>>, vector<128x128xbf16>
    %cst_7 = arith.constant dense<0.000000e+00> : vector<1x128xf32>
    %6 = tpu.matmul %4, %5, %cst_7 {dimension_numbers = #tpu.dot_dimension_numbers<[1], [0], [0], [1], [0, 0, 1, 1], [], []>} : vector<1x128xbf16>, vector<128x128xbf16>, vector<1x128xf32> -> vector<1x128xf32>
    %c0_8 = arith.constant 0 : index
    %c0_9 = arith.constant 0 : index
    %7 = vector.load %arg6[%c0_8, %c0_9] : memref<1x128xf32, #tpu.memory_space<vmem>>, vector<1x128xf32>
    %8 = arith.addf %6, %7 : vector<1x128xf32>
    %9 = arith.truncf %3 : vector<1x128xf32> to vector<1x128xbf16>
    %c0_10 = arith.constant 0 : index
    %c0_11 = arith.constant 0 : index
    %10 = vector.load %arg4[%c0_10, %c0_11] : memref<128x128xbf16, #tpu.memory_space<vmem>>, vector<128x128xbf16>
    %cst_12 = arith.constant dense<0.000000e+00> : vector<1x128xf32>
    %11 = tpu.matmul %9, %10, %cst_12 {dimension_numbers = #tpu.dot_dimension_numbers<[1], [0], [0], [1], [0, 0, 1, 1], [], []>} : vector<1x128xbf16>, vector<128x128xbf16>, vector<1x128xf32> -> vector<1x128xf32>
    %c0_13 = arith.constant 0 : index
    %c0_14 = arith.constant 0 : index
    %12 = vector.load %arg7[%c0_13, %c0_14] : memref<1x128xf32, #tpu.memory_space<vmem>>, vector<1x128xf32>
    %13 = arith.addf %11, %12 : vector<1x128xf32>
    %14 = arith.truncf %3 : vector<1x128xf32> to vector<1x128xbf16>
    %c0_15 = arith.constant 0 : index
    %c0_16 = arith.constant 0 : index
    %15 = vector.load %arg5[%c0_15, %c0_16] : memref<128x128xbf16, #tpu.memory_space<vmem>>, vector<128x128xbf16>
    %cst_17 = arith.constant dense<0.000000e+00> : vector<1x128xf32>
    %16 = tpu.matmul %14, %15, %cst_17 {dimension_numbers = #tpu.dot_dimension_numbers<[1], [0], [0], [1], [0, 0, 1, 1], [], []>} : vector<1x128xbf16>, vector<128x128xbf16>, vector<1x128xf32> -> vector<1x128xf32>
    %c0_18 = arith.constant 0 : index
    %c0_19 = arith.constant 0 : index
    %17 = vector.load %arg8[%c0_18, %c0_19] : memref<1x128xf32, #tpu.memory_space<vmem>>, vector<1x128xf32>
    %18 = arith.addf %16, %17 : vector<1x128xf32>
    %19 = tpu.iota {dimensions = array<i32: 1>} : vector<1x128xi32>
    %c0_i32_20 = arith.constant 0 : i32
    %20 = vector.broadcast %c0_i32_20 : i32 to vector<1x128xi32>
    %21 = arith.cmpi sge, %19, %20 : vector<1x128xi32>
    %c32_i32 = arith.constant 32 : i32
    %22 = vector.broadcast %c32_i32 : i32 to vector<1x128xi32>
    %23 = arith.cmpi slt, %19, %22 : vector<1x128xi32>
    %24 = arith.andi %21, %23 : vector<1x128xi1>
    %25 = arith.extui %24 : vector<1x128xi1> to vector<1x128xi32>
    %26 = arith.sitofp %25 : vector<1x128xi32> to vector<1x128xf32>
    %c32_i32_21 = arith.constant 32 : i32
    %27 = vector.broadcast %c32_i32_21 : i32 to vector<1x128xi32>
    %28 = arith.cmpi sge, %19, %27 : vector<1x128xi32>
    %c64_i32 = arith.constant 64 : i32
    %29 = vector.broadcast %c64_i32 : i32 to vector<1x128xi32>
    %30 = arith.cmpi slt, %19, %29 : vector<1x128xi32>
    %31 = arith.andi %28, %30 : vector<1x128xi1>
    %32 = arith.extui %31 : vector<1x128xi1> to vector<1x128xi32>
    %33 = arith.sitofp %32 : vector<1x128xi32> to vector<1x128xf32>
    %c64_i32_22 = arith.constant 64 : i32
    %34 = vector.broadcast %c64_i32_22 : i32 to vector<1x128xi32>
    %35 = arith.cmpi sge, %19, %34 : vector<1x128xi32>
    %c96_i32 = arith.constant 96 : i32
    %36 = vector.broadcast %c96_i32 : i32 to vector<1x128xi32>
    %37 = arith.cmpi slt, %19, %36 : vector<1x128xi32>
    %38 = arith.andi %35, %37 : vector<1x128xi1>
    %39 = arith.extui %38 : vector<1x128xi1> to vector<1x128xi32>
    %40 = arith.sitofp %39 : vector<1x128xi32> to vector<1x128xf32>
    %c96_i32_23 = arith.constant 96 : i32
    %41 = vector.broadcast %c96_i32_23 : i32 to vector<1x128xi32>
    %42 = arith.cmpi sge, %19, %41 : vector<1x128xi32>
    %c128_i32 = arith.constant 128 : i32
    %43 = vector.broadcast %c128_i32 : i32 to vector<1x128xi32>
    %44 = arith.cmpi slt, %19, %43 : vector<1x128xi32>
    %45 = arith.andi %42, %44 : vector<1x128xi1>
    %46 = arith.extui %45 : vector<1x128xi1> to vector<1x128xi32>
    %47 = arith.sitofp %46 : vector<1x128xi32> to vector<1x128xf32>
    %48 = tpu.iota {dimensions = array<i32: 1>} : vector<4x5xi32>
    %49 = tpu.iota {dimensions = array<i32: 0>} : vector<4x5xi32>
    %c1_i32 = arith.constant 1 : i32
    %50 = vector.broadcast %c1_i32 : i32 to vector<4x5xi32>
    %51 = arith.addi %49, %50 : vector<4x5xi32>
    %52 = arith.cmpi sle, %48, %51 : vector<4x5xi32>
    %53 = arith.extui %52 : vector<4x5xi1> to vector<4x5xi32>
    %54 = arith.sitofp %53 : vector<4x5xi32> to vector<4x5xf32>
    %c0_i32_24 = arith.constant 0 : i32
    %c0_i32_25 = arith.constant 0 : i32
    %c0_i32_26 = arith.constant 0 : i32
    %c8_i32 = arith.constant 8 : i32
    %55 = arith.addi %c0_i32_26, %c8_i32 : i32
    %c1_i32_27 = arith.constant 1 : i32
    %56:2 = scf.for %arg27 = %c0_i32_26 to %55 step %c1_i32_27 iter_args(%arg28 = %c0_i32_24, %arg29 = %c0_i32_25) -> (i32, i32)  : i32 {
      %c8_i32_30 = arith.constant 8 : i32
      %62 = arith.cmpi slt, %arg28, %c8_i32_30 : i32
      %63 = arith.extui %62 : i1 to i32
      %c0_i32_31 = arith.constant 0 : i32
      %64 = arith.cmpi ne, %63, %c0_i32_31 : i32
      scf.if %64 {
        %c8_i32_34 = arith.constant 8 : i32
        %70 = arith.subi %c8_i32_34, %arg28 : i32
        %c4_i32 = arith.constant 4 : i32
        %71 = arith.minsi %c4_i32, %70 : i32
        %c0_35 = arith.constant 0 : index
        %72 = arith.index_cast %arg28 : i32 to index
        %c0_36 = arith.constant 0 : index
        %73 = vector.load %arg1[%c0_35, %72, %c0_36] : memref<1x12x128xf32, #tpu.memory_space<vmem>>, vector<1x4x128xf32>
        %74 = vector.shape_cast %73 : vector<1x4x128xf32> to vector<4x128xf32>
        %75 = arith.truncf %74 : vector<4x128xf32> to vector<4x128xbf16>
        %c0_37 = arith.constant 0 : index
        %c0_38 = arith.constant 0 : index
        %76 = vector.load %arg4[%c0_37, %c0_38] : memref<128x128xbf16, #tpu.memory_space<vmem>>, vector<128x128xbf16>
        %cst_39 = arith.constant dense<0.000000e+00> : vector<4x128xf32>
        %77 = tpu.matmul %75, %76, %cst_39 {dimension_numbers = #tpu.dot_dimension_numbers<[1], [0], [0], [1], [0, 0, 1, 1], [], []>} : vector<4x128xbf16>, vector<128x128xbf16>, vector<4x128xf32> -> vector<4x128xf32>
        %c0_40 = arith.constant 0 : index
        %c0_41 = arith.constant 0 : index
        %78 = vector.load %arg7[%c0_40, %c0_41] : memref<1x128xf32, #tpu.memory_space<vmem>>, vector<1x128xf32>
        %79 = vector.broadcast %78 : vector<1x128xf32> to vector<4x128xf32>
        %80 = arith.addf %77, %79 : vector<4x128xf32>
        %81 = arith.truncf %74 : vector<4x128xf32> to vector<4x128xbf16>
        %c0_42 = arith.constant 0 : index
        %c0_43 = arith.constant 0 : index
        %82 = vector.load %arg5[%c0_42, %c0_43] : memref<128x128xbf16, #tpu.memory_space<vmem>>, vector<128x128xbf16>
        %cst_44 = arith.constant dense<0.000000e+00> : vector<4x128xf32>
        %83 = tpu.matmul %81, %82, %cst_44 {dimension_numbers = #tpu.dot_dimension_numbers<[1], [0], [0], [1], [0, 0, 1, 1], [], []>} : vector<4x128xbf16>, vector<128x128xbf16>, vector<4x128xf32> -> vector<4x128xf32>
        %c0_45 = arith.constant 0 : index
        %c0_46 = arith.constant 0 : index
        %84 = vector.load %arg8[%c0_45, %c0_46] : memref<1x128xf32, #tpu.memory_space<vmem>>, vector<1x128xf32>
        %85 = vector.broadcast %84 : vector<1x128xf32> to vector<4x128xf32>
        %86 = arith.addf %83, %85 : vector<4x128xf32>
        %87 = tpu.concatenate %13, %80 in 0 : vector<1x128xf32>, vector<4x128xf32> -> vector<5x128xf32>
        %88 = tpu.concatenate %18, %86 in 0 : vector<1x128xf32>, vector<4x128xf32> -> vector<5x128xf32>
        %cst_47 = arith.constant 0.000000e+00 : f32
        %89 = vector.broadcast %cst_47 : f32 to vector<4x128xf32>
        %90 = arith.mulf %8, %26 : vector<1x128xf32>
        %cst_48 = arith.constant dense<0.000000e+00> : vector<1x5xf32>
        %91 = tpu.matmul %90, %87, %cst_48 {dimension_numbers = #tpu.dot_dimension_numbers<[1], [1], [0], [0], [0, 0, 1, 0], [], []>} : vector<1x128xf32>, vector<5x128xf32>, vector<1x5xf32> -> vector<1x5xf32>
        %cst_49 = arith.constant 0.176776692 : f32
        %92 = vector.broadcast %cst_49 : f32 to vector<1x5xf32>
        %93 = arith.mulf %91, %92 : vector<1x5xf32>
        %cst_50 = arith.constant dense<0xFF800000> : vector<1xf32>
        %94 = vector.multi_reduction <maximumf>, %93, %cst_50 [1] : vector<1x5xf32> to vector<1xf32>
        %95 = vector.shape_cast %94 : vector<1xf32> to vector<1x1xf32>
        %96 = vector.broadcast %95 : vector<1x1xf32> to vector<1x5xf32>
        %97 = arith.subf %93, %96 : vector<1x5xf32>
        %98 = math.exp %97 : vector<1x5xf32>
        %99 = vector.broadcast %98 : vector<1x5xf32> to vector<4x5xf32>
        %100 = arith.mulf %99, %54 : vector<4x5xf32>
        %cst_51 = arith.constant dense<0.000000e+00> : vector<4xf32>
        %101 = vector.multi_reduction <add>, %100, %cst_51 [1] : vector<4x5xf32> to vector<4xf32>
        %102 = vector.shape_cast %101 : vector<4xf32> to vector<4x1xf32>
        %103 = vector.broadcast %102 : vector<4x1xf32> to vector<4x5xf32>
        %104 = arith.divf %100, %103 : vector<4x5xf32>
        %105 = vector.broadcast %26 : vector<1x128xf32> to vector<5x128xf32>
        %106 = arith.mulf %88, %105 : vector<5x128xf32>
        %cst_52 = arith.constant dense<0.000000e+00> : vector<4x128xf32>
        %107 = tpu.matmul %104, %106, %cst_52 {dimension_numbers = #tpu.dot_dimension_numbers<[1], [0], [0], [1], [0, 0, 1, 1], [], []>} : vector<4x5xf32>, vector<5x128xf32>, vector<4x128xf32> -> vector<4x128xf32>
        %108 = arith.addf %89, %107 : vector<4x128xf32>
        %109 = arith.mulf %8, %33 : vector<1x128xf32>
        %cst_53 = arith.constant dense<0.000000e+00> : vector<1x5xf32>
        %110 = tpu.matmul %109, %87, %cst_53 {dimension_numbers = #tpu.dot_dimension_numbers<[1], [1], [0], [0], [0, 0, 1, 0], [], []>} : vector<1x128xf32>, vector<5x128xf32>, vector<1x5xf32> -> vector<1x5xf32>
        %cst_54 = arith.constant 0.176776692 : f32
        %111 = vector.broadcast %cst_54 : f32 to vector<1x5xf32>
        %112 = arith.mulf %110, %111 : vector<1x5xf32>
        %cst_55 = arith.constant dense<0xFF800000> : vector<1xf32>
        %113 = vector.multi_reduction <maximumf>, %112, %cst_55 [1] : vector<1x5xf32> to vector<1xf32>
        %114 = vector.shape_cast %113 : vector<1xf32> to vector<1x1xf32>
        %115 = vector.broadcast %114 : vector<1x1xf32> to vector<1x5xf32>
        %116 = arith.subf %112, %115 : vector<1x5xf32>
        %117 = math.exp %116 : vector<1x5xf32>
        %118 = vector.broadcast %117 : vector<1x5xf32> to vector<4x5xf32>
        %119 = arith.mulf %118, %54 : vector<4x5xf32>
        %cst_56 = arith.constant dense<0.000000e+00> : vector<4xf32>
        %120 = vector.multi_reduction <add>, %119, %cst_56 [1] : vector<4x5xf32> to vector<4xf32>
        %121 = vector.shape_cast %120 : vector<4xf32> to vector<4x1xf32>
        %122 = vector.broadcast %121 : vector<4x1xf32> to vector<4x5xf32>
        %123 = arith.divf %119, %122 : vector<4x5xf32>
        %124 = vector.broadcast %33 : vector<1x128xf32> to vector<5x128xf32>
        %125 = arith.mulf %88, %124 : vector<5x128xf32>
        %cst_57 = arith.constant dense<0.000000e+00> : vector<4x128xf32>
        %126 = tpu.matmul %123, %125, %cst_57 {dimension_numbers = #tpu.dot_dimension_numbers<[1], [0], [0], [1], [0, 0, 1, 1], [], []>} : vector<4x5xf32>, vector<5x128xf32>, vector<4x128xf32> -> vector<4x128xf32>
        %127 = arith.addf %108, %126 : vector<4x128xf32>
        %128 = arith.mulf %8, %40 : vector<1x128xf32>
        %cst_58 = arith.constant dense<0.000000e+00> : vector<1x5xf32>
        %129 = tpu.matmul %128, %87, %cst_58 {dimension_numbers = #tpu.dot_dimension_numbers<[1], [1], [0], [0], [0, 0, 1, 0], [], []>} : vector<1x128xf32>, vector<5x128xf32>, vector<1x5xf32> -> vector<1x5xf32>
        %cst_59 = arith.constant 0.176776692 : f32
        %130 = vector.broadcast %cst_59 : f32 to vector<1x5xf32>
        %131 = arith.mulf %129, %130 : vector<1x5xf32>
        %cst_60 = arith.constant dense<0xFF800000> : vector<1xf32>
        %132 = vector.multi_reduction <maximumf>, %131, %cst_60 [1] : vector<1x5xf32> to vector<1xf32>
        %133 = vector.shape_cast %132 : vector<1xf32> to vector<1x1xf32>
        %134 = vector.broadcast %133 : vector<1x1xf32> to vector<1x5xf32>
        %135 = arith.subf %131, %134 : vector<1x5xf32>
        %136 = math.exp %135 : vector<1x5xf32>
        %137 = vector.broadcast %136 : vector<1x5xf32> to vector<4x5xf32>
        %138 = arith.mulf %137, %54 : vector<4x5xf32>
        %cst_61 = arith.constant dense<0.000000e+00> : vector<4xf32>
        %139 = vector.multi_reduction <add>, %138, %cst_61 [1] : vector<4x5xf32> to vector<4xf32>
        %140 = vector.shape_cast %139 : vector<4xf32> to vector<4x1xf32>
        %141 = vector.broadcast %140 : vector<4x1xf32> to vector<4x5xf32>
        %142 = arith.divf %138, %141 : vector<4x5xf32>
        %143 = vector.broadcast %40 : vector<1x128xf32> to vector<5x128xf32>
        %144 = arith.mulf %88, %143 : vector<5x128xf32>
        %cst_62 = arith.constant dense<0.000000e+00> : vector<4x128xf32>
        %145 = tpu.matmul %142, %144, %cst_62 {dimension_numbers = #tpu.dot_dimension_numbers<[1], [0], [0], [1], [0, 0, 1, 1], [], []>} : vector<4x5xf32>, vector<5x128xf32>, vector<4x128xf32> -> vector<4x128xf32>
        %146 = arith.addf %127, %145 : vector<4x128xf32>
        %147 = arith.mulf %8, %47 : vector<1x128xf32>
        %cst_63 = arith.constant dense<0.000000e+00> : vector<1x5xf32>
        %148 = tpu.matmul %147, %87, %cst_63 {dimension_numbers = #tpu.dot_dimension_numbers<[1], [1], [0], [0], [0, 0, 1, 0], [], []>} : vector<1x128xf32>, vector<5x128xf32>, vector<1x5xf32> -> vector<1x5xf32>
        %cst_64 = arith.constant 0.176776692 : f32
        %149 = vector.broadcast %cst_64 : f32 to vector<1x5xf32>
        %150 = arith.mulf %148, %149 : vector<1x5xf32>
        %cst_65 = arith.constant dense<0xFF800000> : vector<1xf32>
        %151 = vector.multi_reduction <maximumf>, %150, %cst_65 [1] : vector<1x5xf32> to vector<1xf32>
        %152 = vector.shape_cast %151 : vector<1xf32> to vector<1x1xf32>
        %153 = vector.broadcast %152 : vector<1x1xf32> to vector<1x5xf32>
        %154 = arith.subf %150, %153 : vector<1x5xf32>
        %155 = math.exp %154 : vector<1x5xf32>
        %156 = vector.broadcast %155 : vector<1x5xf32> to vector<4x5xf32>
        %157 = arith.mulf %156, %54 : vector<4x5xf32>
        %cst_66 = arith.constant dense<0.000000e+00> : vector<4xf32>
        %158 = vector.multi_reduction <add>, %157, %cst_66 [1] : vector<4x5xf32> to vector<4xf32>
        %159 = vector.shape_cast %158 : vector<4xf32> to vector<4x1xf32>
        %160 = vector.broadcast %159 : vector<4x1xf32> to vector<4x5xf32>
        %161 = arith.divf %157, %160 : vector<4x5xf32>
        %162 = vector.broadcast %47 : vector<1x128xf32> to vector<5x128xf32>
        %163 = arith.mulf %88, %162 : vector<5x128xf32>
        %cst_67 = arith.constant dense<0.000000e+00> : vector<4x128xf32>
        %164 = tpu.matmul %161, %163, %cst_67 {dimension_numbers = #tpu.dot_dimension_numbers<[1], [0], [0], [1], [0, 0, 1, 1], [], []>} : vector<4x5xf32>, vector<5x128xf32>, vector<4x128xf32> -> vector<4x128xf32>
        %165 = arith.addf %146, %164 : vector<4x128xf32>
        %166 = arith.truncf %165 : vector<4x128xf32> to vector<4x128xbf16>
        %c0_68 = arith.constant 0 : index
        %c0_69 = arith.constant 0 : index
        %167 = vector.load %arg9[%c0_68, %c0_69] : memref<128x128xbf16, #tpu.memory_space<vmem>>, vector<128x128xbf16>
        %cst_70 = arith.constant dense<0.000000e+00> : vector<4x128xf32>
        %168 = tpu.matmul %166, %167, %cst_70 {dimension_numbers = #tpu.dot_dimension_numbers<[1], [0], [0], [1], [0, 0, 1, 1], [], []>} : vector<4x128xbf16>, vector<128x128xbf16>, vector<4x128xf32> -> vector<4x128xf32>
        %c0_71 = arith.constant 0 : index
        %c0_72 = arith.constant 0 : index
        %169 = vector.load %arg10[%c0_71, %c0_72] : memref<1x128xf32, #tpu.memory_space<vmem>>, vector<1x128xf32>
        %170 = vector.broadcast %169 : vector<1x128xf32> to vector<4x128xf32>
        %171 = arith.addf %168, %170 : vector<4x128xf32>
        %172 = vector.broadcast %3 : vector<1x128xf32> to vector<4x128xf32>
        %173 = arith.addf %172, %171 : vector<4x128xf32>
        %c0_73 = arith.constant 0 : index
        %c0_74 = arith.constant 0 : index
        %174 = vector.load %arg11[%c0_73, %c0_74] : memref<1x128xf32, #tpu.memory_space<vmem>>, vector<1x128xf32>
        %c0_75 = arith.constant 0 : index
        %c0_76 = arith.constant 0 : index
        %175 = vector.load %arg12[%c0_75, %c0_76] : memref<1x128xf32, #tpu.memory_space<vmem>>, vector<1x128xf32>
        %cst_77 = arith.constant dense<0.000000e+00> : vector<4xf32>
        %176 = vector.multi_reduction <add>, %173, %cst_77 [1] : vector<4x128xf32> to vector<4xf32>
        %177 = vector.shape_cast %176 : vector<4xf32> to vector<4x1xf32>
        %cst_78 = arith.constant 1.280000e+02 : f32
        %178 = vector.broadcast %cst_78 : f32 to vector<4x1xf32>
        %179 = arith.divf %177, %178 : vector<4x1xf32>
        %180 = vector.broadcast %179 : vector<4x1xf32> to vector<4x128xf32>
        %181 = arith.subf %173, %180 : vector<4x128xf32>
        %182 = arith.mulf %181, %181 : vector<4x128xf32>
        %cst_79 = arith.constant dense<0.000000e+00> : vector<4xf32>
        %183 = vector.multi_reduction <add>, %182, %cst_79 [1] : vector<4x128xf32> to vector<4xf32>
        %184 = vector.shape_cast %183 : vector<4xf32> to vector<4x1xf32>
        %cst_80 = arith.constant 1.280000e+02 : f32
        %185 = vector.broadcast %cst_80 : f32 to vector<4x1xf32>
        %186 = arith.divf %184, %185 : vector<4x1xf32>
        %187 = vector.broadcast %179 : vector<4x1xf32> to vector<4x128xf32>
        %188 = arith.subf %173, %187 : vector<4x128xf32>
        %cst_81 = arith.constant 9.99999974E-6 : f32
        %189 = vector.broadcast %cst_81 : f32 to vector<4x1xf32>
        %190 = arith.addf %186, %189 : vector<4x1xf32>
        %191 = math.rsqrt %190 : vector<4x1xf32>
        %192 = vector.broadcast %191 : vector<4x1xf32> to vector<4x128xf32>
        %193 = arith.mulf %188, %192 : vector<4x128xf32>
        %194 = vector.broadcast %174 : vector<1x128xf32> to vector<4x128xf32>
        %195 = arith.mulf %193, %194 : vector<4x128xf32>
        %196 = vector.broadcast %175 : vector<1x128xf32> to vector<4x128xf32>
        %197 = arith.addf %195, %196 : vector<4x128xf32>
        %198 = arith.truncf %197 : vector<4x128xf32> to vector<4x128xbf16>
        %c0_82 = arith.constant 0 : index
        %c0_83 = arith.constant 0 : index
        %199 = vector.load %arg13[%c0_82, %c0_83] : memref<128x2048xbf16, #tpu.memory_space<vmem>>, vector<128x2048xbf16>
        %cst_84 = arith.constant dense<0.000000e+00> : vector<4x2048xf32>
        %200 = tpu.matmul %198, %199, %cst_84 {dimension_numbers = #tpu.dot_dimension_numbers<[1], [0], [0], [1], [0, 0, 1, 1], [], []>} : vector<4x128xbf16>, vector<128x2048xbf16>, vector<4x2048xf32> -> vector<4x2048xf32>
        %c0_85 = arith.constant 0 : index
        %c0_86 = arith.constant 0 : index
        %201 = vector.load %arg14[%c0_85, %c0_86] : memref<1x2048xf32, #tpu.memory_space<vmem>>, vector<1x2048xf32>
        %202 = vector.broadcast %201 : vector<1x2048xf32> to vector<4x2048xf32>
        %203 = arith.addf %200, %202 : vector<4x2048xf32>
        %cst_87 = arith.constant 0.000000e+00 : f32
        %204 = vector.broadcast %cst_87 : f32 to vector<4x2048xf32>
        %205 = arith.maximumf %203, %204 : vector<4x2048xf32>
        %206 = arith.truncf %205 : vector<4x2048xf32> to vector<4x2048xbf16>
        %c0_88 = arith.constant 0 : index
        %c0_89 = arith.constant 0 : index
        %207 = vector.load %arg15[%c0_88, %c0_89] : memref<2048x128xbf16, #tpu.memory_space<vmem>>, vector<2048x128xbf16>
        %cst_90 = arith.constant dense<0.000000e+00> : vector<4x128xf32>
        %208 = tpu.matmul %206, %207, %cst_90 {dimension_numbers = #tpu.dot_dimension_numbers<[1], [0], [0], [1], [0, 0, 1, 1], [], []>} : vector<4x2048xbf16>, vector<2048x128xbf16>, vector<4x128xf32> -> vector<4x128xf32>
        %c0_91 = arith.constant 0 : index
        %c0_92 = arith.constant 0 : index
        %209 = vector.load %arg16[%c0_91, %c0_92] : memref<1x128xf32, #tpu.memory_space<vmem>>, vector<1x128xf32>
        %210 = vector.broadcast %209 : vector<1x128xf32> to vector<4x128xf32>
        %211 = arith.addf %208, %210 : vector<4x128xf32>
        %212 = arith.addf %197, %211 : vector<4x128xf32>
        %c0_93 = arith.constant 0 : index
        %c0_94 = arith.constant 0 : index
        %213 = vector.load %arg17[%c0_93, %c0_94] : memref<1x128xf32, #tpu.memory_space<vmem>>, vector<1x128xf32>
        %c0_95 = arith.constant 0 : index
        %c0_96 = arith.constant 0 : index
        %214 = vector.load %arg18[%c0_95, %c0_96] : memref<1x128xf32, #tpu.memory_space<vmem>>, vector<1x128xf32>
        %cst_97 = arith.constant dense<0.000000e+00> : vector<4xf32>
        %215 = vector.multi_reduction <add>, %212, %cst_97 [1] : vector<4x128xf32> to vector<4xf32>
        %216 = vector.shape_cast %215 : vector<4xf32> to vector<4x1xf32>
        %cst_98 = arith.constant 1.280000e+02 : f32
        %217 = vector.broadcast %cst_98 : f32 to vector<4x1xf32>
        %218 = arith.divf %216, %217 : vector<4x1xf32>
        %219 = vector.broadcast %218 : vector<4x1xf32> to vector<4x128xf32>
        %220 = arith.subf %212, %219 : vector<4x128xf32>
        %221 = arith.mulf %220, %220 : vector<4x128xf32>
        %cst_99 = arith.constant dense<0.000000e+00> : vector<4xf32>
        %222 = vector.multi_reduction <add>, %221, %cst_99 [1] : vector<4x128xf32> to vector<4xf32>
        %223 = vector.shape_cast %222 : vector<4xf32> to vector<4x1xf32>
        %cst_100 = arith.constant 1.280000e+02 : f32
        %224 = vector.broadcast %cst_100 : f32 to vector<4x1xf32>
        %225 = arith.divf %223, %224 : vector<4x1xf32>
        %226 = vector.broadcast %218 : vector<4x1xf32> to vector<4x128xf32>
        %227 = arith.subf %212, %226 : vector<4x128xf32>
        %cst_101 = arith.constant 9.99999974E-6 : f32
        %228 = vector.broadcast %cst_101 : f32 to vector<4x1xf32>
        %229 = arith.addf %225, %228 : vector<4x1xf32>
        %230 = math.rsqrt %229 : vector<4x1xf32>
        %231 = vector.broadcast %230 : vector<4x1xf32> to vector<4x128xf32>
        %232 = arith.mulf %227, %231 : vector<4x128xf32>
        %233 = vector.broadcast %213 : vector<1x128xf32> to vector<4x128xf32>
        %234 = arith.mulf %232, %233 : vector<4x128xf32>
        %235 = vector.broadcast %214 : vector<1x128xf32> to vector<4x128xf32>
        %236 = arith.addf %234, %235 : vector<4x128xf32>
        %c0_102 = arith.constant 0 : index
        %c0_103 = arith.constant 0 : index
        %237 = vector.load %arg25[%c0_102, %c0_103] : memref<4x128xf32, #tpu.memory_space<vmem>>, vector<4x128xf32>
        tpu.vector_store %arg25[%c0_102, %c0_103], %236 {strides = array<i32>} : memref<4x128xf32, #tpu.memory_space<vmem>>, vector<4x128xf32>,
        %238 = arith.truncf %236 : vector<4x128xf32> to vector<4x128xbf16>
        %c0_104 = arith.constant 0 : index
        %c0_105 = arith.constant 0 : index
        %239 = vector.load %arg19[%c0_104, %c0_105] : memref<128x128xbf16, #tpu.memory_space<vmem>>, vector<128x128xbf16>
        %cst_106 = arith.constant dense<0.000000e+00> : vector<4x128xf32>
        %240 = tpu.matmul %238, %239, %cst_106 {dimension_numbers = #tpu.dot_dimension_numbers<[1], [0], [0], [1], [0, 0, 1, 1], [], []>} : vector<4x128xbf16>, vector<128x128xbf16>, vector<4x128xf32> -> vector<4x128xf32>
        %c0_107 = arith.constant 0 : index
        %c0_108 = arith.constant 0 : index
        %241 = vector.load %arg20[%c0_107, %c0_108] : memref<1x128xf32, #tpu.memory_space<vmem>>, vector<1x128xf32>
        %242 = vector.broadcast %241 : vector<1x128xf32> to vector<4x128xf32>
        %243 = arith.addf %240, %242 : vector<4x128xf32>
        %cst_109 = arith.constant 0.000000e+00 : f32
        %244 = vector.broadcast %cst_109 : f32 to vector<4x128xf32>
        %245 = arith.maximumf %243, %244 : vector<4x128xf32>
        %c0_110 = arith.constant 0 : index
        %c0_111 = arith.constant 0 : index
        %246 = vector.load %arg21[%c0_110, %c0_111] : memref<1x128xbf16, #tpu.memory_space<vmem>>, vector<1x128xbf16>
        %247 = arith.truncf %245 : vector<4x128xf32> to vector<4x128xbf16>
        %cst_112 = arith.constant dense<0.000000e+00> : vector<1x4xf32>
        %248 = tpu.matmul %246, %247, %cst_112 {dimension_numbers = #tpu.dot_dimension_numbers<[1], [1], [0], [0], [0, 0, 1, 0], [], []>} : vector<1x128xbf16>, vector<4x128xbf16>, vector<1x4xf32> -> vector<1x4xf32>
        %c0_113 = arith.constant 0 : index
        %c0_114 = arith.constant 0 : index
        %249 = vector.load %arg22[%c0_113, %c0_114] : memref<1x1xf32, #tpu.memory_space<vmem>>, vector<1x1xf32>
        %250 = vector.broadcast %249 : vector<1x1xf32> to vector<1x4xf32>
        %251 = arith.addf %248, %250 : vector<1x4xf32>
        %252 = arith.negf %251 : vector<1x4xf32>
        %253 = math.exp %252 : vector<1x4xf32>
        %cst_115 = arith.constant 1.000000e+00 : f32
        %254 = vector.broadcast %cst_115 : f32 to vector<1x4xf32>
        %255 = arith.addf %254, %253 : vector<1x4xf32>
        %256 = arith.divf %254, %255 : vector<1x4xf32>
        %c0_116 = arith.constant 0 : index
        %c0_117 = arith.constant 0 : index
        %257 = vector.load %arg24[%c0_116, %c0_117] : memref<1x4xf32, #tpu.memory_space<vmem>>, vector<1x4xf32>
        tpu.vector_store %arg24[%c0_116, %c0_117], %256 {strides = array<i32>} : memref<1x4xf32, #tpu.memory_space<vmem>>, vector<1x4xf32>,
        %c0_118 = arith.constant 0 : index
        %c0_119 = arith.constant 0 : index
        %258 = vector.load %arg24[%c0_118, %c0_119] : memref<1x4xf32, #tpu.memory_space<vmem>>, vector<1x1xf32>
        %259 = vector.extract %258[0, 0] : f32 from vector<1x1xf32>
        %cst_120 = arith.constant 5.000000e-01 : f32
        %260 = arith.cmpf oge, %259, %cst_120 : f32
        %c1_i32_121 = arith.constant 1 : i32
        %261 = arith.cmpi eq, %71, %c1_i32_121 : i32
        %262 = arith.ori %260, %261 : i1
        %c1_i32_122 = arith.constant 1 : i32
        %263 = arith.cmpi sge, %71, %c1_i32_122 : i32
        %264 = arith.andi %263, %262 : i1
        %c0_i32_123 = arith.constant 0 : i32
        %c0_i32_124 = arith.constant 0 : i32
        %265 = arith.cmpi eq, %c0_i32_123, %c0_i32_124 : i32
        %266 = arith.andi %264, %265 : i1
        %c1_i32_125 = arith.constant 1 : i32
        %267 = arith.select %266, %c1_i32_125, %71 : i32
        %268 = arith.extui %266 : i1 to i32
        %c0_i32_126 = arith.constant 0 : i32
        %269 = arith.maxsi %c0_i32_126, %268 : i32
        %c0_127 = arith.constant 0 : index
        %c1 = arith.constant 1 : index
        %270 = vector.load %arg24[%c0_127, %c1] : memref<1x4xf32, #tpu.memory_space<vmem>>, vector<1x1xf32>
        %271 = vector.extract %270[0, 0] : f32 from vector<1x1xf32>
        %cst_128 = arith.constant 5.000000e-01 : f32
        %272 = arith.cmpf oge, %271, %cst_128 : f32
        %c2_i32 = arith.constant 2 : i32
        %273 = arith.cmpi eq, %71, %c2_i32 : i32
        %274 = arith.ori %272, %273 : i1
        %c2_i32_129 = arith.constant 2 : i32
        %275 = arith.cmpi sge, %71, %c2_i32_129 : i32
        %276 = arith.andi %275, %274 : i1
        %c0_i32_130 = arith.constant 0 : i32
        %277 = arith.cmpi eq, %269, %c0_i32_130 : i32
        %278 = arith.andi %276, %277 : i1
        %c2_i32_131 = arith.constant 2 : i32
        %279 = arith.select %278, %c2_i32_131, %267 : i32
        %280 = arith.extui %278 : i1 to i32
        %281 = arith.maxsi %269, %280 : i32
        %c0_132 = arith.constant 0 : index
        %c2 = arith.constant 2 : index
        %282 = vector.load %arg24[%c0_132, %c2] : memref<1x4xf32, #tpu.memory_space<vmem>>, vector<1x1xf32>
        %283 = vector.extract %282[0, 0] : f32 from vector<1x1xf32>
        %cst_133 = arith.constant 5.000000e-01 : f32
        %284 = arith.cmpf oge, %283, %cst_133 : f32
        %c3_i32 = arith.constant 3 : i32
        %285 = arith.cmpi eq, %71, %c3_i32 : i32
        %286 = arith.ori %284, %285 : i1
        %c3_i32_134 = arith.constant 3 : i32
        %287 = arith.cmpi sge, %71, %c3_i32_134 : i32
        %288 = arith.andi %287, %286 : i1
        %c0_i32_135 = arith.constant 0 : i32
        %289 = arith.cmpi eq, %281, %c0_i32_135 : i32
        %290 = arith.andi %288, %289 : i1
        %c3_i32_136 = arith.constant 3 : i32
        %291 = arith.select %290, %c3_i32_136, %279 : i32
        %292 = arith.extui %290 : i1 to i32
        %293 = arith.maxsi %281, %292 : i32
        %c0_137 = arith.constant 0 : index
        %c3 = arith.constant 3 : index
        %294 = vector.load %arg24[%c0_137, %c3] : memref<1x4xf32, #tpu.memory_space<vmem>>, vector<1x1xf32>
        %295 = vector.extract %294[0, 0] : f32 from vector<1x1xf32>
        %cst_138 = arith.constant 5.000000e-01 : f32
        %296 = arith.cmpf oge, %295, %cst_138 : f32
        %c4_i32_139 = arith.constant 4 : i32
        %297 = arith.cmpi eq, %71, %c4_i32_139 : i32
        %298 = arith.ori %296, %297 : i1
        %c4_i32_140 = arith.constant 4 : i32
        %299 = arith.cmpi sge, %71, %c4_i32_140 : i32
        %300 = arith.andi %299, %298 : i1
        %c0_i32_141 = arith.constant 0 : i32
        %301 = arith.cmpi eq, %293, %c0_i32_141 : i32
        %302 = arith.andi %300, %301 : i1
        %c4_i32_142 = arith.constant 4 : i32
        %303 = arith.select %302, %c4_i32_142, %291 : i32
        %c1_i32_143 = arith.constant 1 : i32
        %304 = arith.subi %303, %c1_i32_143 : i32
        %305 = arith.index_cast %304 : i32 to index
        %c0_144 = arith.constant 0 : index
        %306 = vector.load %arg25[%305, %c0_144] : memref<4x128xf32, #tpu.memory_space<vmem>>, vector<1x128xf32>
        %c0_145 = arith.constant 0 : index
        %307 = arith.index_cast %arg29 : i32 to index
        %c0_146 = arith.constant 0 : index
        %308 = vector.load %arg23[%c0_145, %307, %c0_146] : memref<1x9x128xf32, #tpu.memory_space<vmem>>, vector<1x1x128xf32>
        %309 = vector.shape_cast %308 : vector<1x1x128xf32> to vector<1x128xf32>
        %310 = vector.shape_cast %306 : vector<1x128xf32> to vector<1x1x128xf32>
        tpu.vector_store %arg23[%c0_145, %307, %c0_146], %310 {strides = array<i32>} : memref<1x9x128xf32, #tpu.memory_space<vmem>>, vector<1x1x128xf32>,
        %c0_147 = arith.constant 0 : index
        %311 = memref.load %arg26[%c0_147] : memref<1xi32, #tpu.memory_space<smem>>
        memref.store %303, %arg26[%c0_147] : memref<1xi32, #tpu.memory_space<smem>>
      } else {
      }
      %c0_32 = arith.constant 0 : index
      %65 = memref.load %arg26[%c0_32] : memref<1xi32, #tpu.memory_space<smem>>
      %66 = arith.addi %arg28, %65 : i32
      %67 = arith.select %62, %66, %arg28 : i32
      %c1_i32_33 = arith.constant 1 : i32
      %68 = arith.addi %arg29, %c1_i32_33 : i32
      %69 = arith.select %62, %68, %arg29 : i32
      scf.yield %67, %69 : i32, i32
    }
    %57 = arith.sitofp %56#1 : i32 to f32
    %58 = vector.broadcast %57 : f32 to vector<1x128xf32>
    %c0_28 = arith.constant 0 : index
    %c8 = arith.constant 8 : index
    %c0_29 = arith.constant 0 : index
    %59 = vector.load %arg23[%c0_28, %c8, %c0_29] : memref<1x9x128xf32, #tpu.memory_space<vmem>>, vector<1x1x128xf32>
    %60 = vector.shape_cast %59 : vector<1x1x128xf32> to vector<1x128xf32>
    %61 = vector.shape_cast %58 : vector<1x128xf32> to vector<1x1x128xf32>
    tpu.vector_store %arg23[%c0_28, %c8, %c0_29], %61 {strides = array<i32>} : memref<1x9x128xf32, #tpu.memory_space<vmem>>, vector<1x1x128xf32>,
    return
  }
  func.func @transform_0(%arg0: i32) -> (i32, i32, i32) {
    %c0_i32 = arith.constant 0 : i32
    %c0_i32_0 = arith.constant 0 : i32
    %c0_i32_1 = arith.constant 0 : i32
    return %arg0, %c0_i32, %c0_i32_0 : i32, i32, i32
  }
  func.func @transform_1(%arg0: i32) -> (i32, i32) {
    %c0_i32 = arith.constant 0 : i32
    %c0_i32_0 = arith.constant 0 : i32
    %c0_i32_1 = arith.constant 0 : i32
    return %c0_i32, %c0_i32_0 : i32, i32
  }
  func.func @transform_2(%arg0: i32) -> (i32, i32) {
    %c0_i32 = arith.constant 0 : i32
    %c0_i32_0 = arith.constant 0 : i32
    %c0_i32_1 = arith.constant 0 : i32
    return %c0_i32, %c0_i32_0 : i32, i32
  }
  func.func @transform_3(%arg0: i32) -> (i32, i32) {
    %c0_i32 = arith.constant 0 : i32
    %c0_i32_0 = arith.constant 0 : i32
    %c0_i32_1 = arith.constant 0 : i32
    return %c0_i32, %c0_i32_0 : i32, i32
  }
  func.func @transform_4(%arg0: i32) -> (i32, i32) {
    %c0_i32 = arith.constant 0 : i32
    %c0_i32_0 = arith.constant 0 : i32
    %c0_i32_1 = arith.constant 0 : i32
    return %c0_i32, %c0_i32_0 : i32, i32
  }
  func.func @transform_5(%arg0: i32) -> (i32, i32) {
    %c0_i32 = arith.constant 0 : i32
    %c0_i32_0 = arith.constant 0 : i32
    %c0_i32_1 = arith.constant 0 : i32
    return %c0_i32, %c0_i32_0 : i32, i32
  }
  func.func @transform_6(%arg0: i32) -> (i32, i32) {
    %c0_i32 = arith.constant 0 : i32
    %c0_i32_0 = arith.constant 0 : i32
    %c0_i32_1 = arith.constant 0 : i32
    return %c0_i32, %c0_i32_0 : i32, i32
  }
  func.func @transform_7(%arg0: i32) -> (i32, i32) {
    %c0_i32 = arith.constant 0 : i32
    %c0_i32_0 = arith.constant 0 : i32
    %c0_i32_1 = arith.constant 0 : i32
    return %c0_i32, %c0_i32_0 : i32, i32
  }
  func.func @transform_8(%arg0: i32) -> (i32, i32) {
    %c0_i32 = arith.constant 0 : i32
    %c0_i32_0 = arith.constant 0 : i32
    %c0_i32_1 = arith.constant 0 : i32
    return %c0_i32, %c0_i32_0 : i32, i32
  }
  func.func @transform_9(%arg0: i32) -> (i32, i32) {
    %c0_i32 = arith.constant 0 : i32
    %c0_i32_0 = arith.constant 0 : i32
    %c0_i32_1 = arith.constant 0 : i32
    return %c0_i32, %c0_i32_0 : i32, i32
  }
  func.func @transform_10(%arg0: i32) -> (i32, i32) {
    %c0_i32 = arith.constant 0 : i32
    %c0_i32_0 = arith.constant 0 : i32
    %c0_i32_1 = arith.constant 0 : i32
    return %c0_i32, %c0_i32_0 : i32, i32
  }
  func.func @transform_11(%arg0: i32) -> (i32, i32) {
    %c0_i32 = arith.constant 0 : i32
    %c0_i32_0 = arith.constant 0 : i32
    %c0_i32_1 = arith.constant 0 : i32
    return %c0_i32, %c0_i32_0 : i32, i32
  }
  func.func @transform_12(%arg0: i32) -> (i32, i32) {
    %c0_i32 = arith.constant 0 : i32
    %c0_i32_0 = arith.constant 0 : i32
    %c0_i32_1 = arith.constant 0 : i32
    return %c0_i32, %c0_i32_0 : i32, i32
  }
  func.func @transform_13(%arg0: i32) -> (i32, i32) {
    %c0_i32 = arith.constant 0 : i32
    %c0_i32_0 = arith.constant 0 : i32
    %c0_i32_1 = arith.constant 0 : i32
    return %c0_i32, %c0_i32_0 : i32, i32
  }
  func.func @transform_14(%arg0: i32) -> (i32, i32) {
    %c0_i32 = arith.constant 0 : i32
    %c0_i32_0 = arith.constant 0 : i32
    %c0_i32_1 = arith.constant 0 : i32
    return %c0_i32, %c0_i32_0 : i32, i32
  }
  func.func @transform_15(%arg0: i32) -> (i32, i32) {
    %c0_i32 = arith.constant 0 : i32
    %c0_i32_0 = arith.constant 0 : i32
    %c0_i32_1 = arith.constant 0 : i32
    return %c0_i32, %c0_i32_0 : i32, i32
  }
  func.func @transform_16(%arg0: i32) -> (i32, i32) {
    %c0_i32 = arith.constant 0 : i32
    %c0_i32_0 = arith.constant 0 : i32
    %c0_i32_1 = arith.constant 0 : i32
    return %c0_i32, %c0_i32_0 : i32, i32
  }
  func.func @transform_17(%arg0: i32) -> (i32, i32) {
    %c0_i32 = arith.constant 0 : i32
    %c0_i32_0 = arith.constant 0 : i32
    %c0_i32_1 = arith.constant 0 : i32
    return %c0_i32, %c0_i32_0 : i32, i32
  }
  func.func @transform_18(%arg0: i32) -> (i32, i32) {
    %c0_i32 = arith.constant 0 : i32
    %c0_i32_0 = arith.constant 0 : i32
    %c0_i32_1 = arith.constant 0 : i32
    return %c0_i32, %c0_i32_0 : i32, i32
  }
  func.func @transform_19(%arg0: i32) -> (i32, i32) {
    %c0_i32 = arith.constant 0 : i32
    %c0_i32_0 = arith.constant 0 : i32
    %c0_i32_1 = arith.constant 0 : i32
    return %c0_i32, %c0_i32_0 : i32, i32
  }
  func.func @transform_20(%arg0: i32) -> (i32, i32) {
    %c0_i32 = arith.constant 0 : i32
    %c0_i32_0 = arith.constant 0 : i32
    %c0_i32_1 = arith.constant 0 : i32
    return %c0_i32, %c0_i32_0 : i32, i32
  }
  func.func @transform_21(%arg0: i32) -> (i32, i32) {
    %c0_i32 = arith.constant 0 : i32
    %c0_i32_0 = arith.constant 0 : i32
    %c0_i32_1 = arith.constant 0 : i32
    return %c0_i32, %c0_i32_0 : i32, i32
  }
  func.func @transform_22(%arg0: i32) -> (i32, i32, i32) {
    %c0_i32 = arith.constant 0 : i32
    %c0_i32_0 = arith.constant 0 : i32
    %c0_i32_1 = arith.constant 0 : i32
    return %arg0, %c0_i32, %c0_i32_0 : i32, i32, i32
  }
}

</mosaic_0001>

<bundles_post_ra>
// kernel: tpu_custom_call.1
= control target key start
LH: loop header
LB: loop body
LE: loop exit
PB: predicated region body
PF: predicated region fallthrough
CT: control target
= control target key end

     0   :  { %s7383_s0 = inlined_call_operand.vmem [shape: f32[2,12,128], index: 0, kind: input, shape index: {}]   ;;  %s7384_s1 = inlined_call_operand.vmem [shape: f32[1,128], index: 1, kind: input, shape index: {}]   ;;  %s7385_s2 = inlined_call_operand.vmem [shape: bf16[128,128], index: 2, kind: input, shape index: {}]   ;;  %s7386_s3 = inlined_call_operand.hbm [shape: bf16[128,128], index: 3, kind: input, shape index: {}]   ;;  %s7387_s4 = inlined_call_operand.hbm [shape: bf16[128,128], index: 4, kind: input, shape index: {}]   ;;  %s7388_s5 = inlined_call_operand.vmem [shape: f32[1,128], index: 5, kind: input, shape index: {}]   ;;  %s7389_s6 = inlined_call_operand.hbm [shape: f32[1,128], index: 6, kind: input, shape index: {}]   ;;  %s7390_s7 = inlined_call_operand.vmem [shape: f32[1,128], index: 7, kind: input, shape index: {}]   ;;  %s7391_s8 = inlined_call_operand.hbm [shape: bf16[128,128], index: 8, kind: input, shape index: {}]   ;;  %s7392_s9 = inlined_call_operand.vmem [shape: f32[1,128], index: 9, kind: input, shape index: {}]   ;;  %s7393_s10 = inlined_call_operand.vmem [shape: f32[1,128], index: 10, kind: input, shape index: {}]   ;;  %s7394_s11 = inlined_call_operand.vmem [shape: f32[1,128], index: 11, kind: input, shape index: {}]   ;;  %s7395_s12 = inlined_call_operand.hbm [shape: bf16[128,2048], index: 12, kind: input, shape index: {}]   ;;  %s7396_s13 = inlined_call_operand.vmem [shape: f32[1,2048], index: 13, kind: input, shape index: {}]   ;;  %s7397_s14 = inlined_call_operand.hbm [shape: bf16[2048,128], index: 14, kind: input, shape index: {}]   ;;  %s7398_s15 = inlined_call_operand.vmem [shape: f32[1,128], index: 15, kind: input, shape index: {}]   ;;  %s7399_s16 = inlined_call_operand.vmem [shape: f32[1,128], index: 16, kind: input, shape index: {}]   ;;  %s7400_s17 = inlined_call_operand.vmem [shape: f32[1,128], index: 17, kind: input, shape index: {}]   ;;  %s7401_s18 = inlined_call_operand.hbm [shape: bf16[128,128], index: 18, kind: input, shape index: {}]   ;;  %s7402_s19 = inlined_call_operand.vmem [shape: f32[1,128], index: 19, kind: input, shape index: {}]   ;;  %s7403_s20 = inlined_call_operand.vmem [shape: bf16[1,128], index: 20, kind: input, shape index: {}]   ;;  %s7404_s21 = inlined_call_operand.<no memory space> [shape: f32[1,1], index: 21, kind: input, shape index: {}]   ;;  %s7405_s22 = inlined_call_operand.vmem [shape: f32[2,9,128], index: 22, kind: output, shape index: {}]  }
   0x1   :  { %7415 = sst [smem:[#allocation22_spill]] %s7383_s0  ;;  %v27_v0 = vstv %s7404_s21 }
   0x2   :  { %7416 = sst [smem:[#allocation23_spill]] %s7384_s1  ;;  %28 = vst [vmem:[#allocation5] sm:$0x1] %v27_v0 }
   0x3   :  { %7417 = sst [smem:[#allocation24_spill]] %s7385_s2 }
   0x4   :  { %7418 = sst [smem:[#allocation25_spill]] %s7386_s3 }
   0x5   :  { %7419 = sst [smem:[#allocation26_spill]] %s7387_s4 }
   0x6   :  { %7420 = sst [smem:[#allocation27_spill]] %s7388_s5 }
   0x7   :  { %7421 = sst [smem:[#allocation28_spill]] %s7389_s6 }
   0x8   :  { %7422 = sst [smem:[#allocation29_spill]] %s7391_s8 }
   0x9   :  { %7423 = sst [smem:[#allocation30_spill]] %s7399_s16 }
   0xa   :  { %7424 = sst [smem:[#allocation31_spill]] %s7400_s17 }
   0xb   :  { %7425 = sst [smem:[#allocation32_spill]] %s7402_s19 }
   0xc   :  { %7426 = sst [smem:[#allocation33_spill]] %s7403_s20 }
   0xd   :  { %29 = vsyncpa [#allocation7], 0 }
   0xe   :  { %30 = vsyncpa [#allocation9], 0 }
   0xf   :  { %31 = vsyncpa [#allocation12], 0 }
  0x10   :  { %32 = vsyncpa [#allocation15], 0  ;;  %s6739_s29 = smov 0  }
  0x11 LB: > { %7427 = sst [smem:[#allocation21_spill]] %s6588_s29  ;;  %s6745_s30 = sadd.s32 4294967295, %s6588_s29   ;;  %s6588_s29 = sphi %s6739_s29, %s38_s29  }
  0x12   : > { %p5183_p0 = scmp.ge.s32.totalorder %s6588_s29, 1  ;;  %p536_p1 = scmp.lt.s32.totalorder %s6588_s29, 3 }
  0x13   : > { %p7411_p2 = scmp.eq.s32.totalorder %s6745_s30, 0  ;;  %s6602_s4 = smov [#allocation8]  }
  0x14   : > { %p6750_p3 = pnand %p5183_p0, %p536_p1  ;;  %s567_s0 = sshll.u32 %s6602_s4, 4  ;;  %s6754_s0 = int_to_ptr.vmem [resolvable:$true] %s567_s0 }
  0x15   : > { %s6603_s23 = smov [#allocation11]   ;;  %s6604_s24 = smov [#allocation14]  }
  0x16   : > { %s7428_s21 = scalar_select %p6750_p3, 1, 0 }
  0x17   : > { %p6062_p4 = pneg %p6750_p3  ;;  %s597_s1 = sshll.u32 %s6603_s23, 4  ;;  %s6758_s1 = int_to_ptr.vmem [resolvable:$true] %s597_s1 }
  0x18   : > { %s635_s6 = sshll.u32 %s6604_s24, 4  ;;  %s6605_s25 = smov [#allocation6]   ;;  %s6766_s6 = int_to_ptr.vmem [resolvable:$true] %s635_s6 }
  0x19   : > { %p6762_p5 = pnand %p7411_p2, %p6062_p4  ;;  %s6768_s26 = sshll.u32 %s6605_s25, 4  ;;  %s555_s26 = int_to_ptr.vmem [resolvable:$true] %s6768_s26 }
  0x1a   : > { %s7430_s3 = sld [smem:[#allocation26_spill]] }
  0x1b   : > { %p6778_p7 = pneg %p6762_p5 }
  0x20   : > { %s6358_s28 = scalar_lea.hbm %s7430_s3, 1024 }
  0x21   : > { %p6359_p6 = scmp.ne.s32.totalorder %s7430_s3, %s6358_s28  ;;  %p6365_p10 = scmp.lt.u32.totalorder %s6358_s28, %s7430_s3 }
  0x23   : > { %p6361_p8 = pnand %p6778_p7, %p6359_p6 }
  0x25   : > { %p6362_p9 = pneg %p6361_p8 }
  0x27   : > { %p6367_p11 = pnand %p6365_p10, %p6362_p9 }
  0x29   : > { %6370 = shalt.err (!%p6367_p11)
}
  0x2a   : > { %s6371_s2 = scalar_lea.vmem %s6754_s0, 1024  ;;  %p6379_p1 = scmp.lt.s32.totalorder %s6754_s0, %s6754_s0 }
  0x2b   : > { %p6372_p12 = scmp.ne.s32.totalorder %s6754_s0, %s6371_s2  ;;  %p6380_p4 = scmp.lt.s32.totalorder %s6371_s2, %s6371_s2 }
  0x2d   : > { %p6374_p13 = pnand %p6372_p12, %p6778_p7  ;;  %p6381_p6 = por %p6380_p4, %p6379_p1 }
  0x2f   : > { %p6375_p0 = pneg %p6374_p13 }
  0x31   : > { %p6382_p8 = pnand %p6381_p6, %p6375_p0 }
  0x33   : > { %6385 = shalt.err (!%p6382_p8)
}
  0x34   : > { %s6606_s27 = smov 64   ;;  %s6607_s28 = smov 4  }
  0x35   : > { %6068 = dma.hbm_to_vmem [thread:$0]  (!%p6762_p5), %s7430_s3, 1024, %s6754_s0, [#allocation9], %s6606_s27, %s6606_s27, %s6607_s28  }
  0x36   : > { %s7432_s8 = sld [smem:[#allocation29_spill]] }
  0x3c   : > { %s6386_s2 = scalar_lea.hbm %s7432_s8, 1024 }
  0x3d   : > { %p6387_p9 = scmp.ne.s32.totalorder %s7432_s8, %s6386_s2  ;;  %p6393_p12 = scmp.lt.u32.totalorder %s6386_s2, %s7432_s8 }
  0x3f   : > { %p6389_p10 = pnand %p6387_p9, %p6778_p7 }
  0x41   : > { %p6390_p11 = pneg %p6389_p10 }
  0x43   : > { %p6395_p13 = pnand %p6393_p12, %p6390_p11 }
  0x45   : > { %6398 = shalt.err (!%p6395_p13)
}
  0x46   : > { %s6399_s0 = scalar_lea.vmem %s6758_s1, 1024  ;;  %p6407_p6 = scmp.lt.s32.totalorder %s6758_s1, %s6758_s1 }
  0x47   : > { %p6400_p0 = scmp.ne.s32.totalorder %s6758_s1, %s6399_s0  ;;  %p6408_p8 = scmp.lt.s32.totalorder %s6399_s0, %s6399_s0 }
  0x49   : > { %p6402_p1 = pnand %p6400_p0, %p6778_p7  ;;  %p6409_p9 = por %p6408_p8, %p6407_p6 }
  0x4b   : > { %p6403_p4 = pneg %p6402_p1 }
  0x4d   : > { %p6410_p10 = pnand %p6409_p9, %p6403_p4 }
  0x4f   : > { %6413 = shalt.err (!%p6410_p10)
}
  0x50   : > { %6074 = dma.hbm_to_vmem [thread:$0]  (!%p6762_p5), %s7432_s8, 1024, %s6758_s1, [#allocation12], %s6606_s27, %s6606_s27, %s6607_s28  }
  0x51   : > { %s6414_s4 = scalar_lea.hbm %s7397_s14, 16384 }
  0x52   : > { %p6415_p11 = scmp.ne.s32.totalorder %s7397_s14, %s6414_s4  ;;  %p6421_p0 = scmp.lt.u32.totalorder %s6414_s4, %s7397_s14 }
  0x54   : > { %p6417_p12 = pnand %p6415_p11, %p6778_p7 }
  0x56   : > { %p6418_p13 = pneg %p6417_p12 }
  0x58   : > { %p6423_p1 = pnand %p6421_p0, %p6418_p13 }
  0x5a   : > { %6426 = shalt.err (!%p6423_p1)
}
  0x5b   : > { %s6427_s1 = scalar_lea.vmem %s6766_s6, 16384  ;;  %p6435_p9 = scmp.lt.s32.totalorder %s6766_s6, %s6766_s6 }
  0x5c   : > { %p6428_p4 = scmp.ne.s32.totalorder %s6766_s6, %s6427_s1  ;;  %p6436_p10 = scmp.lt.s32.totalorder %s6427_s1, %s6427_s1 }
  0x5e   : > { %p6430_p6 = pnand %p6428_p4, %p6778_p7  ;;  %p6437_p11 = por %p6436_p10, %p6435_p9 }
  0x60   : > { %p6431_p8 = pneg %p6430_p6 }
  0x62   : > { %p6438_p12 = pnand %p6437_p11, %p6431_p8 }
  0x64   : > { %6441 = shalt.err (!%p6438_p12)
}
  0x65   : > { %6080 = dma.hbm_to_vmem [thread:$0]  (!%p6762_p5), %s7397_s14, 16384, %s6766_s6, [#allocation15], %s6606_s27, %s6606_s27, %s6607_s28  }
  0x66   : > { %s7433_s20 = sld [smem:[#allocation25_spill]] }
  0x6c   : > { %s6442_s4 = scalar_lea.hbm %s7433_s20, 1024 }
  0x6d   : > { %p6443_p13 = scmp.ne.s32.totalorder %s7433_s20, %s6442_s4  ;;  %p6449_p4 = scmp.lt.u32.totalorder %s6442_s4, %s7433_s20 }
  0x6f   : > { %p6445_p0 = pnand %p6443_p13, %p6778_p7 }
  0x71   : > { %p6446_p1 = pneg %p6445_p0 }
  0x73   : > { %p6451_p6 = pnand %p6449_p4, %p6446_p1 }
  0x75   : > { %6454 = shalt.err (!%p6451_p6)
}
  0x76   : > { %s6455_s1 = scalar_lea.vmem %s555_s26, 1024  ;;  %p6463_p11 = scmp.lt.s32.totalorder %s555_s26, %s555_s26 }
  0x77   : > { %p6456_p8 = scmp.ne.s32.totalorder %s555_s26, %s6455_s1  ;;  %p6464_p12 = scmp.lt.s32.totalorder %s6455_s1, %s6455_s1 }
  0x79   : > { %p6458_p9 = pnand %p6456_p8, %p6778_p7  ;;  %p6465_p2 = por %p6464_p12, %p6463_p11 }
  0x7b   : > { %p6459_p10 = pneg %p6458_p9 }
  0x7d   : > { %p6466_p3 = pnand %p6465_p2, %p6459_p10 }
  0x7f   : > { %6469 = shalt.err (!%p6466_p3)
}
  0x80   : > { %6065 = dma.hbm_to_vmem [thread:$0]  (!%p6762_p5), %s7433_s20, 1024, %s555_s26, [#allocation7], %s6606_s27, %s6606_s27, %s6607_s28  }
  0x81   : > { %s6608_s16 = smov [#allocation10]   ;;  %s6609_s19 = smov [#allocation13]  }
  0x82   : > { %s584_s17 = sshll.u32 %s6608_s16, 4  ;;  %s619_s4 = sshll.u32 %s6609_s19, 4  ;;  %s585_s17 = int_to_ptr.vmem [resolvable:$true] %s584_s17  ;;  %s620_s4 = int_to_ptr.vmem [resolvable:$true] %s619_s4 }
  0x83   : > { %s7434_s25 = sld [smem:[#allocation28_spill]] }
  0x89   : > { %s6470_s2 = scalar_lea.hbm %s7434_s25, 16 }
  0x8a   : > { %p6471_p2 = scmp.ne.s32.totalorder %s7434_s25, %s6470_s2  ;;  %p6477_p0 = scmp.lt.u32.totalorder %s6470_s2, %s7434_s25 }
  0x8c   : > { %p6473_p3 = pnand %p6471_p2, %p6778_p7 }
  0x8e   : > { %p6474_p13 = pneg %p6473_p3 }
  0x90   : > { %p6479_p1 = pnand %p6477_p0, %p6474_p13 }
  0x92   : > { %6482 = shalt.err (!%p6479_p1)
}
  0x93   : > { %s6483_s26 = scalar_lea.vmem %s585_s17, 16  ;;  %s6490_s0 = scalar_lea.vmem %s585_s17, 32 }
  0x94   : > { %p6484_p4 = scmp.ne.s32.totalorder %s585_s17, %s6483_s26  ;;  %p6491_p9 = scmp.lt.s32.totalorder %s585_s17, %s585_s17 }
  0x95   : > { %p6492_p10 = scmp.lt.s32.totalorder %s6490_s0, %s6483_s26 }
  0x96   : > { %p6486_p6 = pnand %p6484_p4, %p6778_p7 }
  0x97   : > { %p6493_p11 = por %p6492_p10, %p6491_p9 }
  0x98   : > { %p6487_p8 = pneg %p6486_p6 }
  0x9a   : > { %p6494_p12 = pnand %p6493_p11, %p6487_p8 }
  0x9c   : > { %6497 = shalt.err (!%p6494_p12)
}
  0x9d   : > { %6071 = dma.hbm_to_vmem [thread:$0]  (!%p6762_p5), %s7434_s25, 16, %s585_s17, [#allocation9]  }
  0x9e   : > { %s6498_s23 = scalar_lea.hbm %s7395_s12, 16384 }
  0x9f   : > { %p6499_p2 = scmp.ne.s32.totalorder %s7395_s12, %s6498_s23  ;;  %p6505_p0 = scmp.lt.u32.totalorder %s6498_s23, %s7395_s12 }
  0xa1   : > { %p6501_p3 = pnand %p6499_p2, %p6778_p7 }
  0xa3   : > { %p6502_p13 = pneg %p6501_p3 }
  0xa5   : > { %p6507_p1 = pnand %p6505_p0, %p6502_p13 }
  0xa7   : > { %6510 = shalt.err (!%p6507_p1)
}
  0xa8   : > { %s6511_s26 = scalar_lea.vmem %s620_s4, 16384  ;;  %p6519_p9 = scmp.lt.s32.totalorder %s620_s4, %s620_s4 }
  0xa9   : > { %p6512_p4 = scmp.ne.s32.totalorder %s620_s4, %s6511_s26  ;;  %p6520_p10 = scmp.lt.s32.totalorder %s6511_s26, %s6511_s26 }
  0xab   : > { %p6514_p6 = pnand %p6512_p4, %p6778_p7  ;;  %p6521_p11 = por %p6520_p10, %p6519_p9 }
  0xad   : > { %p6515_p8 = pneg %p6514_p6 }
  0xaf   : > { %p6522_p12 = pnand %p6521_p11, %p6515_p8 }
  0xb1   : > { %6525 = shalt.err (!%p6522_p12)
}
  0xb2   : > { %s6610_s17 = smov 1024   ;;  %s6611_s16 = smov [#allocation16]  }
  0xb3   : > { %6077 = dma.hbm_to_vmem [thread:$0]  (!%p6762_p5), %s7395_s12, 16384, %s620_s4, [#allocation12], %s6610_s17, %s6610_s17, %s6606_s27  }
  0xb4   : > { %s657_s8 = sshll.u32 %s6611_s16, 4  ;;  %s6526_s24 = scalar_lea.hbm %s7401_s18, 1024  ;;  %s658_s8 = int_to_ptr.vmem [resolvable:$true] %s657_s8 }
  0xb5   : > { %p6527_p2 = scmp.ne.s32.totalorder %s7401_s18, %s6526_s24  ;;  %p6533_p0 = scmp.lt.u32.totalorder %s6526_s24, %s7401_s18 }
  0xb7   : > { %p6529_p3 = pnand %p6527_p2, %p6778_p7 }
  0xb9   : > { %p6530_p13 = pneg %p6529_p3 }
  0xbb   : > { %p6535_p1 = pnand %p6533_p0, %p6530_p13 }
  0xbd   : > { %6538 = shalt.err (!%p6535_p1)
}
  0xbe   : > { %s6539_s4 = scalar_lea.vmem %s658_s8, 1024  ;;  %p6547_p9 = scmp.lt.s32.totalorder %s658_s8, %s658_s8 }
  0xbf   : > { %p6540_p4 = scmp.ne.s32.totalorder %s658_s8, %s6539_s4  ;;  %p6548_p10 = scmp.lt.s32.totalorder %s6539_s4, %s6539_s4 }
  0xc1   : > { %p6542_p6 = pnand %p6540_p4, %p6778_p7  ;;  %p6549_p11 = por %p6548_p10, %p6547_p9 }
  0xc3   : > { %p6543_p8 = pneg %p6542_p6 }
  0xc5   : > { %p6550_p12 = pnand %p6549_p11, %p6543_p8 }
  0xc7   : > { %6553 = shalt.err (!%p6550_p12)
}
  0xc8   : > { %6083 = dma.hbm_to_vmem [thread:$0]  (!%p6762_p5), %s7401_s18, 1024, %s658_s8, [#allocation15], %s6606_s27, %s6606_s27, %s6607_s28  }
  0xc9   : > { %p7435_p2 = scmp.ne.s32.totalorder %s7428_s21, 0 }
  0xca   : > { %p7436_p7 = scmp.eq.s32.totalorder (!%p7435_p2), %s6745_s30, 0 }
  0xcb   : > { %690 = sbr.rel (%p7435_p2) target bundleno = 3596 (0xe0c), region = 108 }
  0xd2   : > { %6571 = dma.done.wait (%p7436_p7), [#allocation7], 1024   ;;  %p7437_p3 = pmov %p7436_p7 }
  0xd4   : > { %6573 = vsyncadd (%p7437_p3), [#allocation7], 4294966272  ;;  %p7438_p13 = pmov %p7437_p3 }
  0xd5   : > { %p7439_p0 = pmov %p7437_p3 }
  0xd6   : > { %6575 = dma.done.wait (%p7438_p13), [#allocation9], 1040  }
  0xd7   : > { %6577 = vsyncadd (%p7439_p0), [#allocation9], 4294966256  ;;  %p7440_p1 = pmov %p7439_p0 }
  0xd8   : > { %p7441_p5 = pmov %p7439_p0 }
  0xd9   : > { %6579 = dma.done.wait (%p7440_p1), [#allocation12], 17408  }
  0xda   : > { %6581 = vsyncadd (%p7441_p5), [#allocation12], 4294949888  ;;  %p7442_p4 = pmov %p7439_p0 }
  0xdb   : > { %p7443_p6 = pmov %p7439_p0 }
  0xdc   : > { %6583 = dma.done.wait (%p7442_p4), [#allocation15], 17408  }
  0xdd   : > { %6585 = vsyncadd (%p7443_p6), [#allocation15], 4294949888  ;;  %p776_p8 = scmp.lt.s32.totalorder %s6745_s30, 1  ;;  %v1108_v1 = vlaneseq  ;;  %s6612_s29 = smov 0   ;;  %v6613_v2 = vmov 0.0   ;;  %vm6614_vm0 = vmmov 0  }
  0xde   : > { %790 = sst [smem:[#allocation4]] %s6612_s29  ;;  %5834 = vmatprep.subr.bf16.mxu0 %v6613_v2  ;;  %5854 = vmatprep.subr.bf16.mxu1 %v6613_v2  ;;  %s7445_s24 = sld [smem:[#allocation24_spill]]  ;;  %v6157_v14 = vld [vmem:[#allocation6] sm:$0xff]   ;;  %v6159_v16 = vld [vmem:[#allocation6 + $0x8] sm:$0xff]   ;;  %v6161_v18 = vld [vmem:[#allocation6 + $0x10] sm:$0xff]  }
  0xdf   : > { %s7462_s30 = smov (!%p776_p8, %s6745_s30), 1  ;;  %v1109_v3 = vand.u32 127, %v1108_v1  ;;  %v6956_v4 = vshrl.u32 %v1108_v1, 7  ;;  %5850 = vmatprep.mubr.msk.bf16.mxu0 %vm6614_vm0, %v6613_v2  ;;  %5870 = vmatprep.mubr.msk.bf16.mxu1 %vm6614_vm0, %v6613_v2  ;;  %s7444_s28 = sld [smem:[#allocation22_spill]]  ;;  %v6163_v20 = vld [vmem:[#allocation6 + $0x18] sm:$0xff]   ;;  %v6165_v22 = vld [vmem:[#allocation6 + $0x20] sm:$0xff]  }
  0xe0   : > { %s5568_s21 = sshll.u32 %s7462_s30, 4  ;;  %5855 = vmatpush3.bf16.msra.mxu1 %v6157_v14  ;;  %s7446_s2 = sld [smem:[#allocation23_spill]]  ;;  %v6167_v25 = vld [vmem:[#allocation6 + $0x28] sm:$0xff]   ;;  %v6158_v27 = vld [vmem:[#allocation8] sm:$0xff]   ;;  %v6169_v28 = vld [vmem:[#allocation6 + $0x30] sm:$0xff]  }
  0xe1   : > { %vm1111_vm1 = vcmp.lt.s32.totalorder %v1109_v3, 32  ;;  %vm1115_vm2 = vcmp.ge.s32.totalorder %v1109_v3, 32  ;;  %vm1116_vm3 = vcmp.lt.s32.totalorder %v1109_v3, 64  ;;  %vm1120_vm4 = vcmp.ge.s32.totalorder %v1109_v3, 64  ;;  %s6970_s19 = scalar_lea.vmem %s7405_s22, %s5568_s21  ;;  %5856 = vmatprep.subr.bf16.mxu1 %v6613_v2  ;;  %v6160_v29 = vld [vmem:[#allocation8 + $0x8] sm:$0xff]   ;;  %v6171_v30 = vld [vmem:[#allocation6 + $0x38] sm:$0xff]  }
  0xe2   : > { %v6973_v5 = vsel %vm1111_vm1, 1.0, %v6613_v2  ;;  %vm1117_vm5 = vmand %vm1115_vm2, %vm1116_vm3  ;;  %vm1121_vm6 = vcmp.lt.s32.totalorder %v1109_v3, 96  ;;  %vm1125_vm7 = vcmp.ge.s32.totalorder %v1109_v3, 96  ;;  %v1132_v6 = vadd.s32 1, %v6956_v4  ;;  %787 = vst [vmem:[%s6970_s19] sm:$0xff] %v6613_v2  ;;  %v6162_v31 = vld [vmem:[#allocation8 + $0x10] sm:$0xff]   ;;  %v6164_v32 = vld [vmem:[#allocation8 + $0x18] sm:$0xff]  }
  0xe3   : > { %788 = vst [vmem:[%s6970_s19 + $0x8] sm:$0x1] %v6613_v2  ;;  %v6981_v7 = vsel %vm1117_vm5, 1.0, %v6613_v2  ;;  %vm1122_vm8 = vmand %vm1120_vm4, %vm1121_vm6  ;;  %v6984_v8 = vsel %vm1125_vm7, 1.0, %v6613_v2  ;;  %v6166_v33 = vld [vmem:[#allocation8 + $0x20] sm:$0xff]   ;;  %v6168_v34 = vld [vmem:[#allocation8 + $0x28] sm:$0xff]  }
  0xe4   : > { %v6987_v9 = vsel %vm1122_vm8, 1.0, %v6613_v2  ;;  %vm1133_vm9 = vcmp.le.s32.totalorder %v1109_v3, %v1132_v6  ;;  %v6149_v10 = vld [vmem:[%s7445_s24] sm:$0xff]   ;;  %v6150_v12 = vld [vmem:[%s7445_s24 + $0x8] sm:$0xff]   ;;  %v6151_v13 = vld [vmem:[%s7445_s24 + $0x10] sm:$0xff]   ;;  %5857 = vmatpush3.bf16.msra.mxu1 %v6159_v16  ;;  %s7447_s26 = sld [smem:[#allocation27_spill]]  ;;  %s7059_s0 = smov 0  }
  0xe5   : > { %s6965_s3 = scalar_lea.vmem %s7444_s28, %s5568_s21  ;;  %v6993_v11 = vsel %vm1133_vm9, 1.0, %v6613_v2  ;;  %5835 = vmatpush3.bf16.msra.mxu0 %v6149_v10  ;;  %v6152_v15 = vld [vmem:[%s7445_s24 + $0x18] sm:$0xff]   ;;  %v6153_v17 = vld [vmem:[%s7445_s24 + $0x20] sm:$0xff]   ;;  %5858 = vmatprep.subr.bf16.mxu1 %v6613_v2  ;;  %v6154_v19 = vld [vmem:[%s7445_s24 + $0x28] sm:$0xff]   ;;  %s7061_s29 = smov 0  }
  0xe6   : > { %5836 = vmatprep.subr.bf16.mxu0 %v6613_v2  ;;  %v6155_v21 = vld [vmem:[%s7445_s24 + $0x30] sm:$0xff]   ;;  %v6156_v23 = vld [vmem:[%s7445_s24 + $0x38] sm:$0xff]   ;;  %v7029_v24 = vld [vmem:[%s7446_s2] sm:$0x1]  ;;  %s7063_s21 = smov 0  }
  0xe7   : > { %v792_v26 = vpack.c.bf16 %v7029_v24, %v7029_v24  ;;  %v6170_v35 = vld [vmem:[#allocation8 + $0x30] sm:$0xff]   ;;  %v6172_v36 = vld [vmem:[#allocation8 + $0x38] sm:$0xff]   ;;  %v914_v43 = vld [vmem:[#allocation10] sm:$0x1] }
  0xe8   : > { %5859 = vmatpush3.bf16.msra.mxu1 %v6161_v18  ;;  %v1019_v49 = vld [vmem:[%s7390_s7] sm:$0x1] }
  0xe9   : > { %5837 = vmatpush3.bf16.msra.mxu0 %v6150_v12  ;;  %5860 = vmatprep.subr.bf16.mxu1 %v6613_v2 }
  0xea   : > { %5838 = vmatprep.subr.bf16.mxu0 %v6613_v2  ;;  %v809_v37 = vld [vmem:[%s7447_s26] sm:$0x1] }
  0xec   : > { %5861 = vmatpush3.bf16.msra.mxu1 %v6163_v20 }
  0xed   : > { %5839 = vmatpush3.bf16.msra.mxu0 %v6151_v13  ;;  %5862 = vmatprep.subr.bf16.mxu1 %v6613_v2 }
  0xee   : > { %5840 = vmatprep.subr.bf16.mxu0 %v6613_v2 }
  0xf0   : > { %5863 = vmatpush3.bf16.msra.mxu1 %v6165_v22 }
  0xf1   : > { %5841 = vmatpush3.bf16.msra.mxu0 %v6152_v15  ;;  %5864 = vmatprep.subr.bf16.mxu1 %v6613_v2 }
  0xf2   : > { %5842 = vmatprep.subr.bf16.mxu0 %v6613_v2 }
  0xf4   : > { %5865 = vmatpush3.bf16.msra.mxu1 %v6167_v25 }
  0xf5   : > { %5843 = vmatpush3.bf16.msra.mxu0 %v6153_v17  ;;  %5866 = vmatprep.subr.bf16.mxu1 %v6613_v2 }
  0xf6   : > { %5844 = vmatprep.subr.bf16.mxu0 %v6613_v2 }
  0xf8   : > { %5867 = vmatpush3.bf16.msra.mxu1 %v6169_v28 }
  0xf9   : > { %5845 = vmatpush3.bf16.msra.mxu0 %v6154_v19  ;;  %5868 = vmatprep.subr.bf16.mxu1 %v6613_v2 }
  0xfa   : > { %5846 = vmatprep.subr.bf16.mxu0 %v6613_v2 }
  0xfc   : > { %5869 = vmatpush3.bf16.msra.mxu1 %v6171_v30 }
  0xfd   : > { %5847 = vmatpush3.bf16.msra.mxu0 %v6155_v21 }
  0xfe   : > { %5848 = vmatprep.subr.bf16.mxu0 %v6613_v2 }
  0xff   : > { %5871 = vmatmul.mubr.bf16.vlgmr.msra.gmra.mrb[0].mxu1 %v792_v26 }
 0x101   : > { %5849 = vmatpush3.bf16.msra.mxu0 %v6156_v23 }
 0x102   : > { %5874 = vmatprep.subr.bf16.mxu0 %v6613_v2 }
 0x104   : > { %5851 = vmatmul.mubr.bf16.vlgmr.msra.gmra.mrb[0].mxu0 %v792_v26 }
 0x105   : > { %5875 = vmatpush3.bf16.msra.mxu0 %v6158_v27  ;;  %5890 = vmatprep.mubr.msk.bf16.mxu0 %vm6614_vm0, %v6613_v2 }
 0x106   : > { %5876 = vmatprep.subr.bf16.mxu0 %v6613_v2 }
 0x109   : > { %5877 = vmatpush3.bf16.msra.mxu0 %v6160_v29 }
 0x10a   : > { %5878 = vmatprep.subr.bf16.mxu0 %v6613_v2 }
 0x10d   : > { %5879 = vmatpush3.bf16.msra.mxu0 %v6162_v31 }
 0x10e   : > { %5880 = vmatprep.subr.bf16.mxu0 %v6613_v2 }
 0x111   : > { %5881 = vmatpush3.bf16.msra.mxu0 %v6164_v32 }
 0x112   : > { %5882 = vmatprep.subr.bf16.mxu0 %v6613_v2 }
 0x115   : > { %5883 = vmatpush3.bf16.msra.mxu0 %v6166_v33 }
 0x116   : > { %5884 = vmatprep.subr.bf16.mxu0 %v6613_v2 }
 0x119   : > { %5885 = vmatpush3.bf16.msra.mxu0 %v6168_v34 }
 0x11a   : > { %5886 = vmatprep.subr.bf16.mxu0 %v6613_v2 }
 0x11d   : > { %5887 = vmatpush3.bf16.msra.mxu0 %v6170_v35 }
 0x11e   : > { %5888 = vmatprep.subr.bf16.mxu0 %v6613_v2 }
 0x121   : > { %5889 = vmatpush3.bf16.msra.mxu0 %v6172_v36 }
 0x124   : > { %5891 = vmatmul.mubr.bf16.vlgmr.msra.gmra.mrb[4].mxu0 %v792_v26 }
 0x1d2   : > { %v997_v44 = vpop.f32.mrb[0].mxu1 }
 0x1d3   : > { %v7052_v45 = vadd.f32 %v997_v44, %v914_v43  ;;  %v5872_v46 = vpop.f32.mrb[1].mxu1 }
 0x1d4   : > { %v1000_v47 = vpop.f32.mrb[2].mxu1 }
 0x1d5   : > { %v5873_v48 = vpop.f32.mrb[3].mxu1 }
 0x1d7   : > { %v892_v38 = vpop.f32.mrb[0].mxu0 }
 0x1d8   : > { %v7050_v39 = vadd.f32 %v892_v38, %v809_v37  ;;  %v5852_v40 = vpop.f32.mrb[1].mxu0 }
 0x1d9   : > { %v895_v41 = vpop.f32.mrb[2].mxu0 }
 0x1da   : > { %v5853_v42 = vpop.f32.mrb[3].mxu0 }
 0x1f7   : > { %v1102_v50 = vpop.f32.mrb[4].mxu0 }
 0x1f8   : > { %v7057_v51 = vadd.f32 %v1102_v50, %v1019_v49  ;;  %v5892_v52 = vpop.f32.mrb[5].mxu0 }
 0x1f9   : > { %v1105_v53 = vpop.f32.mrb[6].mxu0 }
 0x1fa   : > { %v5893_v54 = vpop.f32.mrb[7].mxu0 }
 0x1fb LB: >> { %p5233_p10 = scmp.ge.s32.totalorder %s6596_s29, 8  ;;  %s6600_s21 = sphi %s7063_s21, %s1141_s21   ;;  %s6596_s29 = sphi %s7061_s29, %s7459_s29   ;;  %s6592_s0 = sphi %s7059_s0, %s7458_s0  }
 0x1fc   : >> { %v6174_v55 = vld [vmem:[#allocation6] sm:$0xff] (!%p5233_p10)   ;;  %v6615_v56 = vmov (!%p5233_p10), 0.0   ;;  %v6175_v57 = vld [vmem:[#allocation6 + $0x8] sm:$0xff] (!%p5233_p10)   ;;  %vm6616_vm10 = vmmov (!%p5233_p10), 0   ;;  %v6176_v58 = vld [vmem:[#allocation6 + $0x10] sm:$0xff] (!%p5233_p10)   ;;  %s1151_s5 = scalar_lea.vmem (!%p5233_p10), %s6965_s3, %s6596_s29  ;;  %vm1379_vm11 = vcmask (!%p5233_p10), 1040384   ;;  %v1476_v25 = vmul.f32 (!%p5233_p10), %v6981_v7, %v7050_v39 }
 0x1fd   : >> { %1147 = sbr.rel (%p5233_p10) target bundleno = 3585 (0xe01), region = 147  ;;  %5894 = vmatprep.subr.bf16.mxu0 (!%p5233_p10), %v6615_v56  ;;  %5914 = vmatprep.subr.bf16.mxu1 (!%p5233_p10), %v6615_v56  ;;  %v6182_v59 = vld [vmem:[#allocation8] sm:$0xff] (!%p5233_p10)   ;;  %v6177_v60 = vld [vmem:[#allocation6 + $0x18] sm:$0xff] (!%p5233_p10)   ;;  %v6183_v61 = vld [vmem:[#allocation8 + $0x8] sm:$0xff] (!%p5233_p10)   ;;  %v1385_v26 = vmul.f32 (!%p5233_p10), %v6973_v5, %v7050_v39  ;;  %v1719_v28 = vmul.f32 (!%p5233_p10), %v6987_v9, %v7050_v39  ;;  %v1885_v35 = vmul.f32 (!%p5233_p10), %v6984_v8, %v7050_v39  ;;  %vm1569_vm12 = vcmask (!%p5233_p10), 1044480   ;;  %s7448_s8 = sld [smem:[#allocation30_spill]] (!%p5233_p10) }
 0x1fe   : >> { %5895 = vmatpush3.bf16.msra.mxu0 (!%p5233_p10), %v6174_v55  ;;  %5910 = vmatprep.mubr.msk.bf16.mxu0 (!%p5233_p10), %vm6616_vm10, %v6615_v56  ;;  %v6178_v62 = vld [vmem:[#allocation6 + $0x20] sm:$0xff] (!%p5233_p10)   ;;  %v6184_v63 = vld [vmem:[#allocation8 + $0x10] sm:$0xff] (!%p5233_p10)   ;;  %v6179_v0 = vld [vmem:[#allocation6 + $0x28] sm:$0xff] (!%p5233_p10)   ;;  %vm1457_vm13 = vcmask (!%p5233_p10), 32768   ;;  %vm1469_vm14 = vcmask (!%p5233_p10), 35840   ;;  %vm1565_vm15 = vcmask (!%p5233_p10), 39936  }
 0x1ff   : >> { %5896 = vmatprep.subr.bf16.mxu0 (!%p5233_p10), %v6615_v56  ;;  %5930 = vmatprep.mubr.msk.bf16.mxu1 (!%p5233_p10), %vm6616_vm10, %v6615_v56  ;;  %v6185_v1 = vld [vmem:[#allocation8 + $0x18] sm:$0xff] (!%p5233_p10)   ;;  %v6180_v2 = vld [vmem:[#allocation6 + $0x30] sm:$0xff] (!%p5233_p10)   ;;  %v6186_v3 = vld [vmem:[#allocation8 + $0x20] sm:$0xff] (!%p5233_p10)   ;;  %vm2172_vm0 = vcmask (!%p5233_p10), 1043456   ;;  %s7449_s2 = sld [smem:[#allocation31_spill]] (!%p5233_p10)  ;;  %s7450_s26 = sld [smem:[#allocation32_spill]] (!%p5233_p10) }
 0x200   : >> { %5915 = vmatpush3.bf16.msra.mxu1 (!%p5233_p10), %v6182_v59  ;;  %v6181_v6 = vld [vmem:[#allocation6 + $0x38] sm:$0xff] (!%p5233_p10)   ;;  %v6187_v12 = vld [vmem:[#allocation8 + $0x28] sm:$0xff] (!%p5233_p10)   ;;  %v6188_v14 = vld [vmem:[#allocation8 + $0x30] sm:$0xff] (!%p5233_p10)   ;;  %vm4967_vm1 = vcmask (!%p5233_p10), 24576   ;;  %s6618_s27 = smov (!%p5233_p10), 127   ;;  %s6619_s28 = smov (!%p5233_p10), 126  }
 0x201   : >> { %5916 = vmatprep.subr.bf16.mxu1 (!%p5233_p10), %v6615_v56  ;;  %v1152_v10 = vld [vmem:[%s1151_s5] sm:$0xf] (!%p5233_p10)  ;;  %v5234_v16 = vld [vmem:[#allocation10] ss:$0 sm:$0xff] (!%p5233_p10)  ;;  %s7451_s5 = sld [smem:[#allocation33_spill]] (!%p5233_p10)  ;;  %s6620_s16 = smov (!%p5233_p10), 125  }
 0x202   : >> { %5897 = vmatpush3.bf16.msra.mxu0 (!%p5233_p10), %v6175_v57  ;;  %v1153_v13 = vpack.c.bf16 (!%p5233_p10), %v1152_v10, %v1152_v10  ;;  %v6189_v15 = vld [vmem:[#allocation8 + $0x38] sm:$0xff] (!%p5233_p10)  }
 0x203   : >> { %5898 = vmatprep.subr.bf16.mxu0 (!%p5233_p10), %v6615_v56  ;;  %v5243_v27 = vld [vmem:[%s7390_s7] ss:$0 sm:$0xff] (!%p5233_p10) }
 0x204   : >> { %5917 = vmatpush3.bf16.msra.mxu1 %v6183_v61 }
 0x205   : >> { %5918 = vmatprep.subr.bf16.mxu1 %v6615_v56 }
 0x206   : >> { %5899 = vmatpush3.bf16.msra.mxu0 %v6176_v58 }
 0x207   : >> { %5900 = vmatprep.subr.bf16.mxu0 %v6615_v56 }
 0x208   : >> { %5919 = vmatpush3.bf16.msra.mxu1 %v6184_v63 }
 0x209   : >> { %5920 = vmatprep.subr.bf16.mxu1 %v6615_v56 }
 0x20a   : >> { %5901 = vmatpush3.bf16.msra.mxu0 %v6177_v60 }
 0x20b   : >> { %5902 = vmatprep.subr.bf16.mxu0 %v6615_v56 }
 0x20c   : >> { %5921 = vmatpush3.bf16.msra.mxu1 %v6185_v1 }
 0x20d   : >> { %5922 = vmatprep.subr.bf16.mxu1 %v6615_v56 }
 0x20e   : >> { %5903 = vmatpush3.bf16.msra.mxu0 %v6178_v62 }
 0x20f   : >> { %5904 = vmatprep.subr.bf16.mxu0 %v6615_v56 }
 0x210   : >> { %5923 = vmatpush3.bf16.msra.mxu1 %v6186_v3 }
 0x211   : >> { %5924 = vmatprep.subr.bf16.mxu1 %v6615_v56 }
 0x212   : >> { %5905 = vmatpush3.bf16.msra.mxu0 %v6179_v0 }
 0x213   : >> { %5906 = vmatprep.subr.bf16.mxu0 %v6615_v56 }
 0x214   : >> { %5925 = vmatpush3.bf16.msra.mxu1 %v6187_v12  ;;  %v7142_v12 = vsub.s32 0, %v6956_v4 }
 0x215   : >> { %5926 = vmatprep.subr.bf16.mxu1 %v6615_v56 }
 0x216   : >> { %5907 = vmatpush3.bf16.msra.mxu0 %v6180_v2 }
 0x217   : >> { %5908 = vmatprep.subr.bf16.mxu0 %v6615_v56 }
 0x218   : >> { %5927 = vmatpush3.bf16.msra.mxu1 %v6188_v14 }
 0x219   : >> { %5928 = vmatprep.subr.bf16.mxu1 %v6615_v56 }
 0x21a   : >> { %5909 = vmatpush3.bf16.msra.mxu0 %v6181_v6 }
 0x21b   : >> { %5934 = vmatprep.subr.mxu0 %v6615_v56 }
 0x21c   : >> { %5929 = vmatpush3.bf16.msra.mxu1 %v6189_v15 }
 0x21d   : >> { %5911 = vmatmul.mubr.bf16.vlgmr.msra.gmra.mrb[0].mxu0 %v1153_v13  ;;  %5939 = vmatprep.subr.mxu1 %v6615_v56 }
 0x21e   : >> { %5936 = vmatprep.mubr.msk.f32.mxu0 %vm6616_vm10, %v6615_v56 }
 0x21f   : >> { %5931 = vmatmul.mubr.bf16.vlgmr.msra.gmra.mrb[0].mxu1 %v1153_v13 }
 0x220   : >> { %5941 = vmatprep.mubr.msk.f32.mxu1 %vm6616_vm10, %v6615_v56 }
 0x2f0   : >> { %v1259_v17 = vpop.f32.mrb[0].mxu0 }
 0x2f1   : >> { %v1260_v18 = vadd.f32 %v5234_v16, %v1259_v17  ;;  %v5912_v19 = vpop.f32.mrb[1].mxu0 }
 0x2f2   : >> { %v1262_v20 = vpop.f32.mrb[2].mxu0  ;;  %v1370_v29 = vpop.f32.mrb[0].mxu1 }
 0x2f3   : >> { %v1377_v21 = vrot.slane %v1260_v18, 7  ;;  %v5913_v22 = vpop.f32.mrb[3].mxu0  ;;  %v1371_v30 = vadd.f32 %v5243_v27, %v1370_v29  ;;  %v5932_v31 = vpop.f32.mrb[1].mxu1 }
 0x2f4   : >> { %v1373_v32 = vpop.f32.mrb[2].mxu1  ;;  %v6191_v31 = vld [vmem:[#allocation11 + $0x8] sm:$0xff]  }
 0x2f5   : >> { %v1380_v23 = vsel %vm1379_vm11, %v7052_v45, %v1377_v21  ;;  %v1382_v33 = vrot.slane %v1371_v30, 7  ;;  %v5933_v34 = vpop.f32.mrb[3].mxu1  ;;  %v6190_v30 = vld [vmem:[#allocation11] sm:$0xff]   ;;  %v6192_v32 = vld [vmem:[#allocation11 + $0x10] sm:$0xff]  }
 0x2f6   : >> { %5935 = vmatpush3.xpose.msra.mxu0 %v1380_v23  ;;  %5940 = vmatpush3.xpose.msra.mxu1 %v1380_v23  ;;  %v6194_v34 = vld [vmem:[#allocation11 + $0x20] sm:$0xff]  }
 0x2f7   : >> { %5954 = vmatprep.subr.mxu1 %v6615_v56  ;;  %5944 = vmatprep.subr.mxu0 %v6615_v56  ;;  %v7128_v36 = vsel %vm1379_vm11, %v7057_v51, %v1382_v33  ;;  %v6193_v33 = vld [vmem:[#allocation11 + $0x18] sm:$0xff]  }
 0x2f8   : >> { %v1564_v37 = vmul.f32 %v6981_v7, %v7128_v36 }
 0x2f9   : >> { %5942 = vmatmul.mubr.f32.vlgmr.msra.gmra.mrb[4].mxu1 %v1476_v25  ;;  %5937 = vmatmul.mubr.f32.vlgmr.msra.gmra.mrb[4].mxu0 %v1385_v26 }
 0x2fa   : >> { %5955 = vmatpush3.xpose.msra.mxu1 %v1380_v23  ;;  %5956 = vmatprep.mubr.msk.f32.mxu1 %vm6616_vm10, %v6615_v56 }
 0x2fb   : >> { %5964 = vmatprep.subr.mxu1 %v6615_v56  ;;  %5946 = vmatprep.mubr.msk.f32.mxu0 %vm6616_vm10, %v6615_v56 }
 0x2fc   : >> { %5945 = vmatpush3.msk.msra.mxu0 %vm1569_vm12, %v1564_v37  ;;  %v6196_v37 = vld [vmem:[#allocation11 + $0x30] sm:$0xff]  }
 0x2fd   : >> { %5957 = vmatmul.mubr.f32.vlgmr.msra.gmra.mrb[6].mxu1 %v1719_v28  ;;  %5949 = vmatprep.subr.mxu0 %v6615_v56 }
 0x2fe   : >> { %5965 = vmatpush3.xpose.msra.mxu1 %v1380_v23  ;;  %5966 = vmatprep.mubr.msk.f32.mxu1 %vm6616_vm10, %v6615_v56 }
 0x2ff   : >> { %5974 = vmatprep.subr.bf16.mxu1 %v6615_v56 }
 0x301   : >> { %5967 = vmatmul.mubr.f32.vlgmr.msra.gmra.mrb[8].mxu1 %v1885_v35  ;;  %v6195_v35 = vld [vmem:[#allocation11 + $0x28] sm:$0xff]  }
 0x302   : >> { %5990 = vmatprep.mubr.msk.bf16.mxu1 %vm6616_vm10, %v6615_v56  ;;  %5975 = vmatpush3.bf16.msra.mxu1 %v6190_v30  ;;  %v2243_v30 = vld [vmem:[#allocation13 + $0x148] sm:$0xff] }
 0x303   : >> { %5976 = vmatprep.subr.bf16.mxu1 %v6615_v56 }
 0x306   : >> { %5977 = vmatpush3.bf16.msra.mxu1 %v6191_v31 }
 0x307   : >> { %5978 = vmatprep.subr.bf16.mxu1 %v6615_v56 }
 0x30a   : >> { %5979 = vmatpush3.bf16.msra.mxu1 %v6192_v32 }
 0x30b   : >> { %5980 = vmatprep.subr.bf16.mxu1 %v6615_v56 }
 0x30e   : >> { %5981 = vmatpush3.bf16.msra.mxu1 %v6193_v33 }
 0x30f   : >> { %5982 = vmatprep.subr.bf16.mxu1 %v6615_v56 }
 0x312   : >> { %5983 = vmatpush3.bf16.msra.mxu1 %v6194_v34 }
 0x313   : >> { %5984 = vmatprep.subr.bf16.mxu1 %v6615_v56 }
 0x316   : >> { %5985 = vmatpush3.bf16.msra.mxu1 %v6195_v35 }
 0x317   : >> { %5986 = vmatprep.subr.bf16.mxu1 %v6615_v56 }
 0x31a   : >> { %5987 = vmatpush3.bf16.msra.mxu1 %v6196_v37 }
 0x31b   : >> { %5988 = vmatprep.subr.bf16.mxu1 %v6615_v56 }
 0x3cc   : >> { %v1543_v38 = vpop.f32.mrb[4].mxu1  ;;  %v1452_v40 = vpop.f32.mrb[4].mxu0 }
 0x3cd   : >> { %v1547_v41 = vmul.f32 0.17677669, %v1543_v38  ;;  %v5943_v42 = vpop.f32.mrb[5].mxu1  ;;  %v1456_v43 = vmul.f32 0.17677669, %v1452_v40  ;;  %v5938_v44 = vpop.f32.mrb[5].mxu0 }
 0x3ce   : >> { %v1475_v44 = vmul.f32 %v6973_v5, %v7128_v36 }
 0x3cf   : >> { %v1548_v46 = vsel %vm1457_vm13, %v1547_v41, -inf  ;;  %v1458_v50 = vsel %vm1457_vm13, %v1456_v43, -inf }
 0x3d0   : >> { %1549 = vmax.xlane.f32.xlu0 %v1548_v46  ;;  %v1786_v47 = vpop.f32.mrb[6].mxu1 }
 0x3d1   : >> { %v1790_v48 = vmul.f32 0.17677669, %v1786_v47  ;;  %v5958_v49 = vpop.f32.mrb[7].mxu1 }
 0x3d2   : >> { %v1807_v49 = vmul.f32 %v6987_v9, %v7128_v36 }
 0x3d3   : >> { %v1791_v52 = vsel %vm1457_vm13, %v1790_v48, -inf }
 0x3d4   : >> { %1792 = vmax.xlane.f32.xlu1 %v1791_v52  ;;  %v1952_v53 = vpop.f32.mrb[8].mxu1  ;;  %1459 = vmax.xlane.f32.xlu0 %v1458_v50 }
 0x3d5   : >> { %v1956_v54 = vmul.f32 0.17677669, %v1952_v53  ;;  %v5968_v55 = vpop.f32.mrb[9].mxu1  ;;  %v1973_v53 = vmul.f32 %v6984_v8, %v7128_v36  ;;  %v5260_v36 = vld [vmem:[%s7392_s9] ss:$0 sm:$0xff] }
 0x3d7   : >> { %v1957_v57 = vsel %vm1457_vm13, %v1956_v54, -inf }
 0x3d8   : >> { %1958 = vmax.xlane.f32.xlu1 %v1957_v57  ;;  %v6197_v57 = vld [vmem:[#allocation11 + $0x38] sm:$0xff]  }
 0x3d9   : >> { %5989 = vmatpush3.bf16.msra.mxu1 %v6197_v57  ;;  %v2267_v57 = vld [vmem:[#allocation13 + $0x208] sm:$0xff] }
 0x45d   : >> { %v1550_v58 = vpop.xlane.xlu0 %1549 }
 0x45e   : >> { %v1551_v59 = vsub.f32 %v1547_v41, %v1550_v58 }
 0x460   : >> { %v1552_v60 = vmul.f32 1.442695, %v1551_v59 }
 0x461   : >> { %v1793_v61 = vpop.xlane.xlu1 %1792  ;;  %v1460_v62 = vpop.xlane.xlu0 %1459 }
 0x462   : >> { %6334 = vpow2.f32 %v1552_v60  ;;  %v1794_v63 = vsub.f32 %v1790_v48, %v1793_v61  ;;  %v1461_v0 = vsub.f32 %v1456_v43, %v1460_v62  ;;  %v2167_v61 = vrot.slane %v7029_v24, %v7142_v12 }
 0x464   : >> { %v1795_v1 = vmul.f32 1.442695, %v1794_v63  ;;  %v1462_v2 = vmul.f32 1.442695, %v1461_v0 }
 0x465   : >> { %v1959_v3 = vpop.xlane.xlu1 %1958 }
 0x466   : >> { %6336 = vpow2.f32 %v1795_v1  ;;  %v1960_v6 = vsub.f32 %v1956_v54, %v1959_v3 }
 0x467   : >> { %6338 = vpow2.f32 %v1462_v2 }
 0x468   : >> { %v1961_v10 = vmul.f32 1.442695, %v1960_v6 }
 0x46a   : >> { %6340 = vpow2.f32 %v1961_v10  ;;  %v2202_v10 = vld [vmem:[#allocation13] sm:$0xff] }
 0x46c   : >> { %v6335_v13 = vpop.eup %6334 }
 0x46d   : >> { %v1557_v14 = vrot.slane %v6335_v13, %v7142_v12  ;;  %v2210_v13 = vld [vmem:[#allocation13 + $0x40] sm:$0xff] }
 0x46f   : >> { %v1558_v15 = vmul.f32 %v6993_v11, %v1557_v14  ;;  %v2203_v14 = vld [vmem:[#allocation13 + $0x8] sm:$0xff] }
 0x470   : >> { %v6337_v16 = vpop.eup %6336 }
 0x471   : >> { %v6339_v17 = vpop.eup %6338  ;;  %v1559_v18 = vsel %vm1469_vm14, %v1558_v15, 0.0  ;;  %v1800_v19 = vrot.slane %v6337_v16, %v7142_v12  ;;  %v5272_v16 = vcombine.high %v2202_v10, %v2210_v13 }
 0x472   : >> { %1560 = vadd.xlane.f32.xlu0 %v1559_v18  ;;  %v1467_v20 = vrot.slane %v6339_v17, %v7142_v12  ;;  %v2211_v17 = vld [vmem:[#allocation13 + $0x48] sm:$0xff]  ;;  %v2218_v18 = vld [vmem:[#allocation13 + $0x80] sm:$0xff] }
 0x473   : >> { %v1801_v21 = vmul.f32 %v6993_v11, %v1800_v19  ;;  %v2226_v19 = vld [vmem:[#allocation13 + $0xc0] sm:$0xff] }
 0x474   : >> { %v6341_v22 = vpop.eup %6340  ;;  %v1468_v23 = vmul.f32 %v6993_v11, %v1467_v20  ;;  %v5273_v20 = vcombine.low %v2203_v14, %v2211_v17  ;;  %v5287_v31 = vcombine.low %v2218_v18, %v2226_v19 }
 0x475   : >> { %v1802_v25 = vsel %vm1469_vm14, %v1801_v21, 0.0  ;;  %v1966_v26 = vrot.slane %v6341_v22, %v7142_v12  ;;  %v5288_v22 = vcombine.high %v2218_v18, %v2226_v19 }
 0x476   : >> { %1803 = vadd.xlane.f32.xlu0 %v1802_v25  ;;  %v1470_v27 = vsel %vm1469_vm14, %v1468_v23, 0.0  ;;  %v2227_v25 = vld [vmem:[#allocation13 + $0xc8] sm:$0xff] }
 0x477   : >> { %1471 = vadd.xlane.f32.xlu1 %v1470_v27  ;;  %v1967_v28 = vmul.f32 %v6993_v11, %v1966_v26  ;;  %v2234_v26 = vld [vmem:[#allocation13 + $0x100] sm:$0xff] }
 0x479   : >> { %v1968_v29 = vsel %vm1469_vm14, %v1967_v28, 0.0 }
 0x47b   : >> { %1969 = vadd.xlane.f32.xlu1 %v1968_v29  ;;  %v2235_v29 = vld [vmem:[#allocation13 + $0x108] sm:$0xff] }
 0x47c   : >> { %v5306_v34 = vcombine.high %v2235_v29, %v2243_v30  ;;  %v5305_v37 = vcombine.low %v2235_v29, %v2243_v30  ;;  %v2204_v30 = vld [vmem:[#allocation13 + $0x10] sm:$0xff] }
 0x4ff   : >> { %v1561_v38 = vpop.xlane.xlu0 %1560 }
 0x500   : >> { %6342 = vrcp.f32 %v1561_v38 }
 0x503   : >> { %v1804_v43 = vpop.xlane.xlu0 %1803 }
 0x504   : >> { %v1472_v40 = vpop.xlane.xlu1 %1471 }
 0x505   : >> { %6344 = vrcp.f32 %v1472_v40 }
 0x506   : >> { %6346 = vrcp.f32 %v1804_v43 }
 0x508   : >> { %v1970_v48 = vpop.xlane.xlu1 %1969 }
 0x509   : >> { %6348 = vrcp.f32 %v1970_v48 }
 0x50a   : >> { %v6343_v41 = vpop.eup %6342 }
 0x50b   : >> { %v1563_v42 = vmul.f32 %v6343_v41, %v1558_v15  ;;  %v5271_v15 = vcombine.low %v2202_v10, %v2210_v13  ;;  %v2298_v13 = vld [vmem:[#allocation13 + $0x300] sm:$0xff] }
 0x50d   : >> { %5947 = vmatmul.mubr.msk.f32.vlgmr.msra.gmra.mrb[6].mxu0 %vm1565_vm15, %v1563_v42 }
 0x50e   : >> { %5950 = vmatpush3.msk.msra.mxu0 %vm1569_vm12, %v1475_v44  ;;  %5951 = vmatprep.mubr.msk.f32.mxu0 %vm6616_vm10, %v6615_v56  ;;  %v2250_v44 = vld [vmem:[#allocation13 + $0x180] sm:$0xff] }
 0x50f   : >> { %5959 = vmatprep.subr.mxu0 %v6615_v56  ;;  %v6345_v46 = vpop.eup %6344 }
 0x510   : >> { %v1474_v47 = vmul.f32 %v6345_v46, %v1468_v23  ;;  %v6347_v50 = vpop.eup %6346  ;;  %v2219_v23 = vld [vmem:[#allocation13 + $0x88] sm:$0xff]  ;;  %v2258_v46 = vld [vmem:[#allocation13 + $0x1c0] sm:$0xff] }
 0x511   : >> { %v1806_v52 = vmul.f32 %v6347_v50, %v1801_v21  ;;  %v5274_v21 = vcombine.high %v2203_v14, %v2211_v17  ;;  %v5290_v27 = vcombine.high %v2219_v23, %v2227_v25  ;;  %v5289_v32 = vcombine.low %v2219_v23, %v2227_v25  ;;  %v2306_v14 = vld [vmem:[#allocation13 + $0x340] sm:$0xff]  ;;  %v2307_v17 = vld [vmem:[#allocation13 + $0x348] sm:$0xff] }
 0x512   : >> { %v5320_v48 = vcombine.high %v2250_v44, %v2258_v46  ;;  %v5319_v50 = vcombine.low %v2250_v44, %v2258_v46  ;;  %v5367_v18 = vcombine.low %v2298_v13, %v2306_v14  ;;  %v2315_v23 = vld [vmem:[#allocation13 + $0x388] sm:$0xff] }
 0x513   : >> { %v6349_v54 = vpop.eup %6348  ;;  %3095 = vmatprep.subr.bf16.mxu1 %v5274_v21  ;;  %v2314_v21 = vld [vmem:[#allocation13 + $0x380] sm:$0xff] }
 0x514   : >> { %v1972_v55 = vmul.f32 %v6349_v54, %v1967_v28  ;;  %v2242_v28 = vld [vmem:[#allocation13 + $0x140] sm:$0xff] }
 0x515   : >> { %5952 = vmatmul.mubr.msk.f32.vlgmr.msra.gmra.mrb[6].mxu0 %vm1565_vm15, %v1474_v47  ;;  %v5304_v33 = vcombine.high %v2234_v26, %v2242_v28  ;;  %v5303_v35 = vcombine.low %v2234_v26, %v2242_v28  ;;  %v2251_v47 = vld [vmem:[#allocation13 + $0x188] sm:$0xff]  ;;  %v2266_v54 = vld [vmem:[#allocation13 + $0x200] sm:$0xff] }
 0x516   : >> { %5960 = vmatpush3.msk.msra.mxu0 %vm1569_vm12, %v1807_v49  ;;  %5961 = vmatprep.mubr.msk.f32.mxu0 %vm6616_vm10, %v6615_v56  ;;  %v2259_v49 = vld [vmem:[#allocation13 + $0x1c8] sm:$0xff] }
 0x517   : >> { %5969 = vmatprep.subr.mxu0 %v6615_v56  ;;  %v2323_v26 = vld [vmem:[#allocation13 + $0x3c8] sm:$0xff] }
 0x518   : >> { %v5385_v28 = vcombine.low %v2315_v23, %v2323_v26  ;;  %v5386_v29 = vcombine.high %v2315_v23, %v2323_v26 }
 0x51d   : >> { %5962 = vmatmul.mubr.msk.f32.vlgmr.msra.gmra.mrb[6].mxu0 %vm1565_vm15, %v1806_v52  ;;  %v5321_v52 = vcombine.low %v2251_v47, %v2259_v49 }
 0x51e   : >> { %5970 = vmatpush3.msk.msra.mxu0 %vm1569_vm12, %v1973_v53  ;;  %5971 = vmatprep.mubr.msk.f32.mxu0 %vm6616_vm10, %v6615_v56  ;;  %v5322_v53 = vcombine.high %v2251_v47, %v2259_v49  ;;  %v5269_v47 = vld [vmem:[%s7393_s10] ss:$0 sm:$0xff] }
 0x51f   : >> { %3054 = vmatprep.subr.bf16.mxu0 %v5272_v16  ;;  %v5368_v16 = vcombine.high %v2298_v13, %v2306_v14  ;;  %v5270_v49 = vld [vmem:[%s7394_s11] ss:$0 sm:$0xff] }
 0x520   : >> { %v2261_v13 = vld [vmem:[#allocation13 + $0x1d8] sm:$0xff] }
 0x525   : >> { %5972 = vmatmul.mubr.msk.f32.vlgmr.msra.gmra.mrb[6].mxu0 %vm1565_vm15, %v1972_v55  ;;  %v2274_v55 = vld [vmem:[#allocation13 + $0x240] sm:$0xff] }
 0x526   : >> { %3055 = vmatpush1.bf16.msra.mxu0 %v5271_v15  ;;  %v2299_v15 = vld [vmem:[#allocation13 + $0x308] sm:$0xff] }
 0x527   : >> { %3056 = vmatprep.subr.bf16.mxu0 %v5288_v22  ;;  %v5369_v19 = vcombine.low %v2299_v15, %v2307_v17  ;;  %v2322_v22 = vld [vmem:[#allocation13 + $0x3c0] sm:$0xff] }
 0x528   : >> { %v5384_v25 = vcombine.high %v2314_v21, %v2322_v22 }
 0x52a   : >> { %3057 = vmatpush1.bf16.msra.mxu0 %v5287_v31  ;;  %v2212_v31 = vld [vmem:[#allocation13 + $0x50] sm:$0xff] }
 0x52b   : >> { %3058 = vmatprep.subr.bf16.mxu0 %v5304_v33  ;;  %v5275_v33 = vcombine.low %v2204_v30, %v2212_v31 }
 0x52e   : >> { %3059 = vmatpush1.bf16.msra.mxu0 %v5303_v35  ;;  %v2213_v35 = vld [vmem:[#allocation13 + $0x58] sm:$0xff] }
 0x52f   : >> { %3060 = vmatprep.subr.bf16.mxu0 %v5320_v48 }
 0x532   : >> { %3061 = vmatpush1.bf16.msra.mxu0 %v5319_v50 }
 0x5f8   : >> { %v2046_v58 = vpop.f32.mrb[6].mxu0 }
 0x5f9   : >> { %v2051_v59 = vpack.c.bf16 %v2046_v58, %v2046_v58  ;;  %v5973_v60 = vpop.f32.mrb[7].mxu0  ;;  %v5336_v58 = vcombine.high %v2266_v54, %v2274_v55 }
 0x5fa   : >> { %v5335_v60 = vcombine.low %v2266_v54, %v2274_v55  ;;  %v2221_v54 = vld [vmem:[#allocation13 + $0x98] sm:$0xff] }
 0x5fb   : >> { %5991 = vmatmul.mubr.bf16.vlgmr.msra.gmra.mrb[12].mxu1 %v2051_v59  ;;  %v2275_v59 = vld [vmem:[#allocation13 + $0x248] sm:$0xff]  ;;  %3062 = vmatprep.subr.bf16.mxu0 %v5336_v58  ;;  %v2229_v55 = vld [vmem:[#allocation13 + $0xd8] sm:$0xff] }
 0x5fc   : >> { %3096 = vmatpush1.bf16.msra.mxu1 %v5273_v20  ;;  %3063 = vmatpush1.bf16.msra.mxu0 %v5335_v60  ;;  %v5370_v20 = vcombine.high %v2299_v15, %v2307_v17  ;;  %v5294_v60 = vcombine.high %v2221_v54, %v2229_v55 }
 0x5fd   : >> { %3097 = vmatprep.subr.bf16.mxu1 %v5290_v27  ;;  %v5383_v27 = vcombine.low %v2314_v21, %v2322_v22  ;;  %v2277_v21 = vld [vmem:[#allocation13 + $0x258] sm:$0xff] }
 0x600   : >> { %3098 = vmatpush1.bf16.msra.mxu1 %v5289_v32  ;;  %v2205_v32 = vld [vmem:[#allocation13 + $0x18] sm:$0xff] }
 0x601   : >> { %3099 = vmatprep.subr.bf16.mxu1 %v5306_v34  ;;  %v5276_v34 = vcombine.high %v2204_v30, %v2212_v31  ;;  %v2293_v30 = vld [vmem:[#allocation13 + $0x2d8] sm:$0xff] }
 0x604   : >> { %3100 = vmatpush1.bf16.msra.mxu1 %v5305_v37  ;;  %v6617_v37 = vmov 0  }
 0x605   : >> { %3101 = vmatprep.subr.bf16.mxu1 %v5322_v53  ;;  %3086 = vmatprep.mubr.bf16.mxu0 %v6617_v37  ;;  %v2228_v53 = vld [vmem:[#allocation13 + $0xd0] sm:$0xff] }
 0x606   : >> { %3127 = vmatprep.mubr.bf16.mxu1 %v6617_v37  ;;  %6173 = vset.pattern.permute.xlu0 %v6617_v37 }
 0x608   : >> { %3102 = vmatpush1.bf16.msra.mxu1 %v5321_v52  ;;  %v2220_v52 = vld [vmem:[#allocation13 + $0x90] sm:$0xff] }
 0x6ce   : >> { %v2157_v62 = vpop.f32.mrb[12].mxu1 }
 0x6cf   : >> { %v2158_v63 = vadd.f32 %v5260_v36, %v2157_v62  ;;  %v5992_v0 = vpop.f32.mrb[13].mxu1  ;;  %v5337_v36 = vcombine.low %v2267_v57, %v2275_v59  ;;  %v2282_v62 = vld [vmem:[#allocation13 + $0x280] sm:$0xff] }
 0x6d0   : >> { %v2160_v1 = vpop.f32.mrb[14].mxu1  ;;  %v2283_v0 = vld [vmem:[#allocation13 + $0x288] sm:$0xff] }
 0x6d1   : >> { %v5993_v2 = vpop.f32.mrb[15].mxu1  ;;  %v2169_v3 = vadd.f32 %v2167_v61, %v2158_v63  ;;  %v5338_v61 = vcombine.high %v2267_v57, %v2275_v59  ;;  %v2290_v63 = vld [vmem:[#allocation13 + $0x2c0] sm:$0xff]  ;;  %v5292_v59 = vcombine.high %v2220_v52, %v2228_v53 }
 0x6d2   : >> { %v5352_v1 = vcombine.high %v2282_v62, %v2290_v63  ;;  %v2291_v2 = vld [vmem:[#allocation13 + $0x2c8] sm:$0xff] }
 0x6d3   : >> { %v2173_v6 = vsel %vm2172_vm0, %v2169_v3, 0.0  ;;  %3103 = vmatprep.subr.bf16.mxu1 %v5338_v61  ;;  %v5354_v10 = vcombine.high %v2283_v0, %v2291_v2  ;;  %v2244_v61 = vld [vmem:[#allocation13 + $0x150] sm:$0xff] }
 0x6d4   : >> { %2174 = vadd.xlane.f32.xlu0 %v2173_v6  ;;  %3104 = vmatpush1.bf16.msra.mxu1 %v5337_v36  ;;  %v5353_v6 = vcombine.low %v2283_v0, %v2291_v2  ;;  %v2236_v36 = vld [vmem:[#allocation13 + $0x110] sm:$0xff]  ;;  %v5293_v0 = vcombine.low %v2221_v54, %v2229_v55 }
 0x6d5   : >> { %3064 = vmatprep.subr.bf16.mxu0 %v5352_v1  ;;  %3105 = vmatprep.subr.bf16.mxu1 %v5354_v10  ;;  %v5308_v1 = vcombine.high %v2236_v36, %v2244_v61  ;;  %v2253_v10 = vld [vmem:[#allocation13 + $0x198] sm:$0xff]  ;;  %v5307_v14 = vcombine.low %v2236_v36, %v2244_v61  ;;  %v2214_v36 = vld [vmem:[#allocation13 + $0x60] sm:$0xff]  ;;  %v2207_v61 = vld [vmem:[#allocation13 + $0x28] sm:$0xff] }
 0x6d6   : >> { %v5326_v17 = vcombine.high %v2253_v10, %v2261_v13  ;;  %v5325_v23 = vcombine.low %v2253_v10, %v2261_v13  ;;  %v2231_v10 = vld [vmem:[#allocation13 + $0xe8] sm:$0xff] }
 0x6d8   : >> { %3106 = vmatpush1.bf16.msra.mxu1 %v5353_v6  ;;  %v2260_v6 = vld [vmem:[#allocation13 + $0x1d0] sm:$0xff] }
 0x6d9   : >> { %3107 = vmatprep.subr.bf16.mxu1 %v5370_v20  ;;  %v2269_v20 = vld [vmem:[#allocation13 + $0x218] sm:$0xff] }
 0x6da   : >> { %v5342_v26 = vcombine.high %v2269_v20, %v2277_v21 }
 0x6dc   : >> { %3108 = vmatpush1.bf16.msra.mxu1 %v5369_v19  ;;  %v2276_v19 = vld [vmem:[#allocation13 + $0x250] sm:$0xff] }
 0x6dd   : >> { %3109 = vmatprep.subr.bf16.mxu1 %v5386_v29  ;;  %v2285_v29 = vld [vmem:[#allocation13 + $0x298] sm:$0xff] }
 0x6e0   : >> { %3110 = vmatpush1.bf16.msra.mxu1 %v5385_v28  ;;  %v2292_v28 = vld [vmem:[#allocation13 + $0x2d0] sm:$0xff] }
 0x761   : >> { %v2175_v38 = vpop.xlane.xlu0 %2174 }
 0x762   : >> { %v2177_v40 = vmul.f32 0.0078125, %v2175_v38  ;;  %v5277_v38 = vcombine.low %v2205_v32, %v2213_v35 }
 0x764   : >> { %v7190_v41 = vsub.f32 %v2169_v3, %v2177_v40  ;;  %v5351_v3 = vcombine.low %v2282_v62, %v2290_v63  ;;  %v5278_v40 = vcombine.high %v2205_v32, %v2213_v35  ;;  %v2245_v62 = vld [vmem:[#allocation13 + $0x158] sm:$0xff]  ;;  %v5291_v63 = vcombine.low %v2220_v52, %v2228_v53  ;;  %v2300_v35 = vld [vmem:[#allocation13 + $0x310] sm:$0xff] }
 0x765   : >> { %v5341_v32 = vcombine.low %v2269_v20, %v2277_v21  ;;  %v2325_v52 = vld [vmem:[#allocation13 + $0x3d8] sm:$0xff]  ;;  %v2247_v20 = vld [vmem:[#allocation13 + $0x168] sm:$0xff] }
 0x766   : >> { %v2179_v42 = vmul.f32 %v7190_v41, %v7190_v41  ;;  %3065 = vmatpush1.bf16.msra.mxu0 %v5351_v3  ;;  %3177 = vmatprep.subr.bf16.mxu1 %v5278_v40  ;;  %v2252_v3 = vld [vmem:[#allocation13 + $0x190] sm:$0xff]  ;;  %v2301_v40 = vld [vmem:[#allocation13 + $0x318] sm:$0xff] }
 0x767   : >> { %3066 = vmatprep.subr.bf16.mxu0 %v5368_v16  ;;  %v5324_v16 = vcombine.high %v2252_v3, %v2260_v6  ;;  %v5323_v22 = vcombine.low %v2252_v3, %v2260_v6  ;;  %v2230_v3 = vld [vmem:[#allocation13 + $0xe0] sm:$0xff]  ;;  %v2223_v6 = vld [vmem:[#allocation13 + $0xa8] sm:$0xff] }
 0x768   : >> { %v2180_v43 = vsel %vm2172_vm0, %v2179_v42, 0.0 }
 0x769   : >> { %2181 = vadd.xlane.f32.xlu1 %v2180_v43 }
 0x76a   : >> { %3067 = vmatpush1.bf16.msra.mxu0 %v5367_v18  ;;  %v2268_v18 = vld [vmem:[#allocation13 + $0x210] sm:$0xff] }
 0x76b   : >> { %3068 = vmatprep.subr.bf16.mxu0 %v5384_v25  ;;  %v5340_v25 = vcombine.high %v2268_v18, %v2276_v19  ;;  %v5339_v31 = vcombine.low %v2268_v18, %v2276_v19  ;;  %v2246_v18 = vld [vmem:[#allocation13 + $0x160] sm:$0xff]  ;;  %v2239_v19 = vld [vmem:[#allocation13 + $0x128] sm:$0xff] }
 0x76e   : >> { %3069 = vmatpush1.bf16.msra.mxu0 %v5383_v27  ;;  %v2284_v27 = vld [vmem:[#allocation13 + $0x290] sm:$0xff] }
 0x76f   : >> { %3136 = vmatprep.subr.bf16.mxu0 %v5276_v34  ;;  %v5358_v34 = vcombine.high %v2285_v29, %v2293_v30 }
 0x7f6   : >> { %v2182_v42 = vpop.xlane.xlu1 %2181 }
 0x7f7   : >> { %v2183_v43 = vmul.f32 0.0078125, %v2182_v42  ;;  %v2309_v42 = vld [vmem:[#allocation13 + $0x358] sm:$0xff] }
 0x7f8   : >> { %v5373_v54 = vcombine.low %v2301_v40, %v2309_v42 }
 0x7f9   : >> { %v2184_v44 = vadd.f32 1e-05, %v2183_v43  ;;  %v5355_v43 = vcombine.low %v2284_v27, %v2292_v28 }
 0x7fb   : >> { %6350 = vrsqrt.f32 %v2184_v44  ;;  %v5357_v44 = vcombine.low %v2285_v29, %v2293_v30  ;;  %v2263_v29 = vld [vmem:[#allocation13 + $0x1e8] sm:$0xff] }
 0x805   : >> { %v6351_v46 = vpop.eup %6350 }
 0x806   : >> { %v2186_v48 = vmul.f32 %v6351_v46, %v7190_v41  ;;  %v2237_v41 = vld [vmem:[#allocation13 + $0x118] sm:$0xff] }
 0x807   : >> { %v5310_v2 = vcombine.high %v2237_v41, %v2245_v62  ;;  %v5309_v15 = vcombine.low %v2237_v41, %v2245_v62  ;;  %v2215_v41 = vld [vmem:[#allocation13 + $0x68] sm:$0xff] }
 0x808   : >> { %v2193_v50 = vmul.f32 %v5269_v47, %v2186_v48  ;;  %v5374_v47 = vcombine.high %v2301_v40, %v2309_v42  ;;  %v2316_v48 = vld [vmem:[#allocation13 + $0x390] sm:$0xff]  ;;  %v2279_v40 = vld [vmem:[#allocation13 + $0x268] sm:$0xff] }
 0x80a   : >> { %v7205_v57 = vadd.f32 %v5270_v49, %v2193_v50  ;;  %v2324_v49 = vld [vmem:[#allocation13 + $0x3d0] sm:$0xff]  ;;  %v2317_v50 = vld [vmem:[#allocation13 + $0x398] sm:$0xff] }
 0x80b   : >> { %v5388_v55 = vcombine.high %v2316_v48, %v2324_v49  ;;  %v5387_v62 = vcombine.low %v2316_v48, %v2324_v49  ;;  %v2294_v48 = vld [vmem:[#allocation13 + $0x2e0] sm:$0xff]  ;;  %v2287_v49 = vld [vmem:[#allocation13 + $0x2a8] sm:$0xff] }
 0x80c   : >> { %v7209_v58 = vpack.c.bf16 %v7205_v57, %v7205_v57 }
 0x80e   : >> { %3087 = vmatmul.mubr.bf16.vlgmr.msra.gmra.mrb[8].mxu0 %v7209_v58  ;;  %3128 = vmatmul.mubr.bf16.vlgmr.msra.gmra.mrb[16].mxu1 %v7209_v58 }
 0x80f   : >> { %3137 = vmatpush1.bf16.msra.mxu0 %v5275_v33  ;;  %3178 = vmatpush1.bf16.msra.mxu1 %v5277_v38  ;;  %v5356_v33 = vcombine.high %v2284_v27, %v2292_v28  ;;  %v2308_v38 = vld [vmem:[#allocation13 + $0x350] sm:$0xff]  ;;  %v2262_v27 = vld [vmem:[#allocation13 + $0x1e0] sm:$0xff]  ;;  %v2255_v28 = vld [vmem:[#allocation13 + $0x1a8] sm:$0xff] }
 0x810   : >> { %3138 = vmatprep.subr.bf16.mxu0 %v5292_v59  ;;  %3179 = vmatprep.subr.bf16.mxu1 %v5294_v60  ;;  %v5372_v46 = vcombine.high %v2300_v35, %v2308_v38  ;;  %v5371_v53 = vcombine.low %v2300_v35, %v2308_v38  ;;  %v5390_v59 = vcombine.high %v2317_v50, %v2325_v52  ;;  %v2206_v60 = vld [vmem:[#allocation13 + $0x20] sm:$0xff]  ;;  %v2271_v38 = vld [vmem:[#allocation13 + $0x228] sm:$0xff] }
 0x811   : >> { %3168 = vmatprep.mubr.bf16.mxu0 %v6617_v37  ;;  %3209 = vmatprep.mubr.bf16.mxu1 %v6617_v37  ;;  %v5279_v13 = vcombine.low %v2206_v60, %v2214_v36  ;;  %v2278_v35 = vld [vmem:[#allocation13 + $0x260] sm:$0xff] }
 0x813   : >> { %3139 = vmatpush1.bf16.msra.mxu0 %v5291_v63  ;;  %3180 = vmatpush1.bf16.msra.mxu1 %v5293_v0  ;;  %v5389_v63 = vcombine.low %v2317_v50, %v2325_v52  ;;  %v5280_v0 = vcombine.high %v2206_v60, %v2214_v36  ;;  %v2295_v50 = vld [vmem:[#allocation13 + $0x2e8] sm:$0xff]  ;;  %v2310_v60 = vld [vmem:[#allocation13 + $0x360] sm:$0xff] }
 0x814   : >> { %3140 = vmatprep.subr.bf16.mxu0 %v5308_v1  ;;  %3181 = vmatprep.subr.bf16.mxu1 %v5310_v2  ;;  %v5282_v1 = vcombine.high %v2207_v61, %v2215_v41  ;;  %v2222_v2 = vld [vmem:[#allocation13 + $0xa0] sm:$0xff]  ;;  %v2303_v36 = vld [vmem:[#allocation13 + $0x328] sm:$0xff] }
 0x815   : >> { %v5295_v21 = vcombine.low %v2222_v2, %v2230_v3 }
 0x817   : >> { %3141 = vmatpush1.bf16.msra.mxu0 %v5307_v14  ;;  %3182 = vmatpush1.bf16.msra.mxu1 %v5309_v15  ;;  %v5281_v14 = vcombine.low %v2207_v61, %v2215_v41  ;;  %v5296_v15 = vcombine.high %v2222_v2, %v2230_v3  ;;  %v2311_v61 = vld [vmem:[#allocation13 + $0x368] sm:$0xff]  ;;  %v2326_v2 = vld [vmem:[#allocation13 + $0x3e0] sm:$0xff] }
 0x818   : >> { %3142 = vmatprep.subr.bf16.mxu0 %v5324_v16  ;;  %3183 = vmatprep.subr.bf16.mxu1 %v5326_v17  ;;  %v5298_v16 = vcombine.high %v2223_v6, %v2231_v10  ;;  %v2238_v17 = vld [vmem:[#allocation13 + $0x120] sm:$0xff]  ;;  %v2319_v3 = vld [vmem:[#allocation13 + $0x3a8] sm:$0xff] }
 0x819   : >> { %v5311_v30 = vcombine.low %v2238_v17, %v2246_v18 }
 0x81b   : >> { %3143 = vmatpush1.bf16.msra.mxu0 %v5323_v22  ;;  %3184 = vmatpush1.bf16.msra.mxu1 %v5325_v23  ;;  %v5297_v22 = vcombine.low %v2223_v6, %v2231_v10  ;;  %v5312_v23 = vcombine.high %v2238_v17, %v2246_v18  ;;  %v2327_v6 = vld [vmem:[#allocation13 + $0x3e8] sm:$0xff]  ;;  %v2216_v17 = vld [vmem:[#allocation13 + $0x70] sm:$0xff]  ;;  %v2209_v18 = vld [vmem:[#allocation13 + $0x38] sm:$0xff] }
 0x81c   : >> { %3144 = vmatprep.subr.bf16.mxu0 %v5340_v25  ;;  %3185 = vmatprep.subr.bf16.mxu1 %v5342_v26  ;;  %v5314_v25 = vcombine.high %v2239_v19, %v2247_v20  ;;  %v2254_v26 = vld [vmem:[#allocation13 + $0x1a0] sm:$0xff] }
 0x81d   : >> { %v5327_v42 = vcombine.low %v2254_v26, %v2262_v27 }
 0x81f   : >> { %3145 = vmatpush1.bf16.msra.mxu0 %v5339_v31  ;;  %3186 = vmatpush1.bf16.msra.mxu1 %v5341_v32  ;;  %v5313_v31 = vcombine.low %v2239_v19, %v2247_v20  ;;  %v5328_v32 = vcombine.high %v2254_v26, %v2262_v27  ;;  %v2217_v19 = vld [vmem:[#allocation13 + $0x78] sm:$0xff]  ;;  %v2232_v26 = vld [vmem:[#allocation13 + $0xf0] sm:$0xff] }
 0x820   : >> { %3146 = vmatprep.subr.bf16.mxu0 %v5356_v33  ;;  %3187 = vmatprep.subr.bf16.mxu1 %v5358_v34  ;;  %v5330_v33 = vcombine.high %v2255_v28, %v2263_v29  ;;  %v2270_v34 = vld [vmem:[#allocation13 + $0x220] sm:$0xff]  ;;  %v2225_v27 = vld [vmem:[#allocation13 + $0xb8] sm:$0xff] }
 0x821   : >> { %v5343_v52 = vcombine.low %v2270_v34, %v2278_v35 }
 0x823   : >> { %3147 = vmatpush1.bf16.msra.mxu0 %v5355_v43  ;;  %3188 = vmatpush1.bf16.msra.mxu1 %v5357_v44  ;;  %v5329_v43 = vcombine.low %v2255_v28, %v2263_v29  ;;  %v5344_v44 = vcombine.high %v2270_v34, %v2278_v35  ;;  %v2233_v28 = vld [vmem:[#allocation13 + $0xf8] sm:$0xff]  ;;  %v2248_v34 = vld [vmem:[#allocation13 + $0x170] sm:$0xff] }
 0x824   : >> { %3148 = vmatprep.subr.bf16.mxu0 %v5372_v46  ;;  %3189 = vmatprep.subr.bf16.mxu1 %v5374_v47  ;;  %v5346_v46 = vcombine.high %v2271_v38, %v2279_v40  ;;  %v2286_v47 = vld [vmem:[#allocation13 + $0x2a0] sm:$0xff]  ;;  %v2241_v35 = vld [vmem:[#allocation13 + $0x138] sm:$0xff] }
 0x825   : >> { %v5359_v41 = vcombine.low %v2286_v47, %v2294_v48 }
 0x827   : >> { %3149 = vmatpush1.bf16.msra.mxu0 %v5371_v53  ;;  %3190 = vmatpush1.bf16.msra.mxu1 %v5373_v54  ;;  %v5345_v53 = vcombine.low %v2271_v38, %v2279_v40  ;;  %v5360_v54 = vcombine.high %v2286_v47, %v2294_v48  ;;  %v2249_v38 = vld [vmem:[#allocation13 + $0x178] sm:$0xff]  ;;  %v2264_v47 = vld [vmem:[#allocation13 + $0x1f0] sm:$0xff] }
 0x828   : >> { %3150 = vmatprep.subr.bf16.mxu0 %v5388_v55  ;;  %3191 = vmatprep.subr.bf16.mxu1 %v5390_v59  ;;  %v5362_v55 = vcombine.high %v2287_v49, %v2295_v50  ;;  %v2302_v59 = vld [vmem:[#allocation13 + $0x320] sm:$0xff]  ;;  %v2257_v48 = vld [vmem:[#allocation13 + $0x1b8] sm:$0xff] }
 0x829   : >> { %v5375_v10 = vcombine.low %v2302_v59, %v2310_v60 }
 0x82b   : >> { %3151 = vmatpush1.bf16.msra.mxu0 %v5387_v62  ;;  %3192 = vmatpush1.bf16.msra.mxu1 %v5389_v63  ;;  %v5361_v62 = vcombine.low %v2287_v49, %v2295_v50  ;;  %v5376_v63 = vcombine.high %v2302_v59, %v2310_v60  ;;  %v2265_v49 = vld [vmem:[#allocation13 + $0x1f8] sm:$0xff]  ;;  %v2280_v59 = vld [vmem:[#allocation13 + $0x270] sm:$0xff] }
 0x82c   : >> { %3218 = vmatprep.subr.bf16.mxu0 %v5280_v0  ;;  %3259 = vmatprep.subr.bf16.mxu1 %v5282_v1  ;;  %v5378_v0 = vcombine.high %v2303_v36, %v2311_v61  ;;  %v2318_v1 = vld [vmem:[#allocation13 + $0x3a0] sm:$0xff]  ;;  %v2273_v60 = vld [vmem:[#allocation13 + $0x238] sm:$0xff] }
 0x82d   : >> { %v5391_v20 = vcombine.low %v2318_v1, %v2326_v2 }
 0x82e   : >> { %3169 = vmatmul.mubr.bf16.vlgmr.msra.gmra.mrb[12].mxu0 %v7209_v58  ;;  %3210 = vmatmul.mubr.bf16.vlgmr.msra.gmra.mrb[20].mxu1 %v7209_v58 }
 0x82f   : >> { %3219 = vmatpush1.bf16.msra.mxu0 %v5279_v13  ;;  %3260 = vmatpush1.bf16.msra.mxu1 %v5281_v14  ;;  %v5377_v13 = vcombine.low %v2303_v36, %v2311_v61  ;;  %v5392_v14 = vcombine.high %v2318_v1, %v2326_v2  ;;  %v2281_v36 = vld [vmem:[#allocation13 + $0x278] sm:$0xff] }
 0x830   : >> { %3220 = vmatprep.subr.bf16.mxu0 %v5296_v15  ;;  %3261 = vmatprep.subr.bf16.mxu1 %v5298_v16  ;;  %v5394_v15 = vcombine.high %v2319_v3, %v2327_v6  ;;  %v2208_v16 = vld [vmem:[#allocation13 + $0x30] sm:$0xff]  ;;  %v2289_v1 = vld [vmem:[#allocation13 + $0x2b8] sm:$0xff] }
 0x831   : >> { %3250 = vmatprep.mubr.bf16.mxu0 %v6617_v37  ;;  %3291 = vmatprep.mubr.bf16.mxu1 %v6617_v37  ;;  %v5283_v29 = vcombine.low %v2208_v16, %v2216_v17  ;;  %v2297_v2 = vld [vmem:[#allocation13 + $0x2f8] sm:$0xff] }
 0x833   : >> { %3221 = vmatpush1.bf16.msra.mxu0 %v5295_v21  ;;  %3262 = vmatpush1.bf16.msra.mxu1 %v5297_v22  ;;  %v5393_v21 = vcombine.low %v2319_v3, %v2327_v6  ;;  %v5284_v22 = vcombine.high %v2208_v16, %v2216_v17  ;;  %v5349_v6 = vcombine.low %v2273_v60, %v2281_v36  ;;  %v2305_v16 = vld [vmem:[#allocation13 + $0x338] sm:$0xff] }
 0x834   : >> { %3222 = vmatprep.subr.bf16.mxu0 %v5312_v23  ;;  %3263 = vmatprep.subr.bf16.mxu1 %v5314_v25  ;;  %v5286_v23 = vcombine.high %v2209_v18, %v2217_v19  ;;  %v2224_v25 = vld [vmem:[#allocation13 + $0xb0] sm:$0xff]  ;;  %v2313_v17 = vld [vmem:[#allocation13 + $0x378] sm:$0xff] }
 0x835   : >> { %v5299_v40 = vcombine.low %v2224_v25, %v2232_v26 }
 0x837   : >> { %3223 = vmatpush1.bf16.msra.mxu0 %v5311_v30  ;;  %3264 = vmatpush1.bf16.msra.mxu1 %v5313_v31  ;;  %v5285_v30 = vcombine.low %v2209_v18, %v2217_v19  ;;  %v5300_v31 = vcombine.high %v2224_v25, %v2232_v26  ;;  %v5365_v19 = vcombine.low %v2289_v1, %v2297_v2  ;;  %v2321_v25 = vld [vmem:[#allocation13 + $0x3b8] sm:$0xff] }
 0x838   : >> { %3224 = vmatprep.subr.bf16.mxu0 %v5328_v32  ;;  %3265 = vmatprep.subr.bf16.mxu1 %v5330_v33  ;;  %v5302_v32 = vcombine.high %v2225_v27, %v2233_v28  ;;  %v2240_v33 = vld [vmem:[#allocation13 + $0x130] sm:$0xff]  ;;  %v2329_v26 = vld [vmem:[#allocation13 + $0x3f8] sm:$0xff] }
 0x839   : >> { %v5315_v50 = vcombine.low %v2240_v33, %v2248_v34 }
 0x83b   : >> { %3225 = vmatpush1.bf16.msra.mxu0 %v5327_v42  ;;  %3266 = vmatpush1.bf16.msra.mxu1 %v5329_v43  ;;  %v5301_v42 = vcombine.low %v2225_v27, %v2233_v28  ;;  %v5316_v43 = vcombine.high %v2240_v33, %v2248_v34  ;;  %v5381_v28 = vcombine.low %v2305_v16, %v2313_v17  ;;  %v6198_v33 = vld [vmem:[#allocation14 + $0x40] sm:$0xff]  }
 0x83c   : >> { %3226 = vmatprep.subr.bf16.mxu0 %v5344_v44  ;;  %3267 = vmatprep.subr.bf16.mxu1 %v5346_v46  ;;  %v5318_v44 = vcombine.high %v2241_v35, %v2249_v38  ;;  %v2256_v46 = vld [vmem:[#allocation13 + $0x1b0] sm:$0xff]  ;;  %v6199_v34 = vld [vmem:[#allocation14 + $0xc0] sm:$0xff]  }
 0x83d   : >> { %v5331_v61 = vcombine.low %v2256_v46, %v2264_v47 }
 0x83f   : >> { %3227 = vmatpush1.bf16.msra.mxu0 %v5343_v52  ;;  %3268 = vmatpush1.bf16.msra.mxu1 %v5345_v53  ;;  %v5317_v52 = vcombine.low %v2241_v35, %v2249_v38  ;;  %v5332_v53 = vcombine.high %v2256_v46, %v2264_v47  ;;  %v6200_v35 = vld [vmem:[#allocation14] sm:$0xff]   ;;  %v6206_v46 = vld [vmem:[#allocation14 + $0x50] sm:$0xff]  }
 0x840   : >> { %3228 = vmatprep.subr.bf16.mxu0 %v5360_v54  ;;  %3269 = vmatprep.subr.bf16.mxu1 %v5362_v55  ;;  %v5334_v54 = vcombine.high %v2257_v48, %v2265_v49  ;;  %v2272_v55 = vld [vmem:[#allocation13 + $0x230] sm:$0xff]  ;;  %v6201_v38 = vld [vmem:[#allocation14 + $0x80] sm:$0xff]  }
 0x841   : >> { %v5347_v3 = vcombine.low %v2272_v55, %v2280_v59  ;;  %v6207_v47 = vld [vmem:[#allocation14 + $0xd0] sm:$0xff]  }
 0x843   : >> { %3229 = vmatpush1.bf16.msra.mxu0 %v5359_v41  ;;  %3270 = vmatpush1.bf16.msra.mxu1 %v5361_v62  ;;  %v5333_v41 = vcombine.low %v2257_v48, %v2265_v49  ;;  %v5348_v62 = vcombine.high %v2272_v55, %v2280_v59  ;;  %v6208_v48 = vld [vmem:[#allocation14 + $0x10] sm:$0xff]   ;;  %v6215_v55 = vld [vmem:[#allocation14 + $0xe0] sm:$0xff]  }
 0x844   : >> { %3230 = vmatprep.subr.bf16.mxu0 %v5376_v63  ;;  %3271 = vmatprep.subr.bf16.mxu1 %v5378_v0  ;;  %v2288_v63 = vld [vmem:[#allocation13 + $0x2b0] sm:$0xff]  ;;  %v6216_v59 = vld [vmem:[#allocation14 + $0x20] sm:$0xff]  }
 0x845   : >> { %v2296_v0 = vld [vmem:[#allocation13 + $0x2f0] sm:$0xff] }
 0x846   : >> { %v5363_v18 = vcombine.low %v2288_v63, %v2296_v0  ;;  %v6209_v49 = vld [vmem:[#allocation14 + $0x90] sm:$0xff]  }
 0x847   : >> { %3231 = vmatpush1.bf16.msra.mxu0 %v5375_v10  ;;  %3272 = vmatpush1.bf16.msra.mxu1 %v5377_v13  ;;  %v5364_v10 = vcombine.high %v2288_v63, %v2296_v0  ;;  %v5366_v13 = vcombine.high %v2289_v1, %v2297_v2  ;;  %v6223_v63 = vld [vmem:[#allocation14 + $0xf0] sm:$0xff]   ;;  %v6226_v2 = vld [vmem:[#allocation14 + $0x78] sm:$0xff]  }
 0x848   : >> { %3232 = vmatprep.subr.bf16.mxu0 %v5392_v14  ;;  %3273 = vmatprep.subr.bf16.mxu1 %v5394_v15  ;;  %v2304_v14 = vld [vmem:[#allocation13 + $0x330] sm:$0xff] }
 0x849   : >> { %v2312_v15 = vld [vmem:[#allocation13 + $0x370] sm:$0xff] }
 0x84a   : >> { %v5379_v27 = vcombine.low %v2304_v14, %v2312_v15  ;;  %v6224_v0 = vld [vmem:[#allocation14 + $0x30] sm:$0xff]  }
 0x84b   : >> { %3233 = vmatpush1.bf16.msra.mxu0 %v5391_v20  ;;  %3274 = vmatpush1.bf16.msra.mxu1 %v5393_v21  ;;  %v5380_v20 = vcombine.high %v2304_v14, %v2312_v15  ;;  %v5382_v21 = vcombine.high %v2305_v16, %v2313_v17  ;;  %v6225_v1 = vld [vmem:[#allocation14 + $0xb0] sm:$0xff]   ;;  %v6231_v14 = vld [vmem:[#allocation14 + $0x1c0] sm:$0xff]   ;;  %v2344_v15 = vsub.s32 2, %v6956_v4  ;;  %v7229_v16 = vld [vmem:[%s7396_s13] sm:$0xff]  ;;  %v2340_v17 = vsub.s32 1, %v6956_v4 }
 0x84c   : >> { %3300 = vmatprep.subr.bf16.mxu0 %v5284_v22  ;;  %3341 = vmatprep.subr.bf16.mxu1 %v5286_v23  ;;  %v2320_v22 = vld [vmem:[#allocation13 + $0x3b0] sm:$0xff] }
 0x84d   : >> { %v2328_v23 = vld [vmem:[#allocation13 + $0x3f0] sm:$0xff] }
 0x84e   : >> { %3251 = vmatmul.mubr.bf16.vlgmr.msra.gmra.mrb[16].mxu0 %v7209_v58  ;;  %3292 = vmatmul.mubr.bf16.vlgmr.msra.gmra.mrb[24].mxu1 %v7209_v58 }
 0x84f   : >> { %3301 = vmatpush1.bf16.msra.mxu0 %v5283_v29  ;;  %3342 = vmatpush1.bf16.msra.mxu1 %v5285_v30  ;;  %v5396_v29 = vcombine.high %v2320_v22, %v2328_v23  ;;  %v5398_v30 = vcombine.high %v2321_v25, %v2329_v26 }
 0x850   : >> { %3302 = vmatprep.subr.bf16.mxu0 %v5300_v31  ;;  %3343 = vmatprep.subr.bf16.mxu1 %v5302_v32  ;;  %v5395_v31 = vcombine.low %v2320_v22, %v2328_v23  ;;  %v5397_v32 = vcombine.low %v2321_v25, %v2329_v26 }
 0x851   : >> { %3332 = vmatprep.mubr.bf16.mxu0 %v6617_v37  ;;  %3373 = vmatprep.mubr.bf16.mxu1 %v6617_v37  ;;  %v5350_v37 = vcombine.high %v2273_v60, %v2281_v36  ;;  %v6217_v60 = vld [vmem:[#allocation14 + $0xa0] sm:$0xff]   ;;  %v6218_v36 = vld [vmem:[#allocation14 + $0x68] sm:$0xff]  }
 0x853   : >> { %3303 = vmatpush1.bf16.msra.mxu0 %v5299_v40  ;;  %3344 = vmatpush1.bf16.msra.mxu1 %v5301_v42  ;;  %v6202_v40 = vld [vmem:[#allocation14 + $0x48] sm:$0xff]  }
 0x854   : >> { %3304 = vmatprep.subr.bf16.mxu0 %v5316_v43  ;;  %3345 = vmatprep.subr.bf16.mxu1 %v5318_v44  ;;  %v6203_v42 = vld [vmem:[#allocation14 + $0xc8] sm:$0xff]  }
 0x855   : >> { %v6204_v43 = vld [vmem:[#allocation14 + $0x8] sm:$0xff]  }
 0x856   : >> { %v6205_v44 = vld [vmem:[#allocation14 + $0x88] sm:$0xff]  }
 0x857   : >> { %3305 = vmatpush1.bf16.msra.mxu0 %v5315_v50  ;;  %3346 = vmatpush1.bf16.msra.mxu1 %v5317_v52  ;;  %v6210_v50 = vld [vmem:[#allocation14 + $0x58] sm:$0xff]  }
 0x858   : >> { %3306 = vmatprep.subr.bf16.mxu0 %v5332_v53  ;;  %3347 = vmatprep.subr.bf16.mxu1 %v5334_v54  ;;  %v6211_v52 = vld [vmem:[#allocation14 + $0xd8] sm:$0xff]   ;;  %v6214_v54 = vld [vmem:[#allocation14 + $0x60] sm:$0xff]  }
 0x859   : >> { %v6212_v53 = vld [vmem:[#allocation14 + $0x18] sm:$0xff]  }
 0x85b   : >> { %3307 = vmatpush1.bf16.msra.mxu0 %v5331_v61  ;;  %3348 = vmatpush1.bf16.msra.mxu1 %v5333_v41  ;;  %v6219_v61 = vld [vmem:[#allocation14 + $0xe8] sm:$0xff]  }
 0x85c   : >> { %3308 = vmatprep.subr.bf16.mxu0 %v5348_v62  ;;  %3349 = vmatprep.subr.bf16.mxu1 %v5350_v37  ;;  %v6220_v41 = vld [vmem:[#allocation14 + $0x28] sm:$0xff]   ;;  %v6222_v37 = vld [vmem:[#allocation14 + $0x70] sm:$0xff]  }
 0x85d   : >> { %v6221_v62 = vld [vmem:[#allocation14 + $0xa8] sm:$0xff]  }
 0x85f   : >> { %3309 = vmatpush1.bf16.msra.mxu0 %v5347_v3  ;;  %3350 = vmatpush1.bf16.msra.mxu1 %v5349_v6  ;;  %v6227_v3 = vld [vmem:[#allocation14 + $0xf8] sm:$0xff]  }
 0x860   : >> { %3310 = vmatprep.subr.bf16.mxu0 %v5364_v10  ;;  %3351 = vmatprep.subr.bf16.mxu1 %v5366_v13  ;;  %v6228_v6 = vld [vmem:[#allocation14 + $0x38] sm:$0xff]   ;;  %v6230_v13 = vld [vmem:[#allocation14 + $0x140] sm:$0xff]  }
 0x861   : >> { %v6229_v10 = vld [vmem:[#allocation14 + $0xb8] sm:$0xff]  }
 0x863   : >> { %3311 = vmatpush1.bf16.msra.mxu0 %v5363_v18  ;;  %3352 = vmatpush1.bf16.msra.mxu1 %v5365_v19  ;;  %v2348_v18 = vsub.s32 3, %v6956_v4  ;;  %v2337_v19 = vrot.slane %v7229_v16, %v7142_v12 }
 0x864   : >> { %3312 = vmatprep.subr.bf16.mxu0 %v5380_v20  ;;  %3353 = vmatprep.subr.bf16.mxu1 %v5382_v21  ;;  %v2345_v20 = vrot.slane %v7229_v16, %v2344_v15  ;;  %v2341_v21 = vrot.slane %v7229_v16, %v2340_v17 }
 0x865   : >> { %v2349_v22 = vrot.slane %v7229_v16, %v2348_v18 }
 0x867   : >> { %3313 = vmatpush1.bf16.msra.mxu0 %v5379_v27  ;;  %3354 = vmatpush1.bf16.msra.mxu1 %v5381_v28 }
 0x868   : >> { %3314 = vmatprep.subr.bf16.mxu0 %v5396_v29  ;;  %3355 = vmatprep.subr.bf16.mxu1 %v5398_v30 }
 0x86b   : >> { %3315 = vmatpush1.bf16.msra.mxu0 %v5395_v31  ;;  %3356 = vmatpush1.bf16.msra.mxu1 %v5397_v32 }
 0x86c   : >> { %5647 = vmatprep.subr.bf16.mxu0 %v6198_v33  ;;  %5669 = vmatprep.subr.bf16.mxu1 %v6199_v34 }
 0x86e   : >> { %3333 = vmatmul.mubr.bf16.vlgmr.msra.gmra.mrb[20].mxu0 %v7209_v58  ;;  %3374 = vmatmul.mubr.bf16.vlgmr.msra.gmra.mrb[28].mxu1 %v7209_v58  ;;  %v6213_v58 = vld [vmem:[#allocation14 + $0x98] sm:$0xff]  }
 0x86f   : >> { %5648 = vmatpush3.bf16.msra.mxu0 %v6200_v35  ;;  %5670 = vmatpush3.bf16.msra.mxu1 %v6201_v38 }
 0x870   : >> { %5649 = vmatprep.subr.bf16.mxu0 %v6202_v40  ;;  %5671 = vmatprep.subr.bf16.mxu1 %v6203_v42 }
 0x873   : >> { %5650 = vmatpush3.bf16.msra.mxu0 %v6204_v43  ;;  %5672 = vmatpush3.bf16.msra.mxu1 %v6205_v44 }
 0x874   : >> { %5651 = vmatprep.subr.bf16.mxu0 %v6206_v46  ;;  %5673 = vmatprep.subr.bf16.mxu1 %v6207_v47  ;;  %v6232_v47 = vld [vmem:[#allocation14 + $0x100] sm:$0xff]  }
 0x877   : >> { %5652 = vmatpush3.bf16.msra.mxu0 %v6208_v48  ;;  %5674 = vmatpush3.bf16.msra.mxu1 %v6209_v49  ;;  %v6233_v48 = vld [vmem:[#allocation14 + $0x180] sm:$0xff]  }
 0x878   : >> { %5653 = vmatprep.subr.bf16.mxu0 %v6210_v50  ;;  %5675 = vmatprep.subr.bf16.mxu1 %v6211_v52  ;;  %v6234_v52 = vld [vmem:[#allocation14 + $0x148] sm:$0xff]  }
 0x87b   : >> { %5654 = vmatpush3.bf16.msra.mxu0 %v6212_v53  ;;  %5676 = vmatpush3.bf16.msra.mxu1 %v6213_v58  ;;  %v6235_v53 = vld [vmem:[#allocation14 + $0x1c8] sm:$0xff]  }
 0x87c   : >> { %5655 = vmatprep.subr.bf16.mxu0 %v6214_v54  ;;  %5677 = vmatprep.subr.bf16.mxu1 %v6215_v55  ;;  %v6236_v58 = vld [vmem:[#allocation14 + $0x108] sm:$0xff]   ;;  %v6238_v55 = vld [vmem:[#allocation14 + $0x150] sm:$0xff]  }
 0x87d   : >> { %v6237_v54 = vld [vmem:[#allocation14 + $0x188] sm:$0xff]  }
 0x87f   : >> { %5656 = vmatpush3.bf16.msra.mxu0 %v6216_v59  ;;  %5678 = vmatpush3.bf16.msra.mxu1 %v6217_v60  ;;  %v6239_v59 = vld [vmem:[#allocation14 + $0x1d0] sm:$0xff]  }
 0x880   : >> { %5657 = vmatprep.subr.bf16.mxu0 %v6218_v36  ;;  %5679 = vmatprep.subr.bf16.mxu1 %v6219_v61  ;;  %v6240_v60 = vld [vmem:[#allocation14 + $0x110] sm:$0xff]   ;;  %v6242_v61 = vld [vmem:[#allocation14 + $0x158] sm:$0xff]  }
 0x881   : >> { %v6241_v36 = vld [vmem:[#allocation14 + $0x190] sm:$0xff]  }
 0x883   : >> { %5658 = vmatpush3.bf16.msra.mxu0 %v6220_v41  ;;  %5680 = vmatpush3.bf16.msra.mxu1 %v6221_v62  ;;  %v6243_v41 = vld [vmem:[#allocation14 + $0x1d8] sm:$0xff]  }
 0x884   : >> { %5659 = vmatprep.subr.bf16.mxu0 %v6222_v37  ;;  %5681 = vmatprep.subr.bf16.mxu1 %v6223_v63  ;;  %v6244_v62 = vld [vmem:[#allocation14 + $0x118] sm:$0xff]   ;;  %v6246_v63 = vld [vmem:[#allocation14 + $0x160] sm:$0xff]  }
 0x885   : >> { %v6245_v37 = vld [vmem:[#allocation14 + $0x198] sm:$0xff]  }
 0x887   : >> { %5660 = vmatpush3.bf16.msra.mxu0 %v6224_v0  ;;  %5682 = vmatpush3.bf16.msra.mxu1 %v6225_v1  ;;  %v6247_v0 = vld [vmem:[#allocation14 + $0x1e0] sm:$0xff]  }
 0x888   : >> { %5661 = vmatprep.subr.bf16.mxu0 %v6226_v2  ;;  %5683 = vmatprep.subr.bf16.mxu1 %v6227_v3  ;;  %v6248_v1 = vld [vmem:[#allocation14 + $0x120] sm:$0xff]   ;;  %v6250_v3 = vld [vmem:[#allocation14 + $0x168] sm:$0xff]  }
 0x889   : >> { %v6249_v2 = vld [vmem:[#allocation14 + $0x1a0] sm:$0xff]  }
 0x88b   : >> { %5662 = vmatpush3.bf16.msra.mxu0 %v6228_v6  ;;  %5684 = vmatpush3.bf16.msra.mxu1 %v6229_v10  ;;  %v6251_v6 = vld [vmem:[#allocation14 + $0x1e8] sm:$0xff]   ;;  %v2352_v10 = vsub.s32 4, %v6956_v4 }
 0x88c   : >> { %5691 = vmatprep.subr.bf16.mxu0 %v6230_v13  ;;  %5713 = vmatprep.subr.bf16.mxu1 %v6231_v14  ;;  %v2360_v13 = vsub.s32 6, %v6956_v4  ;;  %v6252_v14 = vld [vmem:[#allocation14 + $0x128] sm:$0xff]  }
 0x8e1   : >> { %v3088_v23 = vpop.f32.mrb[8].mxu0  ;;  %v3129_v25 = vpop.f32.mrb[16].mxu1 }
 0x8e2   : >> { %v3089_v26 = vadd.f32 %v3088_v23, %v2337_v19  ;;  %v3130_v27 = vadd.f32 %v3129_v25, %v2345_v20  ;;  %v3090_v28 = vpop.f32.mrb[9].mxu0  ;;  %v3131_v29 = vpop.f32.mrb[17].mxu1  ;;  %v6253_v19 = vld [vmem:[#allocation14 + $0x1a8] sm:$0xff]   ;;  %v2356_v20 = vsub.s32 5, %v6956_v4  ;;  %v6255_v23 = vld [vmem:[#allocation14 + $0x1f0] sm:$0xff]   ;;  %v2353_v25 = vrot.slane %v7229_v16, %v2352_v10 }
 0x8e3   : >> { %v3091_v30 = vadd.f32 %v3090_v28, %v2341_v21  ;;  %v3132_v31 = vadd.f32 %v3131_v29, %v2349_v22  ;;  %v3092_v32 = vpop.f32.mrb[10].mxu0  ;;  %v3133_v33 = vpop.f32.mrb[18].mxu1  ;;  %v2364_v21 = vsub.s32 7, %v6956_v4  ;;  %v6254_v22 = vld [vmem:[#allocation14 + $0x170] sm:$0xff]  }
 0x8e4   : >> { %v3382_v34 = vmax.f32 %v3089_v26, 0.0  ;;  %v3384_v35 = vmax.f32 %v3130_v27, 0.0  ;;  %v3093_v38 = vpop.f32.mrb[11].mxu0  ;;  %v3134_v40 = vpop.f32.mrb[19].mxu1  ;;  %v2361_v26 = vrot.slane %v7229_v16, %v2360_v13  ;;  %v2357_v27 = vrot.slane %v7229_v16, %v2356_v20  ;;  %v6256_v29 = vld [vmem:[#allocation14 + $0x130] sm:$0xff]   ;;  %v6259_v32 = vld [vmem:[#allocation14 + $0x1f8] sm:$0xff]  }
 0x8e5   : >> { %v3383_v42 = vmax.f32 %v3091_v30, 0.0  ;;  %v3385_v43 = vmax.f32 %v3132_v31, 0.0  ;;  %v2365_v28 = vrot.slane %v7229_v16, %v2364_v21  ;;  %v6257_v30 = vld [vmem:[#allocation14 + $0x1b0] sm:$0xff]   ;;  %v6258_v31 = vld [vmem:[#allocation14 + $0x178] sm:$0xff]  }
 0x8e6   : >> { %v3398_v49 = vpack.c.bf16 %v3382_v34, %v3382_v34  ;;  %v3400_v50 = vpack.c.bf16 %v3384_v35, %v3384_v35  ;;  %v6261_v16 = vld [vmem:[#allocation14 + $0x1b8] sm:$0xff]  }
 0x8e7   : >> { %v3399_v44 = vpack.c.bf16 %v3383_v42, %v3383_v42  ;;  %v3401_v46 = vpack.c.bf16 %v3385_v43, %v3385_v43 }
 0x8e9   : >> { %4477 = vmatprep.mubr.bf16.mxu0 %v3399_v44  ;;  %4517 = vmatprep.mubr.bf16.mxu1 %v3401_v46 }
 0x8ea   : >> { %4478 = vmatmul.mubr.bf16.vlgmr.msra.gmra.mrb[24].mxu0 %v3398_v49  ;;  %4518 = vmatmul.mubr.bf16.vlgmr.msra.gmra.mrb[32].mxu1 %v3400_v50 }
 0x8eb   : >> { %5692 = vmatpush3.bf16.msra.mxu0 %v6232_v47  ;;  %5714 = vmatpush3.bf16.msra.mxu1 %v6233_v48  ;;  %v6260_v48 = vld [vmem:[#allocation14 + $0x138] sm:$0xff]  }
 0x8ec   : >> { %5693 = vmatprep.subr.bf16.mxu0 %v6234_v52  ;;  %5715 = vmatprep.subr.bf16.mxu1 %v6235_v53 }
 0x8ef   : >> { %5694 = vmatpush3.bf16.msra.mxu0 %v6236_v58  ;;  %5716 = vmatpush3.bf16.msra.mxu1 %v6237_v54  ;;  %v6262_v58 = vld [vmem:[#allocation14 + $0x240] sm:$0xff]  }
 0x8f0   : >> { %5695 = vmatprep.subr.bf16.mxu0 %v6238_v55  ;;  %5717 = vmatprep.subr.bf16.mxu1 %v6239_v59  ;;  %v6263_v54 = vld [vmem:[#allocation14 + $0x2c0] sm:$0xff]  }
 0x8f3   : >> { %5696 = vmatpush3.bf16.msra.mxu0 %v6240_v60  ;;  %5718 = vmatpush3.bf16.msra.mxu1 %v6241_v36 }
 0x8f4   : >> { %5697 = vmatprep.subr.bf16.mxu0 %v6242_v61  ;;  %5719 = vmatprep.subr.bf16.mxu1 %v6243_v41  ;;  %v6264_v61 = vld [vmem:[#allocation14 + $0x200] sm:$0xff]  }
 0x8f5   : >> { %v6265_v41 = vld [vmem:[#allocation14 + $0x280] sm:$0xff]  }
 0x8f7   : >> { %5698 = vmatpush3.bf16.msra.mxu0 %v6244_v62  ;;  %5720 = vmatpush3.bf16.msra.mxu1 %v6245_v37 }
 0x8f8   : >> { %5699 = vmatprep.subr.bf16.mxu0 %v6246_v63  ;;  %5721 = vmatprep.subr.bf16.mxu1 %v6247_v0  ;;  %v6266_v63 = vld [vmem:[#allocation14 + $0x248] sm:$0xff]  }
 0x8f9   : >> { %v6267_v0 = vld [vmem:[#allocation14 + $0x2c8] sm:$0xff]  }
 0x8fb   : >> { %5700 = vmatpush3.bf16.msra.mxu0 %v6248_v1  ;;  %5722 = vmatpush3.bf16.msra.mxu1 %v6249_v2  ;;  %v6268_v1 = vld [vmem:[#allocation14 + $0x208] sm:$0xff]  }
 0x8fc   : >> { %5701 = vmatprep.subr.bf16.mxu0 %v6250_v3  ;;  %5723 = vmatprep.subr.bf16.mxu1 %v6251_v6  ;;  %v6269_v2 = vld [vmem:[#allocation14 + $0x288] sm:$0xff]   ;;  %v6270_v3 = vld [vmem:[#allocation14 + $0x250] sm:$0xff]  }
 0x8fd   : >> { %v6271_v6 = vld [vmem:[#allocation14 + $0x2d0] sm:$0xff]  }
 0x8ff   : >> { %5702 = vmatpush3.bf16.msra.mxu0 %v6252_v14  ;;  %5724 = vmatpush3.bf16.msra.mxu1 %v6253_v19  ;;  %v6272_v14 = vld [vmem:[#allocation14 + $0x210] sm:$0xff]  }
 0x900   : >> { %5703 = vmatprep.subr.bf16.mxu0 %v6254_v22  ;;  %5725 = vmatprep.subr.bf16.mxu1 %v6255_v23  ;;  %v6273_v19 = vld [vmem:[#allocation14 + $0x290] sm:$0xff]   ;;  %v6274_v22 = vld [vmem:[#allocation14 + $0x258] sm:$0xff]  }
 0x901   : >> { %v3170_v33 = vpop.f32.mrb[12].mxu0  ;;  %v3211_v34 = vpop.f32.mrb[20].mxu1  ;;  %v6275_v23 = vld [vmem:[#allocation14 + $0x2d8] sm:$0xff]  }
 0x902   : >> { %v3171_v35 = vadd.f32 %v3170_v33, %v2353_v25  ;;  %v3212_v38 = vadd.f32 %v3211_v34, %v2361_v26  ;;  %v3172_v40 = vpop.f32.mrb[13].mxu0  ;;  %v3213_v42 = vpop.f32.mrb[21].mxu1  ;;  %v6276_v25 = vld [vmem:[#allocation14 + $0x218] sm:$0xff]   ;;  %v6284_v33 = vld [vmem:[#allocation14 + $0x228] sm:$0xff]  }
 0x903   : >> { %v3173_v43 = vadd.f32 %v3172_v40, %v2357_v27  ;;  %v3214_v44 = vadd.f32 %v3213_v42, %v2365_v28  ;;  %v3174_v46 = vpop.f32.mrb[14].mxu0  ;;  %v3215_v47 = vpop.f32.mrb[22].mxu1  ;;  %5704 = vmatpush3.bf16.msra.mxu0 %v6256_v29  ;;  %5726 = vmatpush3.bf16.msra.mxu1 %v6257_v30  ;;  %v6277_v26 = vld [vmem:[#allocation14 + $0x298] sm:$0xff]   ;;  %v6278_v27 = vld [vmem:[#allocation14 + $0x260] sm:$0xff]   ;;  %v6285_v34 = vld [vmem:[#allocation14 + $0x2a8] sm:$0xff]  }
 0x904   : >> { %v3386_v49 = vmax.f32 %v3171_v35, 0.0  ;;  %v3388_v50 = vmax.f32 %v3212_v38, 0.0  ;;  %v3175_v52 = vpop.f32.mrb[15].mxu0  ;;  %v3216_v53 = vpop.f32.mrb[23].mxu1  ;;  %5705 = vmatprep.subr.bf16.mxu0 %v6258_v31  ;;  %5727 = vmatprep.subr.bf16.mxu1 %v6259_v32  ;;  %v6279_v28 = vld [vmem:[#allocation14 + $0x2e0] sm:$0xff]   ;;  %v6282_v31 = vld [vmem:[#allocation14 + $0x268] sm:$0xff]  }
 0x905   : >> { %v3387_v55 = vmax.f32 %v3173_v43, 0.0  ;;  %v3389_v59 = vmax.f32 %v3214_v44, 0.0  ;;  %v6280_v29 = vld [vmem:[#allocation14 + $0x220] sm:$0xff]   ;;  %v6283_v32 = vld [vmem:[#allocation14 + $0x2e8] sm:$0xff]   ;;  %v6286_v38 = vld [vmem:[#allocation14 + $0x270] sm:$0xff]  }
 0x906   : >> { %v3402_v62 = vpack.c.bf16 %v3386_v49, %v3386_v49  ;;  %v3404_v37 = vpack.c.bf16 %v3388_v50, %v3388_v50  ;;  %v6281_v30 = vld [vmem:[#allocation14 + $0x2a0] sm:$0xff]   ;;  %v6287_v40 = vld [vmem:[#allocation14 + $0x2f0] sm:$0xff]   ;;  %v6291_v49 = vld [vmem:[#allocation14 + $0x2f8] sm:$0xff]  }
 0x907   : >> { %v3403_v60 = vpack.c.bf16 %v3387_v55, %v3387_v55  ;;  %v3405_v36 = vpack.c.bf16 %v3389_v59, %v3389_v59  ;;  %5706 = vmatpush3.bf16.msra.mxu0 %v6260_v48  ;;  %5728 = vmatpush3.bf16.msra.mxu1 %v6261_v16  ;;  %v7263_v35 = vld [vmem:[%s7396_s13 + $0x8] sm:$0xff]  ;;  %v6288_v47 = vld [vmem:[#allocation14 + $0x230] sm:$0xff]   ;;  %v6290_v16 = vld [vmem:[#allocation14 + $0x278] sm:$0xff]  }
 0x908   : >> { %5735 = vmatprep.subr.bf16.mxu0 %v6262_v58  ;;  %5757 = vmatprep.subr.bf16.mxu1 %v6263_v54  ;;  %v2369_v42 = vrot.slane %v7263_v35, %v7142_v12  ;;  %v2377_v43 = vrot.slane %v7263_v35, %v2344_v15  ;;  %v2373_v44 = vrot.slane %v7263_v35, %v2340_v17  ;;  %v6289_v48 = vld [vmem:[#allocation14 + $0x2b0] sm:$0xff]  }
 0x909   : >> { %4557 = vmatprep.mubr.bf16.mxu0 %v3403_v60  ;;  %4597 = vmatprep.mubr.bf16.mxu1 %v3405_v36  ;;  %v2381_v46 = vrot.slane %v7263_v35, %v2348_v18  ;;  %v6292_v36 = vld [vmem:[#allocation14 + $0x238] sm:$0xff]  }
 0x90a   : >> { %4558 = vmatmul.mubr.bf16.vlgmr.msra.gmra.mrb[28].mxu0 %v3402_v62  ;;  %4598 = vmatmul.mubr.bf16.vlgmr.msra.gmra.mrb[36].mxu1 %v3404_v37  ;;  %v6293_v18 = vld [vmem:[#allocation14 + $0x2b8] sm:$0xff]  }
 0x90b   : >> { %5736 = vmatpush3.bf16.msra.mxu0 %v6264_v61  ;;  %5758 = vmatpush3.bf16.msra.mxu1 %v6265_v41 }
 0x90c   : >> { %5737 = vmatprep.subr.bf16.mxu0 %v6266_v63  ;;  %5759 = vmatprep.subr.bf16.mxu1 %v6267_v0  ;;  %v6294_v63 = vld [vmem:[#allocation14 + $0x340] sm:$0xff]  }
 0x90d   : >> { %v6295_v0 = vld [vmem:[#allocation14 + $0x3c0] sm:$0xff]  }
 0x90f   : >> { %5738 = vmatpush3.bf16.msra.mxu0 %v6268_v1  ;;  %5760 = vmatpush3.bf16.msra.mxu1 %v6269_v2 }
 0x910   : >> { %5739 = vmatprep.subr.bf16.mxu0 %v6270_v3  ;;  %5761 = vmatprep.subr.bf16.mxu1 %v6271_v6 }
 0x913   : >> { %5740 = vmatpush3.bf16.msra.mxu0 %v6272_v14  ;;  %5762 = vmatpush3.bf16.msra.mxu1 %v6273_v19  ;;  %v6296_v14 = vld [vmem:[#allocation14 + $0x300] sm:$0xff]  }
 0x914   : >> { %5741 = vmatprep.subr.bf16.mxu0 %v6274_v22  ;;  %5763 = vmatprep.subr.bf16.mxu1 %v6275_v23  ;;  %v6297_v19 = vld [vmem:[#allocation14 + $0x380] sm:$0xff]  }
 0x917   : >> { %5742 = vmatpush3.bf16.msra.mxu0 %v6276_v25  ;;  %5764 = vmatpush3.bf16.msra.mxu1 %v6277_v26  ;;  %v6298_v25 = vld [vmem:[#allocation14 + $0x348] sm:$0xff]  }
 0x918   : >> { %5743 = vmatprep.subr.bf16.mxu0 %v6278_v27  ;;  %5765 = vmatprep.subr.bf16.mxu1 %v6279_v28  ;;  %v6299_v26 = vld [vmem:[#allocation14 + $0x3c8] sm:$0xff]  }
 0x919   : >> { %v6300_v27 = vld [vmem:[#allocation14 + $0x308] sm:$0xff]  }
 0x91a   : >> { %v6301_v28 = vld [vmem:[#allocation14 + $0x388] sm:$0xff]  }
 0x91b   : >> { %5744 = vmatpush3.bf16.msra.mxu0 %v6280_v29  ;;  %5766 = vmatpush3.bf16.msra.mxu1 %v6281_v30  ;;  %v6302_v29 = vld [vmem:[#allocation14 + $0x350] sm:$0xff]  }
 0x91c   : >> { %5745 = vmatprep.subr.bf16.mxu0 %v6282_v31  ;;  %5767 = vmatprep.subr.bf16.mxu1 %v6283_v32  ;;  %v6303_v30 = vld [vmem:[#allocation14 + $0x3d0] sm:$0xff]  }
 0x91d   : >> { %v6304_v31 = vld [vmem:[#allocation14 + $0x310] sm:$0xff]  }
 0x91e   : >> { %v6305_v32 = vld [vmem:[#allocation14 + $0x390] sm:$0xff]  }
 0x91f   : >> { %5746 = vmatpush3.bf16.msra.mxu0 %v6284_v33  ;;  %5768 = vmatpush3.bf16.msra.mxu1 %v6285_v34  ;;  %v6306_v33 = vld [vmem:[#allocation14 + $0x358] sm:$0xff]  }
 0x920   : >> { %5747 = vmatprep.subr.bf16.mxu0 %v6286_v38  ;;  %5769 = vmatprep.subr.bf16.mxu1 %v6287_v40  ;;  %v6307_v34 = vld [vmem:[#allocation14 + $0x3d8] sm:$0xff]  }
 0x921   : >> { %v3252_v50 = vpop.f32.mrb[16].mxu0  ;;  %v3293_v52 = vpop.f32.mrb[24].mxu1  ;;  %v6308_v38 = vld [vmem:[#allocation14 + $0x318] sm:$0xff]  }
 0x922   : >> { %v3253_v53 = vadd.f32 %v3252_v50, %v2369_v42  ;;  %v3294_v15 = vadd.f32 %v3293_v52, %v2377_v43  ;;  %v3254_v58 = vpop.f32.mrb[17].mxu0  ;;  %v3295_v54 = vpop.f32.mrb[25].mxu1  ;;  %v6309_v40 = vld [vmem:[#allocation14 + $0x398] sm:$0xff]   ;;  %v6310_v42 = vld [vmem:[#allocation14 + $0x360] sm:$0xff]   ;;  %v6318_v50 = vld [vmem:[#allocation14 + $0x370] sm:$0xff]  }
 0x923   : >> { %v3255_v55 = vadd.f32 %v3254_v58, %v2373_v44  ;;  %v3296_v59 = vadd.f32 %v3295_v54, %v2381_v46  ;;  %v3256_v60 = vpop.f32.mrb[18].mxu0  ;;  %v3297_v17 = vpop.f32.mrb[26].mxu1  ;;  %5748 = vmatpush3.bf16.msra.mxu0 %v6288_v47  ;;  %5770 = vmatpush3.bf16.msra.mxu1 %v6289_v48  ;;  %v6311_v43 = vld [vmem:[#allocation14 + $0x3e0] sm:$0xff]   ;;  %v6314_v47 = vld [vmem:[#allocation14 + $0x368] sm:$0xff]   ;;  %v6319_v52 = vld [vmem:[#allocation14 + $0x3f0] sm:$0xff]   ;;  %v2389_v58 = vrot.slane %v7263_v35, %v2356_v20 }
 0x924   : >> { %v3390_v61 = vmax.f32 %v3253_v53, 0.0  ;;  %v3392_v41 = vmax.f32 %v3294_v15, 0.0  ;;  %v3257_v62 = vpop.f32.mrb[19].mxu0  ;;  %v3298_v37 = vpop.f32.mrb[27].mxu1  ;;  %5749 = vmatprep.subr.bf16.mxu0 %v6290_v16  ;;  %5771 = vmatprep.subr.bf16.mxu1 %v6291_v49  ;;  %v6312_v44 = vld [vmem:[#allocation14 + $0x320] sm:$0xff]   ;;  %v6315_v48 = vld [vmem:[#allocation14 + $0x3e8] sm:$0xff]   ;;  %v2385_v53 = vrot.slane %v7263_v35, %v2352_v10  ;;  %v2393_v15 = vrot.slane %v7263_v35, %v2360_v13 }
 0x925   : >> { %v3391_v1 = vmax.f32 %v3255_v55, 0.0  ;;  %v3393_v2 = vmax.f32 %v3296_v59, 0.0  ;;  %v6313_v46 = vld [vmem:[#allocation14 + $0x3a0] sm:$0xff]   ;;  %v6316_v16 = vld [vmem:[#allocation14 + $0x328] sm:$0xff]   ;;  %v2397_v54 = vrot.slane %v7263_v35, %v2364_v21  ;;  %v6320_v55 = vld [vmem:[#allocation14 + $0x330] sm:$0xff]  }
 0x926   : >> { %v3406_v22 = vpack.c.bf16 %v3390_v61, %v3390_v61  ;;  %v3408_v23 = vpack.c.bf16 %v3392_v41, %v3392_v41  ;;  %v6317_v49 = vld [vmem:[#allocation14 + $0x3a8] sm:$0xff]   ;;  %v6321_v59 = vld [vmem:[#allocation14 + $0x3b0] sm:$0xff]   ;;  %v6322_v60 = vld [vmem:[#allocation14 + $0x378] sm:$0xff]  }
 0x927   : >> { %v3407_v3 = vpack.c.bf16 %v3391_v1, %v3391_v1  ;;  %v3409_v6 = vpack.c.bf16 %v3393_v2, %v3393_v2  ;;  %5750 = vmatpush3.bf16.msra.mxu0 %v6292_v36  ;;  %5772 = vmatpush3.bf16.msra.mxu1 %v6293_v18  ;;  %v6323_v10 = vld [vmem:[#allocation14 + $0x3f8] sm:$0xff]  }
 0x928   : >> { %5779 = vmatprep.subr.bf16.mxu0 %v6294_v63  ;;  %5801 = vmatprep.subr.bf16.mxu1 %v6295_v0  ;;  %v6324_v0 = vld [vmem:[#allocation14 + $0x338] sm:$0xff]  }
 0x929   : >> { %4637 = vmatprep.mubr.bf16.mxu0 %v3407_v3  ;;  %4677 = vmatprep.mubr.bf16.mxu1 %v3409_v6  ;;  %v6325_v21 = vld [vmem:[#allocation14 + $0x3b8] sm:$0xff]  }
 0x92a   : >> { %4638 = vmatmul.mubr.bf16.vlgmr.msra.gmra.mrb[32].mxu0 %v3406_v22  ;;  %4678 = vmatmul.mubr.bf16.vlgmr.msra.gmra.mrb[40].mxu1 %v3408_v23 }
 0x92b   : >> { %5780 = vmatpush3.bf16.msra.mxu0 %v6296_v14  ;;  %5802 = vmatpush3.bf16.msra.mxu1 %v6297_v19 }
 0x92c   : >> { %5781 = vmatprep.subr.bf16.mxu0 %v6298_v25  ;;  %5803 = vmatprep.subr.bf16.mxu1 %v6299_v26 }
 0x92f   : >> { %5782 = vmatpush3.bf16.msra.mxu0 %v6300_v27  ;;  %5804 = vmatpush3.bf16.msra.mxu1 %v6301_v28  ;;  %v5399_v28 = vld [vmem:[%s7398_s15] ss:$0 sm:$0xff] }
 0x930   : >> { %5783 = vmatprep.subr.bf16.mxu0 %v6302_v29  ;;  %5805 = vmatprep.subr.bf16.mxu1 %v6303_v30 }
 0x933   : >> { %5784 = vmatpush3.bf16.msra.mxu0 %v6304_v31  ;;  %5806 = vmatpush3.bf16.msra.mxu1 %v6305_v32 }
 0x934   : >> { %5785 = vmatprep.subr.bf16.mxu0 %v6306_v33  ;;  %5807 = vmatprep.subr.bf16.mxu1 %v6307_v34 }
 0x937   : >> { %5786 = vmatpush3.bf16.msra.mxu0 %v6308_v38  ;;  %5808 = vmatpush3.bf16.msra.mxu1 %v6309_v40 }
 0x938   : >> { %5787 = vmatprep.subr.bf16.mxu0 %v6310_v42  ;;  %5809 = vmatprep.subr.bf16.mxu1 %v6311_v43 }
 0x93b   : >> { %5788 = vmatpush3.bf16.msra.mxu0 %v6312_v44  ;;  %5810 = vmatpush3.bf16.msra.mxu1 %v6313_v46 }
 0x93c   : >> { %5789 = vmatprep.subr.bf16.mxu0 %v6314_v47  ;;  %5811 = vmatprep.subr.bf16.mxu1 %v6315_v48 }
 0x93f   : >> { %5790 = vmatpush3.bf16.msra.mxu0 %v6316_v16  ;;  %5812 = vmatpush3.bf16.msra.mxu1 %v6317_v49 }
 0x940   : >> { %5791 = vmatprep.subr.bf16.mxu0 %v6318_v50  ;;  %5813 = vmatprep.subr.bf16.mxu1 %v6319_v52 }
 0x941   : >> { %v3334_v17 = vpop.f32.mrb[20].mxu0  ;;  %v3375_v36 = vpop.f32.mrb[28].mxu1 }
 0x942   : >> { %v3335_v18 = vadd.f32 %v3334_v17, %v2385_v53  ;;  %v3376_v13 = vadd.f32 %v3375_v36, %v2393_v15  ;;  %v3336_v61 = vpop.f32.mrb[21].mxu0  ;;  %v3377_v41 = vpop.f32.mrb[29].mxu1 }
 0x943   : >> { %v3337_v62 = vadd.f32 %v3336_v61, %v2389_v58  ;;  %v3378_v37 = vadd.f32 %v3377_v41, %v2397_v54  ;;  %v3338_v63 = vpop.f32.mrb[22].mxu0  ;;  %v3379_v20 = vpop.f32.mrb[30].mxu1  ;;  %5792 = vmatpush3.bf16.msra.mxu0 %v6320_v55  ;;  %5814 = vmatpush3.bf16.msra.mxu1 %v6321_v59 }
 0x944   : >> { %v3394_v35 = vmax.f32 %v3335_v18, 0.0  ;;  %v3396_v1 = vmax.f32 %v3376_v13, 0.0  ;;  %v3339_v2 = vpop.f32.mrb[23].mxu0  ;;  %v3380_v3 = vpop.f32.mrb[31].mxu1  ;;  %5793 = vmatprep.subr.bf16.mxu0 %v6322_v60  ;;  %5815 = vmatprep.subr.bf16.mxu1 %v6323_v10 }
 0x945   : >> { %v3395_v6 = vmax.f32 %v3337_v62, 0.0  ;;  %v3397_v14 = vmax.f32 %v3378_v37, 0.0 }
 0x946   : >> { %v3410_v23 = vpack.c.bf16 %v3394_v35, %v3394_v35  ;;  %v3412_v25 = vpack.c.bf16 %v3396_v1, %v3396_v1 }
 0x947   : >> { %v3411_v19 = vpack.c.bf16 %v3395_v6, %v3395_v6  ;;  %v3413_v22 = vpack.c.bf16 %v3397_v14, %v3397_v14  ;;  %5794 = vmatpush3.bf16.msra.mxu0 %v6324_v0  ;;  %5816 = vmatpush3.bf16.msra.mxu1 %v6325_v21 }
 0x948   : >> { %5994 = vmatprep.subr.bf16.mxu0 %v6615_v56  ;;  %6014 = vmatprep.subr.bf16.mxu1 %v6615_v56 }
 0x949   : >> { %4717 = vmatprep.mubr.bf16.mxu0 %v3411_v19  ;;  %4757 = vmatprep.mubr.bf16.mxu1 %v3413_v22 }
 0x94a   : >> { %4718 = vmatmul.mubr.bf16.vlgmr.msra.gmra.mrb[36].mxu0 %v3410_v23  ;;  %4758 = vmatmul.mubr.bf16.vlgmr.msra.gmra.mrb[44].mxu1 %v3412_v25 }
 0x94b   : >> { %6010 = vmatprep.mubr.msk.bf16.mxu0 %vm6616_vm10, %v6615_v56  ;;  %6016 = vmatprep.mubr.msk.bf16.mxu1 %vm6616_vm10, %v6615_v56 }
 0x9bd   : >> { %v5663_v26 = vpop.f32.mrb[24].mxu0  ;;  %v5685_v27 = vpop.f32.mrb[32].mxu1 }
 0x9be   : >> { %v5664_v29 = vpop.f32.mrb[25].mxu0  ;;  %v5686_v30 = vpop.f32.mrb[33].mxu1 }
 0x9bf   : >> { %v5665_v31 = vadd.f32 %v5664_v29, %v5663_v26  ;;  %v5687_v32 = vadd.f32 %v5686_v30, %v5685_v27  ;;  %v5666_v33 = vpop.f32.mrb[26].mxu0  ;;  %v5688_v34 = vpop.f32.mrb[34].mxu1  ;;  %v6326_v26 = vld [vmem:[#allocation16] sm:$0xff]   ;;  %v6327_v27 = vld [vmem:[#allocation16 + $0x8] sm:$0xff]  }
 0x9c0   : >> { %v5667_v38 = vpop.f32.mrb[27].mxu0  ;;  %v5689_v40 = vpop.f32.mrb[35].mxu1  ;;  %5995 = vmatpush3.bf16.msra.mxu0 %v6326_v26  ;;  %v6328_v33 = vld [vmem:[#allocation16 + $0x10] sm:$0xff]   ;;  %v6330_v34 = vld [vmem:[#allocation16 + $0x20] sm:$0xff]  }
 0x9c1   : >> { %v4480_v42 = vadd.f32 %v5665_v31, %v5399_v28  ;;  %5996 = vmatprep.subr.bf16.mxu0 %v6615_v56  ;;  %v6331_v38 = vld [vmem:[#allocation16 + $0x28] sm:$0xff]   ;;  %v6332_v40 = vld [vmem:[#allocation16 + $0x30] sm:$0xff]  }
 0x9c3   : >> { %v4520_v43 = vadd.f32 %v5687_v32, %v4480_v42  ;;  %v6333_v42 = vld [vmem:[#allocation16 + $0x38] sm:$0xff]  }
 0x9c4   : >> { %5997 = vmatpush3.bf16.msra.mxu0 %v6327_v27 }
 0x9c5   : >> { %5998 = vmatprep.subr.bf16.mxu0 %v6615_v56 }
 0x9c8   : >> { %5999 = vmatpush3.bf16.msra.mxu0 %v6328_v33 }
 0x9c9   : >> { %6000 = vmatprep.subr.bf16.mxu0 %v6615_v56 }
 0x9dd   : >> { %v5707_v44 = vpop.f32.mrb[28].mxu0  ;;  %v5729_v46 = vpop.f32.mrb[36].mxu1 }
 0x9de   : >> { %v5708_v47 = vpop.f32.mrb[29].mxu0  ;;  %v5730_v48 = vpop.f32.mrb[37].mxu1 }
 0x9df   : >> { %v5709_v16 = vadd.f32 %v5708_v47, %v5707_v44  ;;  %v5731_v49 = vadd.f32 %v5730_v48, %v5729_v46  ;;  %v5710_v50 = vpop.f32.mrb[30].mxu0  ;;  %v5732_v52 = vpop.f32.mrb[38].mxu1  ;;  %v5528_v48 = vld [vmem:[%s7448_s8] ss:$0 sm:$0xff]  ;;  %s7321_s8 = ssub.s32 8, %s6596_s29 }
 0x9e0   : >> { %v5711_v53 = vpop.f32.mrb[31].mxu0  ;;  %v5733_v15 = vpop.f32.mrb[39].mxu1  ;;  %p1149_p11 = scmp.lt.s32.totalorder %s7321_s8, 4  ;;  %p5540_p3 = scmp.ge.s32.totalorder %s7321_s8, 1 }
 0x9e1   : >> { %v4560_v58 = vadd.f32 %v5709_v16, %v4520_v43  ;;  %v5530_v15 = vld [vmem:[%s7450_s26] ss:$0 sm:$0xff]  ;;  %p5547_p5 = scmp.ge.s32.totalorder %s7321_s8, 2 }
 0x9e2   : >> { %s7325_s30 = scalar_select %p1149_p11, %s7321_s8, 4 }
 0x9e3   : >> { %v4600_v54 = vadd.f32 %v5731_v49, %v4560_v58  ;;  %v5529_v49 = vld [vmem:[%s7449_s2] ss:$0 sm:$0xff] }
 0x9e4   : >> { %p4972_p2 = scmp.eq.s32.totalorder %s7325_s30, 1  ;;  %p4986_p0 = scmp.eq.s32.totalorder %s7325_s30, 2 }
 0x9e5   : >> { %p5003_p10 = scmp.eq.s32.totalorder %s7325_s30, 3 }
 0x9fd   : >> { %v5751_v55 = vpop.f32.mrb[32].mxu0  ;;  %v5773_v59 = vpop.f32.mrb[40].mxu1 }
 0x9fe   : >> { %v5752_v60 = vpop.f32.mrb[33].mxu0  ;;  %v5774_v10 = vpop.f32.mrb[41].mxu1 }
 0x9ff   : >> { %v5753_v17 = vadd.f32 %v5752_v60, %v5751_v55  ;;  %v5775_v36 = vadd.f32 %v5774_v10, %v5773_v59  ;;  %v5754_v18 = vpop.f32.mrb[34].mxu0  ;;  %v5776_v13 = vpop.f32.mrb[42].mxu1 }
 0xa00   : >> { %v5755_v61 = vpop.f32.mrb[35].mxu0  ;;  %v5777_v41 = vpop.f32.mrb[43].mxu1 }
 0xa01   : >> { %v4640_v62 = vadd.f32 %v5753_v17, %v4600_v54 }
 0xa03   : >> { %v4680_v37 = vadd.f32 %v5775_v36, %v4640_v62  ;;  %v4909_v36 = vld [vmem:[%s7451_s5] sm:$0x1] }
 0xa1d   : >> { %v5795_v63 = vpop.f32.mrb[36].mxu0  ;;  %v5817_v20 = vpop.f32.mrb[44].mxu1 }
 0xa1e   : >> { %v5796_v0 = vpop.f32.mrb[37].mxu0  ;;  %v5818_v21 = vpop.f32.mrb[45].mxu1 }
 0xa1f   : >> { %v5797_v35 = vadd.f32 %v5796_v0, %v5795_v63  ;;  %v5819_v1 = vadd.f32 %v5818_v21, %v5817_v20  ;;  %v5798_v2 = vpop.f32.mrb[38].mxu0  ;;  %v5820_v3 = vpop.f32.mrb[46].mxu1 }
 0xa20   : >> { %v5799_v6 = vpop.f32.mrb[39].mxu0  ;;  %v5821_v14 = vpop.f32.mrb[47].mxu1 }
 0xa21   : >> { %v4720_v19 = vadd.f32 %v5797_v35, %v4680_v37 }
 0xa23   : >> { %v4760_v22 = vadd.f32 %v5819_v1, %v4720_v19 }
 0xa25   : >> { %v4765_v23 = vadd.f32 %v4760_v22, %v7205_v57  ;;  %v6329_v57 = vld [vmem:[#allocation16 + $0x18] sm:$0xff]  }
 0xa26   : >> { %6001 = vmatpush3.bf16.msra.mxu0 %v6329_v57 }
 0xa27   : >> { %v4768_v25 = vsel %vm2172_vm0, %v4765_v23, 0.0  ;;  %6002 = vmatprep.subr.bf16.mxu0 %v6615_v56 }
 0xa28   : >> { %4769 = vadd.xlane.f32.xlu0 %v4768_v25 }
 0xa2a   : >> { %6003 = vmatpush3.bf16.msra.mxu0 %v6330_v34 }
 0xa2b   : >> { %6004 = vmatprep.subr.bf16.mxu0 %v6615_v56 }
 0xa2e   : >> { %6005 = vmatpush3.bf16.msra.mxu0 %v6331_v38 }
 0xa2f   : >> { %6006 = vmatprep.subr.bf16.mxu0 %v6615_v56 }
 0xa32   : >> { %6007 = vmatpush3.bf16.msra.mxu0 %v6332_v40 }
 0xa33   : >> { %6008 = vmatprep.subr.bf16.mxu0 %v6615_v56  ;;  %v4911_v56 = vld [vmem:[#allocation5] sm:$0x1] }
 0xa36   : >> { %6009 = vmatpush3.bf16.msra.mxu0 %v6333_v42 }
 0xa3e   : >> { %4914 = vperm.xlu0 %6173, %v4911_v56  }
 0xab5   : >> { %v4770_v28 = vpop.xlane.xlu0 %4769 }
 0xab6   : >> { %v4771_v29 = vmul.f32 0.0078125, %v4770_v28 }
 0xab8   : >> { %v4772_v30 = vsub.f32 %v4765_v23, %v4771_v29 }
 0xaba   : >> { %v4773_v31 = vmul.f32 %v4772_v30, %v4772_v30 }
 0xabc   : >> { %v4774_v32 = vsel %vm2172_vm0, %v4773_v31, 0.0 }
 0xabd   : >> { %4775 = vadd.xlane.f32.xlu1 %v4774_v32  ;;  %v4915_v18 = vpop.permute.xlu0 %4914 }
 0xabe   : >> { %v4920_v13 = vrot.slane %v4915_v18, %v7142_v12 }
 0xb4a   : >> { %v4776_v43 = vpop.xlane.xlu1 %4775 }
 0xb4b   : >> { %v4777_v44 = vmul.f32 0.0078125, %v4776_v43 }
 0xb4d   : >> { %v4778_v46 = vadd.f32 1e-05, %v4777_v44 }
 0xb4f   : >> { %6352 = vrsqrt.f32 %v4778_v46 }
 0xb59   : >> { %v6353_v47 = vpop.eup %6352 }
 0xb5a   : >> { %v4780_v16 = vmul.f32 %v6353_v47, %v4772_v30 }
 0xb5c   : >> { %v4787_v50 = vmul.f32 %v5528_v48, %v4780_v16 }
 0xb5e   : >> { %v4794_v52 = vadd.f32 %v5529_v49, %v4787_v50 }
 0xb60   : >> { %4795 = vst [vmem:[#allocation3] sm:$0xf] %v4794_v52  ;;  %v4796_v53 = vpack.c.bf16 %v4794_v52, %v4794_v52 }
 0xb62   : >> { %6011 = vmatmul.mubr.bf16.vlgmr.msra.gmra.mrb[40].mxu0 %v4796_v53 }
 0xc35   : >> { %v4902_v58 = vpop.f32.mrb[40].mxu0 }
 0xc36   : >> { %v4903_v54 = vadd.f32 %v5530_v15, %v4902_v58  ;;  %v6012_v55 = vpop.f32.mrb[41].mxu0 }
 0xc37   : >> { %v4905_v59 = vpop.f32.mrb[42].mxu0 }
 0xc38   : >> { %v4908_v60 = vmax.f32 %v4903_v54, 0.0  ;;  %v6013_v10 = vpop.f32.mrb[43].mxu0 }
 0xc3a   : >> { %v4910_v17 = vpack.c.bf16 %v4908_v60, %v4908_v60 }
 0xc3c   : >> { %6015 = vmatpush3.bf16.xpose.msra.mxu1 %v4910_v17 }
 0xc43   : >> { %6017 = vmatmul.mubr.bf16.vlgmr.msra.gmra.mrb[48].mxu1 %v4909_v36 }
 0xd16   : >> { %v4955_v61 = vpop.f32.mrb[48].mxu1 }
 0xd17   : >> { %v4956_v41 = vadd.f32 %v4955_v61, %v4920_v13  ;;  %v6018_v62 = vpop.f32.mrb[49].mxu1 }
 0xd18   : >> { %v4958_v37 = vpop.f32.mrb[50].mxu1 }
 0xd19   : >> { %v5539_v63 = vmul.f32 -1.442695, %v4956_v41  ;;  %v6019_v20 = vpop.f32.mrb[51].mxu1 }
 0xd1b   : >> { %6354 = vpow2.f32 %v5539_v63 }
 0xd25   : >> { %v6355_v0 = vpop.eup %6354 }
 0xd26   : >> { %v4964_v21 = vadd.f32 1.0, %v6355_v0 }
 0xd28   : >> { %6356 = vrcp.f32 %v4964_v21 }
 0xd32   : >> { %v6357_v35 = vpop.eup %6356 }
 0xd33   : >> { %4968 = vst.msk [vmem:[#allocation2] sm:$0x1] %vm4967_vm1, %v6357_v35 }
 0xd3a   : >> { %v4969_v1 = vld [vmem:[#allocation2] sm:$0x1] }
 0xd3b   : >> { %4981 = vrot.lane.b32.xlu1 %v4969_v1, %s6618_s27  ;;  %6026 = vpush %v4969_v1 }
 0xd3f   : >> { %4998 = vrot.lane.b32.xlu1 %v4969_v1, %s6619_s28 }
 0xd43   : >> { %5015 = vrot.lane.b32.xlu1 %v4969_v1, %s6620_s16  ;;  %s5032_s16 = scalar_lea.vmem %s6970_s19, %s6592_s0 }
 0xd6c   : >> { %s6027_s23 = spop %6026 }
 0xd6d   : >> { %p4971_p12 = scmp.ge.f32.partialorder %s6027_s23, 0.5 }
 0xd6f   : >> { %p4973_p7 = por %p4972_p2, %p4971_p12 }
 0xd71   : >> { %p7329_p13 = pnand %p5540_p3, %p4973_p7  ;;  %p5553_p3 = scmp.ge.s32.totalorder %s7321_s8, 3 }
 0xd73   : >> { %s5545_s1 = scalar_select %p7329_p13, 0, 1 }
 0xd75   : >> { %s7464_s1 = smov (%p7329_p13, %s5545_s1), 0 }
 0xd76   : >> { %p4991_p12 = scmp.eq.s32.totalorder %s7464_s1, 0 }
 0xdad   : >> { %v4982_v12 = vpop.permute.xlu1 %4981 }
 0xdae   : >> { %6028 = vpush %v4982_v12 }
 0xdb1   : >> { %v4999_v2 = vpop.permute.xlu1 %4998 }
 0xdb2   : >> { %6030 = vpush %v4999_v2 }
 0xdb5   : >> { %v5016_v3 = vpop.permute.xlu1 %5015 }
 0xdb6   : >> { %6032 = vpush %v5016_v3 }
 0xddf   : >> { %s6029_s6 = spop %6028 }
 0xde0   : >> { %p4985_p1 = scmp.ge.f32.partialorder %s6029_s6, 0.5 }
 0xde2   : >> { %p4987_p4 = por %p4986_p0, %p4985_p1 }
 0xde3   : >> { %s6031_s26 = spop %6030 }
 0xde4   : >> { %p4989_p6 = pnand %p5547_p5, %p4987_p4  ;;  %p5002_p8 = scmp.ge.f32.partialorder %s6031_s26, 0.5 }
 0xde5   : >> { %p5020_p4 = scmp.eq.s32.totalorder %s7325_s30, 4  ;;  %s7468_s30 = smov (!%p7329_p13, %s7325_s30), 1 }
 0xde6   : >> { %p4990_p11 = pneg %p4989_p6  ;;  %p5004_p7 = por %p5003_p10, %p5002_p8 }
 0xde7   : >> { %s6033_s5 = spop %6032  ;;  %p5559_p10 = scmp.ge.s32.totalorder %s7321_s8, 4 }
 0xde8   : >> { %p7340_p2 = pnand %p4991_p12, %p4990_p11  ;;  %p5006_p1 = pnand %p5553_p3, %p5004_p7 }
 0xde9   : >> { %p5019_p5 = scmp.ge.f32.partialorder %s6033_s5, 0.5 }
 0xdea   : >> { %s7453_s4 = scalar_select %p7340_p2, 1, 0 }
 0xdeb   : >> { %s5552_s17 = scalar_select %p7340_p2, 0, 1 }
 0xdec   : >> { %p5007_p6 = pneg %p5006_p1  ;;  %p5021_p8 = por %p5020_p4, %p5019_p5 }
 0xded   : >> { %p4996_p0 = scmp.gt.s32.totalorder %s7464_s1, %s5552_s17  ;;  %p7455_p7 = scmp.ne.s32.totalorder %s7453_s4, 0 }
 0xdee   : >> { %p5023_p2 = pnand %p5559_p10, %p5021_p8 }
 0xdef   : >> { %s7466_s1 = smov (!%p4996_p0, %s7464_s1), %s5552_s17  ;;  %s7472_s30 = smov (!%p7455_p7, %s7468_s30), 2 }
 0xdf0   : >> { %p5008_p11 = scmp.eq.s32.totalorder %s7466_s1, 0  ;;  %p5024_p3 = pneg %p5023_p2 }
 0xdf2   : >> { %p7348_p12 = pnand %p5008_p11, %p5007_p6 }
 0xdf4   : >> { %s5558_s28 = scalar_select %p7348_p12, 0, 1 }
 0xdf5   : >> { %s7474_s30 = smov (!%p7348_p12, %s7472_s30), 3 }
 0xdf6   : >> { %p5013_p9 = scmp.gt.s32.totalorder %s7466_s1, %s5558_s28 }
 0xdf8   : >> { %s7470_s1 = smov (!%p5013_p9, %s7466_s1), %s5558_s28 }
 0xdf9   : >> { %p5025_p0 = scmp.eq.s32.totalorder %s7470_s1, 0 }
 0xdfb   : >> { %p5026_p1 = pnand %p5025_p0, %p5024_p3 }
 0xdfd   : >> { %s7476_s30 = smov (!%p5026_p1, %s7474_s30), 4 }
 0xdfe   : >> { %5034 = sst [smem:[#allocation4]] %s7476_s30  ;;  %s5574_s23 = scalar_lea.vmem [#allocation3], %s7476_s30 }
 0xdff   : >> { %v5576_v6 = vld [vmem:[%s5574_s23 - $0x1] sm:$0x1] }
 0xe00   : >> { %5033 = vst [vmem:[%s5032_s16] sm:$0x1] %v5576_v6 }
 0xe01 PF: >> { %s5035_s8 = sld [smem:[#allocation4]]  ;;  %s5038_s2 = sadd.s32 1, %s6592_s0 }
 0xe02   : >> { %p7456_p9 = scmp.lt.s32.totalorder %s6596_s29, 8  ;;  %s1141_s21 = sadd.s32 1, %s6600_s21  }
 0xe03   : >> { %p1138_p2 = scmp.ge.s32.totalorder %s1141_s21, 8  }
 0xe04   : >> { %s7478_s2 = smov (!%p7456_p9, %s5038_s2), %s6592_s0  ;;  %p7457_p13 = pmov %p7456_p9 }
 0xe05   : >> { %s7458_s0 = smov %s7478_s2  ;;  %1140 = sbr.rel (!%p1138_p2) target bundleno = 507 (0x1fb), region = 182 }
 0xe06   : > { %s5040_s30 = scvt.s32.f32 (%p1138_p2), %s7478_s2 }
 0xe07   : >> { %s5036_s1 = sadd.s32 %s6596_s29, %s5035_s8 }
 0xe08   : >> { %s7480_s1 = smov (!%p7457_p13, %s5036_s1), %s6596_s29  ;;  %v5041_v14 = vstv (%p1138_p2), %s5040_s30 }
 0xe09   : >> { %s7459_s29 = smov %s7480_s1  ;;  %5042 = vst [vmem:[%s6970_s19 + $0x8] sm:$0x1] (%p1138_p2), %v5041_v14 }
 0xe0c PF: > { %s7460_s6 = sld [smem:[#allocation21_spill]] }
 0xe12   : > { %s38_s29 = sadd.s32 1, %s7460_s6  }
 0xe13   : > { %p35_p5 = scmp.ge.s32.totalorder %s38_s29, 4  }
 0xe15   :  { %37 = sbr.rel (!%p35_p5) target bundleno = 17 (0x11), region = 193 }
 0xe1c   :  { %5064 = vsyncpa [#allocation7], 1 }
 0xe1d   :  { %5066 = vsyncpa [#allocation7 + $0x1], 1 }
 0xe1e   :  { %5067 = vsyncpa [#allocation9], 1 }
 0xe1f   :  { %5068 = vsyncpa [#allocation12], 1 }
 0xe20   :  { %5069 = vsyncpa [#allocation15], 1 }

</bundles_post_ra>
